<compile_context>
chip_gen: v5e
topology: v5e:2x2
jax: 0.10.0
libtpu: 0.0.40
codegen_flags: <defaults>
</compile_context>

<pallas_src>
import numpy as np
import jax
import jax.numpy as jnp
from jax.experimental import pallas as pl
from jax.experimental.pallas import tpu as pltpu


# ----------------------------------------------------------------------------
# Kernel 1: fused ConvTranspose2d(k=2,s=2) + F.pad + concat([x2, x1up]),
# written directly into the zero-padded, spatially-flattened buffer that
# conv1 consumes (channels [0:C2] = skip connection, [C2:] = upsampled x1).
# ----------------------------------------------------------------------------
def upsample_concat(x1f, x2, w_up, b_up, interleave, *, H1, W1, H2, W2, py, px):
    N, Cin, _ = x1f.shape
    _, C2, _, _ = x2.shape
    Chalf = w_up.shape[2]
    Ctot = C2 + Chalf
    Wp = W2 + 2
    L = (H2 + 3) * Wp

    def kernel(x1_ref, x2_ref, w_ref, b_ref, e_ref, o_ref):
        # Zero the whole padded buffer: conv halo + F.pad region stay exactly 0.
        o_ref[...] = jnp.zeros_like(o_ref)

        # Skip connection x2 -> channels [0:C2], interior positions.
        x2v = x2_ref[0]                                        # (C2, H2, W2)
        for h in range(H2):
            o_ref[0, pl.ds(0, C2), pl.ds((h + 1) * Wp + 1, W2)] = x2v[:, h, :]

        # ConvTranspose2d: the 4 (di, dj) parity planes as full-image matmuls
        # (large N dim feeds the MXU), bias fused.
        xf = x1_ref[0]                                         # (Cin, H1*W1)
        b = b_ref[...]                                         # (Chalf, 1)
        planes = [[jnp.dot(w_ref[di, dj], xf,
                           preferred_element_type=jnp.float32) + b
                   for dj in range(2)] for di in range(2)]

        # Even/odd column interleave done on the MXU with constant 0/1
        # selector matrices, then one contiguous lane-window store per row.
        e0 = e_ref[0]                                          # (W1, 2*W1)
        e1 = e_ref[1]
        for i in range(H1):
            for di in range(2):
                a0 = planes[di][0][:, i * W1:(i + 1) * W1]     # (Chalf, W1)
                a1 = planes[di][1][:, i * W1:(i + 1) * W1]
                row = (jnp.dot(a0, e0, preferred_element_type=jnp.float32) +
                       jnp.dot(a1, e1, preferred_element_type=jnp.float32))
                base = (2 * i + di + py + 1) * Wp + (px + 1)
                o_ref[0, pl.ds(C2, Chalf), pl.ds(base, 2 * W1)] = row

    return pl.pallas_call(
        kernel,
        out_shape=jax.ShapeDtypeStruct((N, Ctot, L), jnp.float32),
        grid=(N,),
        in_specs=[
            pl.BlockSpec((1, Cin, H1 * W1), lambda n: (n, 0, 0)),
            pl.BlockSpec((1, C2, H2, W2), lambda n: (n, 0, 0, 0)),
            pl.BlockSpec((2, 2, Chalf, Cin), lambda n: (0, 0, 0, 0)),
            pl.BlockSpec((Chalf, 1), lambda n: (0, 0)),
            pl.BlockSpec((2, W1, 2 * W1), lambda n: (0, 0, 0)),
        ],
        out_specs=pl.BlockSpec((1, Ctot, L), lambda n: (n, 0, 0)),
        compiler_params=pltpu.CompilerParams(dimension_semantics=("parallel",)),
    )(x1f, x2, w_up, b_up, interleave)


# ----------------------------------------------------------------------------
# Kernel 2: 3x3 "same" conv (+bias) on a padded-flat (N, Cin, L) buffer.
# Optional masked prologue applies the previous layer's BatchNorm affine +
# ReLU (so no separate BN/ReLU HBM pass). Emits the conv output back in
# padded-flat layout (directly usable as the next conv's input) plus
# per-(batch, channel) sum / sum-of-squares of the valid pixels for BatchNorm.
# ----------------------------------------------------------------------------
def conv3x3_fused(x, mask, w, b, *, H, W, scale=None, shift=None):
    N, Cin, L = x.shape
    Cout = w.shape[2]
    Wp = W + 2
    Mwide = H * Wp
    prologue = scale is not None

    def kernel(*refs):
        if prologue:
            x_ref, m_ref, w_ref, b_ref, s_ref, t_ref, y_ref, sm_ref, sq_ref = refs
        else:
            x_ref, m_ref, w_ref, b_ref, y_ref, sm_ref, sq_ref = refs

        xv = x_ref[0]                                          # (Cin, L)
        mfull = m_ref[...]                                     # (1, L) 0/1 mask
        if prologue:
            # BN affine + ReLU of the previous conv, re-zeroing the padding.
            xv = jnp.maximum(xv * s_ref[...] + t_ref[...], 0.0) * mfull

        # 9 tap matmuls over the whole image (contiguous lane windows of the
        # flattened padded input) accumulated into one (Cout, H*Wp) register
        # accumulator; bias added once at the end.
        acc = None
        for dh in range(3):
            for dw in range(3):
                off = dh * Wp + dw
                contrib = jnp.dot(w_ref[dh, dw], xv[:, off:off + Mwide],
                                  preferred_element_type=jnp.float32)
                acc = contrib if acc is None else acc + contrib
        acc = acc + b_ref[...]                                 # (Cout, 1)

        # Zero the wrap-around garbage columns (w >= W); this also makes the
        # BatchNorm statistics below cover exactly the valid H*W pixels.
        acc = acc * mfull[:, Wp + 1: Wp + 1 + Mwide]

        sm_ref[0] = jnp.sum(acc, axis=1, keepdims=True)
        sq_ref[0] = jnp.sum(acc * acc, axis=1, keepdims=True)

        # Write back in padded-flat layout (interior starts at offset Wp+1).
        y_ref[...] = jnp.zeros_like(y_ref)
        y_ref[0, :, pl.ds(Wp + 1, Mwide)] = acc

    in_specs = [
        pl.BlockSpec((1, Cin, L), lambda n: (n, 0, 0)),
        pl.BlockSpec((1, L), lambda n: (0, 0)),
        pl.BlockSpec((3, 3, Cout, Cin), lambda n: (0, 0, 0, 0)),
        pl.BlockSpec((Cout, 1), lambda n: (0, 0)),
    ]
    args = [x, mask, w, b]
    if prologue:
        in_specs += [pl.BlockSpec((Cin, 1), lambda n: (0, 0)),
                     pl.BlockSpec((Cin, 1), lambda n: (0, 0))]
        args += [scale, shift]

    return pl.pallas_call(
        kernel,
        out_shape=(jax.ShapeDtypeStruct((N, Cout, L), jnp.float32),
                   jax.ShapeDtypeStruct((N, Cout, 1), jnp.float32),
                   jax.ShapeDtypeStruct((N, Cout, 1), jnp.float32)),
        grid=(N,),
        in_specs=in_specs,
        out_specs=(pl.BlockSpec((1, Cout, L), lambda n: (n, 0, 0)),
                   pl.BlockSpec((1, Cout, 1), lambda n: (n, 0, 0)),
                   pl.BlockSpec((1, Cout, 1), lambda n: (n, 0, 0))),
        compiler_params=pltpu.CompilerParams(dimension_semantics=("parallel",)),
    )(*args)


# ----------------------------------------------------------------------------
# Kernel 3: final BatchNorm affine + ReLU, reading the padded-flat conv2
# output (viewed 4-D, free minor-dim reshape) and emitting NCHW directly.
# ----------------------------------------------------------------------------
def bn_relu_finalize(y_flat, scale, shift, *, H, W):
    N, C, L = y_flat.shape
    Wp = W + 2
    y4 = y_flat.reshape(N, C, H + 3, Wp)   # minor-dim split: layout-preserving

    def kernel(x_ref, s_ref, t_ref, o_ref):
        v = x_ref[0, :, pl.ds(1, H), pl.ds(1, W)]              # (C, H, W)
        o_ref[0, :, :, :] = jnp.maximum(v * s_ref[...] + t_ref[...], 0.0)

    return pl.pallas_call(
        kernel,
        out_shape=jax.ShapeDtypeStruct((N, C, H, W), jnp.float32),
        grid=(N,),
        in_specs=[pl.BlockSpec((1, C, H + 3, Wp), lambda n: (n, 0, 0, 0)),
                  pl.BlockSpec((C, 1, 1), lambda n: (0, 0, 0)),
                  pl.BlockSpec((C, 1, 1), lambda n: (0, 0, 0))],
        out_specs=pl.BlockSpec((1, C, H, W), lambda n: (n, 0, 0, 0)),
        compiler_params=pltpu.CompilerParams(dimension_semantics=("parallel",)),
    )(y4, scale, shift)


# ----------------------------------------------------------------------------
# Tiny O(C) glue: fold batch statistics into BatchNorm scale/shift.
# ----------------------------------------------------------------------------
def _bn_scale_shift(ssum, ssq, gamma, beta, count, eps=1e-5):
    s = jnp.sum(ssum, axis=0)[:, 0]
    q = jnp.sum(ssq, axis=0)[:, 0]
    mean = s / count
    var = q / count - mean * mean          # biased variance, like torch BN (training)
    scale = gamma * jax.lax.rsqrt(var + eps)
    shift = beta - mean * scale
    return scale, shift


# ----------------------------------------------------------------------------
# Up.forward (NCHW in / NCHW out, no activation-sized XLA passes)
# ----------------------------------------------------------------------------
def up_forward(x1_nchw, x2_nchw, p, eps=1e-5):
    x1 = x1_nchw.astype(jnp.float32)
    x2 = x2_nchw.astype(jnp.float32)
    N, Cin, H1, W1 = x1.shape
    _, C2, H2, W2 = x2.shape
    Chalf = p["up_w"].shape[1]
    Cmid = p["c1_w"].shape[-1]
    Cout = p["c2_w"].shape[-1]
    Wp = W2 + 2
    L = (H2 + 3) * Wp
    py = (H2 - 2 * H1) // 2
    px = (W2 - 2 * W1) // 2

    # Tiny glue-side constant prep (weights / masks only, no activation passes).
    x1f = x1.reshape(N, Cin, H1 * W1)                     # free reshape
    w_up = jnp.transpose(p["up_w"], (2, 3, 1, 0))         # (2,2,Chalf,Cin)
    b_up = p["up_b"].reshape(Chalf, 1)
    w1 = jnp.transpose(p["c1_w"], (0, 1, 3, 2))           # (3,3,Cmid,Ctot)
    b1 = p["c1_b"].reshape(Cmid, 1)
    w2 = jnp.transpose(p["c2_w"], (0, 1, 3, 2))           # (3,3,Cout,Cmid)
    b2 = p["c2_b"].reshape(Cout, 1)

    # 0/1 even/odd column-interleave selectors for the 2x upsample scatter.
    jj = jnp.arange(W1)[:, None]
    qq = jnp.arange(2 * W1)[None, :]
    interleave = jnp.stack([(qq == 2 * jj).astype(jnp.float32),
                            (qq == 2 * jj + 1).astype(jnp.float32)])

    # Interior-validity mask of the padded-flat layout.
    pos = jnp.arange(L)
    ph = pos // Wp
    pw = pos % Wp
    mask = (((ph >= 1) & (ph <= H2) & (pw >= 1) & (pw <= W2))
            .astype(jnp.float32).reshape(1, L))

    # Stage 1: ConvTranspose2d + F.pad + channel concat, fused.
    x0 = upsample_concat(x1f, x2, w_up, b_up, interleave,
                         H1=H1, W1=W1, H2=H2, W2=W2, py=py, px=px)

    # Stage 2: conv1 (+bias) with fused BN1 batch statistics.
    y1, s1, q1 = conv3x3_fused(x0, mask, w1, b1, H=H2, W=W2)
    sc1, sh1 = _bn_scale_shift(s1, q1, p["bn1_g"], p["bn1_b"], N * H2 * W2, eps)

    # Stage 3: conv2 with fused BN1-affine+ReLU prologue and BN2 statistics.
    y2, s2, q2 = conv3x3_fused(y1, mask, w2, b2, H=H2, W=W2,
                               scale=sc1.reshape(Cmid, 1),
                               shift=sh1.reshape(Cmid, 1))
    sc2, sh2 = _bn_scale_shift(s2, q2, p["bn2_g"], p["bn2_b"], N * H2 * W2, eps)

    # Stage 4: BN2 affine + ReLU, emitted directly as NCHW.
    return bn_relu_finalize(y2, sc2.reshape(Cout, 1, 1), sh2.reshape(Cout, 1, 1),
                            H=H2, W=W2)


# ----------------------------------------------------------------------------
# Pure-JAX reference for validation
# ----------------------------------------------------------------------------
def _ref_conv3x3(x, w, b):
    return jax.lax.conv_general_dilated(
        x, w, (1, 1), "SAME",
        dimension_numbers=("NHWC", "HWIO", "NHWC")) + b


def _ref_bn_relu(x, g, be, eps=1e-5):
    m = jnp.mean(x, axis=(0, 1, 2))
    v = jnp.mean(jnp.square(x - m), axis=(0, 1, 2))
    return jnp.maximum((x - m) * jax.lax.rsqrt(v + eps) * g + be, 0.0)


def ref_up(x1_nchw, x2_nchw, p):
    x1 = jnp.transpose(x1_nchw, (0, 2, 3, 1))
    x2 = jnp.transpose(x2_nchw, (0, 2, 3, 1))
    N, H, W, _ = x1.shape
    Cout = p["up_w"].shape[1]
    y = jnp.einsum("nhwi,iokl->nhkwlo", x1, p["up_w"])
    y = y.reshape(N, 2 * H, 2 * W, Cout) + p["up_b"]
    dy = x2.shape[1] - y.shape[1]
    dx = x2.shape[2] - y.shape[2]
    y = jnp.pad(y, ((0, 0), (dy // 2, dy - dy // 2), (dx // 2, dx - dx // 2), (0, 0)))
    x = jnp.concatenate([x2, y], axis=-1)
    h = _ref_bn_relu(_ref_conv3x3(x, p["c1_w"], p["c1_b"]), p["bn1_g"], p["bn1_b"])
    h = _ref_bn_relu(_ref_conv3x3(h, p["c2_w"], p["c2_b"]), p["bn2_g"], p["bn2_b"])
    return jnp.transpose(h, (0, 3, 1, 2))


if __name__ == "__main__":
    key = jax.random.PRNGKey(0)
    in_ch, out_ch = 8, 4          # Up(in_channels=8, out_channels=4, bilinear=False)
    half = in_ch // 2
    N, H, W = 2, 8, 8             # x1 spatial (low-res feature map)
    H2, W2 = 18, 18               # x2 spatial (skip connection; exercises F.pad)

    ks = jax.random.split(key, 12)
    params = {
        "up_w":  0.1 * jax.random.normal(ks[0], (in_ch, half, 2, 2), jnp.float32),
        "up_b":  0.1 * jax.random.normal(ks[1], (half,), jnp.float32),
        "c1_w":  0.1 * jax.random.normal(ks[2], (3, 3, in_ch, out_ch), jnp.float32),
        "c1_b":  0.1 * jax.random.normal(ks[3], (out_ch,), jnp.float32),
        "bn1_g": 1.0 + 0.1 * jax.random.normal(ks[4], (out_ch,), jnp.float32),
        "bn1_b": 0.1 * jax.random.normal(ks[5], (out_ch,), jnp.float32),
        "c2_w":  0.1 * jax.random.normal(ks[6], (3, 3, out_ch, out_ch), jnp.float32),
        "c2_b":  0.1 * jax.random.normal(ks[7], (out_ch,), jnp.float32),
        "bn2_g": 1.0 + 0.1 * jax.random.normal(ks[8], (out_ch,), jnp.float32),
        "bn2_b": 0.1 * jax.random.normal(ks[9], (out_ch,), jnp.float32),
    }
    x1 = jax.random.normal(ks[10], (N, in_ch, H, W), jnp.float32)     # NCHW, like torch
    x2 = jax.random.normal(ks[11], (N, half, H2, W2), jnp.float32)    # NCHW, like torch

    out = jax.block_until_ready(jax.jit(up_forward)(x1, x2, params))
    ref = jax.block_until_ready(ref_up(x1, x2, params))

    assert out.shape == (N, out_ch, H2, W2), out.shape
    np.testing.assert_allclose(np.asarray(out), np.asarray(ref), rtol=2e-2, atol=2e-2)
    print("KERNEL_OK")
</pallas_src>

<mosaic_0001>
module attributes {stable_mosaic.version = 11 : i64} {
  func.func @kernel(%arg0: i32, %arg1: memref<1x8x64xf32, #tpu.memory_space<vmem>>, %arg2: memref<1x4x18x18xf32, #tpu.memory_space<vmem>>, %arg3: memref<2x2x4x8xf32, #tpu.memory_space<vmem>>, %arg4: memref<4x1xf32, #tpu.memory_space<vmem>>, %arg5: memref<2x8x16xf32, #tpu.memory_space<vmem>>, %arg6: memref<1x8x420xf32, #tpu.memory_space<vmem>>) attributes {dimension_semantics = [#tpu.dimension_semantics<parallel>], iteration_bounds = array<i64: 2>, scalar_prefetch = 0 : i64, scratch_operands = 0 : i64, tpu.core_type = #tpu.core_type<tc>, window_params = [{transform_indices = @transform_0, window_bounds = array<i64: 1, 8, 64>}, {transform_indices = @transform_1, window_bounds = array<i64: 1, 4, 18, 18>}, {pipeline_mode = #tpu.pipeline_mode<synchronous>, transform_indices = @transform_2, window_bounds = array<i64: 2, 2, 4, 8>}, {pipeline_mode = #tpu.pipeline_mode<synchronous>, transform_indices = @transform_3, window_bounds = array<i64: 4, 1>}, {pipeline_mode = #tpu.pipeline_mode<synchronous>, transform_indices = @transform_4, window_bounds = array<i64: 2, 8, 16>}, {transform_indices = @transform_5, window_bounds = array<i64: 1, 8, 420>}]} {
    %cst = arith.constant 0.000000e+00 : f32
    %0 = vector.broadcast %cst : f32 to vector<1x8x420xf32>
    %c0 = arith.constant 0 : index
    %c0_0 = arith.constant 0 : index
    %c0_1 = arith.constant 0 : index
    %1 = vector.load %arg6[%c0, %c0_0, %c0_1] : memref<1x8x420xf32, #tpu.memory_space<vmem>>, vector<1x8x420xf32>
    tpu.vector_store %arg6[%c0, %c0_0, %c0_1], %0 {strides = array<i32>} : memref<1x8x420xf32, #tpu.memory_space<vmem>>, vector<1x8x420xf32>,
    %c0_2 = arith.constant 0 : index
    %c0_3 = arith.constant 0 : index
    %c0_4 = arith.constant 0 : index
    %c0_5 = arith.constant 0 : index
    %2 = vector.load %arg2[%c0_2, %c0_3, %c0_4, %c0_5] : memref<1x4x18x18xf32, #tpu.memory_space<vmem>>, vector<1x4x18x18xf32>
    %3 = vector.shape_cast %2 : vector<1x4x18x18xf32> to vector<4x18x18xf32>
    %4 = vector.extract_strided_slice %3 {offsets = [0, 0, 0], sizes = [4, 1, 18], strides = [1, 1, 1]} : vector<4x18x18xf32> to vector<4x1x18xf32>
    %5 = vector.shape_cast %4 : vector<4x1x18xf32> to vector<4x18xf32>
    %c0_6 = arith.constant 0 : index
    %c0_7 = arith.constant 0 : index
    %c21 = arith.constant 21 : index
    %6 = vector.load %arg6[%c0_6, %c0_7, %c21] : memref<1x8x420xf32, #tpu.memory_space<vmem>>, vector<1x4x18xf32>
    %7 = vector.shape_cast %6 : vector<1x4x18xf32> to vector<4x18xf32>
    %8 = vector.shape_cast %5 : vector<4x18xf32> to vector<1x4x18xf32>
    tpu.vector_store %arg6[%c0_6, %c0_7, %c21], %8 {strides = array<i32>} : memref<1x8x420xf32, #tpu.memory_space<vmem>>, vector<1x4x18xf32>,
    %9 = vector.extract_strided_slice %3 {offsets = [0, 1, 0], sizes = [4, 1, 18], strides = [1, 1, 1]} : vector<4x18x18xf32> to vector<4x1x18xf32>
    %10 = vector.shape_cast %9 : vector<4x1x18xf32> to vector<4x18xf32>
    %c0_8 = arith.constant 0 : index
    %c0_9 = arith.constant 0 : index
    %c41 = arith.constant 41 : index
    %11 = vector.load %arg6[%c0_8, %c0_9, %c41] : memref<1x8x420xf32, #tpu.memory_space<vmem>>, vector<1x4x18xf32>
    %12 = vector.shape_cast %11 : vector<1x4x18xf32> to vector<4x18xf32>
    %13 = vector.shape_cast %10 : vector<4x18xf32> to vector<1x4x18xf32>
    tpu.vector_store %arg6[%c0_8, %c0_9, %c41], %13 {strides = array<i32>} : memref<1x8x420xf32, #tpu.memory_space<vmem>>, vector<1x4x18xf32>,
    %14 = vector.extract_strided_slice %3 {offsets = [0, 2, 0], sizes = [4, 1, 18], strides = [1, 1, 1]} : vector<4x18x18xf32> to vector<4x1x18xf32>
    %15 = vector.shape_cast %14 : vector<4x1x18xf32> to vector<4x18xf32>
    %c0_10 = arith.constant 0 : index
    %c0_11 = arith.constant 0 : index
    %c61 = arith.constant 61 : index
    %16 = vector.load %arg6[%c0_10, %c0_11, %c61] : memref<1x8x420xf32, #tpu.memory_space<vmem>>, vector<1x4x18xf32>
    %17 = vector.shape_cast %16 : vector<1x4x18xf32> to vector<4x18xf32>
    %18 = vector.shape_cast %15 : vector<4x18xf32> to vector<1x4x18xf32>
    tpu.vector_store %arg6[%c0_10, %c0_11, %c61], %18 {strides = array<i32>} : memref<1x8x420xf32, #tpu.memory_space<vmem>>, vector<1x4x18xf32>,
    %19 = vector.extract_strided_slice %3 {offsets = [0, 3, 0], sizes = [4, 1, 18], strides = [1, 1, 1]} : vector<4x18x18xf32> to vector<4x1x18xf32>
    %20 = vector.shape_cast %19 : vector<4x1x18xf32> to vector<4x18xf32>
    %c0_12 = arith.constant 0 : index
    %c0_13 = arith.constant 0 : index
    %c81 = arith.constant 81 : index
    %21 = vector.load %arg6[%c0_12, %c0_13, %c81] : memref<1x8x420xf32, #tpu.memory_space<vmem>>, vector<1x4x18xf32>
    %22 = vector.shape_cast %21 : vector<1x4x18xf32> to vector<4x18xf32>
    %23 = vector.shape_cast %20 : vector<4x18xf32> to vector<1x4x18xf32>
    tpu.vector_store %arg6[%c0_12, %c0_13, %c81], %23 {strides = array<i32>} : memref<1x8x420xf32, #tpu.memory_space<vmem>>, vector<1x4x18xf32>,
    %24 = vector.extract_strided_slice %3 {offsets = [0, 4, 0], sizes = [4, 1, 18], strides = [1, 1, 1]} : vector<4x18x18xf32> to vector<4x1x18xf32>
    %25 = vector.shape_cast %24 : vector<4x1x18xf32> to vector<4x18xf32>
    %c0_14 = arith.constant 0 : index
    %c0_15 = arith.constant 0 : index
    %c101 = arith.constant 101 : index
    %26 = vector.load %arg6[%c0_14, %c0_15, %c101] : memref<1x8x420xf32, #tpu.memory_space<vmem>>, vector<1x4x18xf32>
    %27 = vector.shape_cast %26 : vector<1x4x18xf32> to vector<4x18xf32>
    %28 = vector.shape_cast %25 : vector<4x18xf32> to vector<1x4x18xf32>
    tpu.vector_store %arg6[%c0_14, %c0_15, %c101], %28 {strides = array<i32>} : memref<1x8x420xf32, #tpu.memory_space<vmem>>, vector<1x4x18xf32>,
    %29 = vector.extract_strided_slice %3 {offsets = [0, 5, 0], sizes = [4, 1, 18], strides = [1, 1, 1]} : vector<4x18x18xf32> to vector<4x1x18xf32>
    %30 = vector.shape_cast %29 : vector<4x1x18xf32> to vector<4x18xf32>
    %c0_16 = arith.constant 0 : index
    %c0_17 = arith.constant 0 : index
    %c121 = arith.constant 121 : index
    %31 = vector.load %arg6[%c0_16, %c0_17, %c121] : memref<1x8x420xf32, #tpu.memory_space<vmem>>, vector<1x4x18xf32>
    %32 = vector.shape_cast %31 : vector<1x4x18xf32> to vector<4x18xf32>
    %33 = vector.shape_cast %30 : vector<4x18xf32> to vector<1x4x18xf32>
    tpu.vector_store %arg6[%c0_16, %c0_17, %c121], %33 {strides = array<i32>} : memref<1x8x420xf32, #tpu.memory_space<vmem>>, vector<1x4x18xf32>,
    %34 = vector.extract_strided_slice %3 {offsets = [0, 6, 0], sizes = [4, 1, 18], strides = [1, 1, 1]} : vector<4x18x18xf32> to vector<4x1x18xf32>
    %35 = vector.shape_cast %34 : vector<4x1x18xf32> to vector<4x18xf32>
    %c0_18 = arith.constant 0 : index
    %c0_19 = arith.constant 0 : index
    %c141 = arith.constant 141 : index
    %36 = vector.load %arg6[%c0_18, %c0_19, %c141] : memref<1x8x420xf32, #tpu.memory_space<vmem>>, vector<1x4x18xf32>
    %37 = vector.shape_cast %36 : vector<1x4x18xf32> to vector<4x18xf32>
    %38 = vector.shape_cast %35 : vector<4x18xf32> to vector<1x4x18xf32>
    tpu.vector_store %arg6[%c0_18, %c0_19, %c141], %38 {strides = array<i32>} : memref<1x8x420xf32, #tpu.memory_space<vmem>>, vector<1x4x18xf32>,
    %39 = vector.extract_strided_slice %3 {offsets = [0, 7, 0], sizes = [4, 1, 18], strides = [1, 1, 1]} : vector<4x18x18xf32> to vector<4x1x18xf32>
    %40 = vector.shape_cast %39 : vector<4x1x18xf32> to vector<4x18xf32>
    %c0_20 = arith.constant 0 : index
    %c0_21 = arith.constant 0 : index
    %c161 = arith.constant 161 : index
    %41 = vector.load %arg6[%c0_20, %c0_21, %c161] : memref<1x8x420xf32, #tpu.memory_space<vmem>>, vector<1x4x18xf32>
    %42 = vector.shape_cast %41 : vector<1x4x18xf32> to vector<4x18xf32>
    %43 = vector.shape_cast %40 : vector<4x18xf32> to vector<1x4x18xf32>
    tpu.vector_store %arg6[%c0_20, %c0_21, %c161], %43 {strides = array<i32>} : memref<1x8x420xf32, #tpu.memory_space<vmem>>, vector<1x4x18xf32>,
    %44 = vector.extract_strided_slice %3 {offsets = [0, 8, 0], sizes = [4, 1, 18], strides = [1, 1, 1]} : vector<4x18x18xf32> to vector<4x1x18xf32>
    %45 = vector.shape_cast %44 : vector<4x1x18xf32> to vector<4x18xf32>
    %c0_22 = arith.constant 0 : index
    %c0_23 = arith.constant 0 : index
    %c181 = arith.constant 181 : index
    %46 = vector.load %arg6[%c0_22, %c0_23, %c181] : memref<1x8x420xf32, #tpu.memory_space<vmem>>, vector<1x4x18xf32>
    %47 = vector.shape_cast %46 : vector<1x4x18xf32> to vector<4x18xf32>
    %48 = vector.shape_cast %45 : vector<4x18xf32> to vector<1x4x18xf32>
    tpu.vector_store %arg6[%c0_22, %c0_23, %c181], %48 {strides = array<i32>} : memref<1x8x420xf32, #tpu.memory_space<vmem>>, vector<1x4x18xf32>,
    %49 = vector.extract_strided_slice %3 {offsets = [0, 9, 0], sizes = [4, 1, 18], strides = [1, 1, 1]} : vector<4x18x18xf32> to vector<4x1x18xf32>
    %50 = vector.shape_cast %49 : vector<4x1x18xf32> to vector<4x18xf32>
    %c0_24 = arith.constant 0 : index
    %c0_25 = arith.constant 0 : index
    %c201 = arith.constant 201 : index
    %51 = vector.load %arg6[%c0_24, %c0_25, %c201] : memref<1x8x420xf32, #tpu.memory_space<vmem>>, vector<1x4x18xf32>
    %52 = vector.shape_cast %51 : vector<1x4x18xf32> to vector<4x18xf32>
    %53 = vector.shape_cast %50 : vector<4x18xf32> to vector<1x4x18xf32>
    tpu.vector_store %arg6[%c0_24, %c0_25, %c201], %53 {strides = array<i32>} : memref<1x8x420xf32, #tpu.memory_space<vmem>>, vector<1x4x18xf32>,
    %54 = vector.extract_strided_slice %3 {offsets = [0, 10, 0], sizes = [4, 1, 18], strides = [1, 1, 1]} : vector<4x18x18xf32> to vector<4x1x18xf32>
    %55 = vector.shape_cast %54 : vector<4x1x18xf32> to vector<4x18xf32>
    %c0_26 = arith.constant 0 : index
    %c0_27 = arith.constant 0 : index
    %c221 = arith.constant 221 : index
    %56 = vector.load %arg6[%c0_26, %c0_27, %c221] : memref<1x8x420xf32, #tpu.memory_space<vmem>>, vector<1x4x18xf32>
    %57 = vector.shape_cast %56 : vector<1x4x18xf32> to vector<4x18xf32>
    %58 = vector.shape_cast %55 : vector<4x18xf32> to vector<1x4x18xf32>
    tpu.vector_store %arg6[%c0_26, %c0_27, %c221], %58 {strides = array<i32>} : memref<1x8x420xf32, #tpu.memory_space<vmem>>, vector<1x4x18xf32>,
    %59 = vector.extract_strided_slice %3 {offsets = [0, 11, 0], sizes = [4, 1, 18], strides = [1, 1, 1]} : vector<4x18x18xf32> to vector<4x1x18xf32>
    %60 = vector.shape_cast %59 : vector<4x1x18xf32> to vector<4x18xf32>
    %c0_28 = arith.constant 0 : index
    %c0_29 = arith.constant 0 : index
    %c241 = arith.constant 241 : index
    %61 = vector.load %arg6[%c0_28, %c0_29, %c241] : memref<1x8x420xf32, #tpu.memory_space<vmem>>, vector<1x4x18xf32>
    %62 = vector.shape_cast %61 : vector<1x4x18xf32> to vector<4x18xf32>
    %63 = vector.shape_cast %60 : vector<4x18xf32> to vector<1x4x18xf32>
    tpu.vector_store %arg6[%c0_28, %c0_29, %c241], %63 {strides = array<i32>} : memref<1x8x420xf32, #tpu.memory_space<vmem>>, vector<1x4x18xf32>,
    %64 = vector.extract_strided_slice %3 {offsets = [0, 12, 0], sizes = [4, 1, 18], strides = [1, 1, 1]} : vector<4x18x18xf32> to vector<4x1x18xf32>
    %65 = vector.shape_cast %64 : vector<4x1x18xf32> to vector<4x18xf32>
    %c0_30 = arith.constant 0 : index
    %c0_31 = arith.constant 0 : index
    %c261 = arith.constant 261 : index
    %66 = vector.load %arg6[%c0_30, %c0_31, %c261] : memref<1x8x420xf32, #tpu.memory_space<vmem>>, vector<1x4x18xf32>
    %67 = vector.shape_cast %66 : vector<1x4x18xf32> to vector<4x18xf32>
    %68 = vector.shape_cast %65 : vector<4x18xf32> to vector<1x4x18xf32>
    tpu.vector_store %arg6[%c0_30, %c0_31, %c261], %68 {strides = array<i32>} : memref<1x8x420xf32, #tpu.memory_space<vmem>>, vector<1x4x18xf32>,
    %69 = vector.extract_strided_slice %3 {offsets = [0, 13, 0], sizes = [4, 1, 18], strides = [1, 1, 1]} : vector<4x18x18xf32> to vector<4x1x18xf32>
    %70 = vector.shape_cast %69 : vector<4x1x18xf32> to vector<4x18xf32>
    %c0_32 = arith.constant 0 : index
    %c0_33 = arith.constant 0 : index
    %c281 = arith.constant 281 : index
    %71 = vector.load %arg6[%c0_32, %c0_33, %c281] : memref<1x8x420xf32, #tpu.memory_space<vmem>>, vector<1x4x18xf32>
    %72 = vector.shape_cast %71 : vector<1x4x18xf32> to vector<4x18xf32>
    %73 = vector.shape_cast %70 : vector<4x18xf32> to vector<1x4x18xf32>
    tpu.vector_store %arg6[%c0_32, %c0_33, %c281], %73 {strides = array<i32>} : memref<1x8x420xf32, #tpu.memory_space<vmem>>, vector<1x4x18xf32>,
    %74 = vector.extract_strided_slice %3 {offsets = [0, 14, 0], sizes = [4, 1, 18], strides = [1, 1, 1]} : vector<4x18x18xf32> to vector<4x1x18xf32>
    %75 = vector.shape_cast %74 : vector<4x1x18xf32> to vector<4x18xf32>
    %c0_34 = arith.constant 0 : index
    %c0_35 = arith.constant 0 : index
    %c301 = arith.constant 301 : index
    %76 = vector.load %arg6[%c0_34, %c0_35, %c301] : memref<1x8x420xf32, #tpu.memory_space<vmem>>, vector<1x4x18xf32>
    %77 = vector.shape_cast %76 : vector<1x4x18xf32> to vector<4x18xf32>
    %78 = vector.shape_cast %75 : vector<4x18xf32> to vector<1x4x18xf32>
    tpu.vector_store %arg6[%c0_34, %c0_35, %c301], %78 {strides = array<i32>} : memref<1x8x420xf32, #tpu.memory_space<vmem>>, vector<1x4x18xf32>,
    %79 = vector.extract_strided_slice %3 {offsets = [0, 15, 0], sizes = [4, 1, 18], strides = [1, 1, 1]} : vector<4x18x18xf32> to vector<4x1x18xf32>
    %80 = vector.shape_cast %79 : vector<4x1x18xf32> to vector<4x18xf32>
    %c0_36 = arith.constant 0 : index
    %c0_37 = arith.constant 0 : index
    %c321 = arith.constant 321 : index
    %81 = vector.load %arg6[%c0_36, %c0_37, %c321] : memref<1x8x420xf32, #tpu.memory_space<vmem>>, vector<1x4x18xf32>
    %82 = vector.shape_cast %81 : vector<1x4x18xf32> to vector<4x18xf32>
    %83 = vector.shape_cast %80 : vector<4x18xf32> to vector<1x4x18xf32>
    tpu.vector_store %arg6[%c0_36, %c0_37, %c321], %83 {strides = array<i32>} : memref<1x8x420xf32, #tpu.memory_space<vmem>>, vector<1x4x18xf32>,
    %84 = vector.extract_strided_slice %3 {offsets = [0, 16, 0], sizes = [4, 1, 18], strides = [1, 1, 1]} : vector<4x18x18xf32> to vector<4x1x18xf32>
    %85 = vector.shape_cast %84 : vector<4x1x18xf32> to vector<4x18xf32>
    %c0_38 = arith.constant 0 : index
    %c0_39 = arith.constant 0 : index
    %c341 = arith.constant 341 : index
    %86 = vector.load %arg6[%c0_38, %c0_39, %c341] : memref<1x8x420xf32, #tpu.memory_space<vmem>>, vector<1x4x18xf32>
    %87 = vector.shape_cast %86 : vector<1x4x18xf32> to vector<4x18xf32>
    %88 = vector.shape_cast %85 : vector<4x18xf32> to vector<1x4x18xf32>
    tpu.vector_store %arg6[%c0_38, %c0_39, %c341], %88 {strides = array<i32>} : memref<1x8x420xf32, #tpu.memory_space<vmem>>, vector<1x4x18xf32>,
    %89 = vector.extract_strided_slice %3 {offsets = [0, 17, 0], sizes = [4, 1, 18], strides = [1, 1, 1]} : vector<4x18x18xf32> to vector<4x1x18xf32>
    %90 = vector.shape_cast %89 : vector<4x1x18xf32> to vector<4x18xf32>
    %c0_40 = arith.constant 0 : index
    %c0_41 = arith.constant 0 : index
    %c361 = arith.constant 361 : index
    %91 = vector.load %arg6[%c0_40, %c0_41, %c361] : memref<1x8x420xf32, #tpu.memory_space<vmem>>, vector<1x4x18xf32>
    %92 = vector.shape_cast %91 : vector<1x4x18xf32> to vector<4x18xf32>
    %93 = vector.shape_cast %90 : vector<4x18xf32> to vector<1x4x18xf32>
    tpu.vector_store %arg6[%c0_40, %c0_41, %c361], %93 {strides = array<i32>} : memref<1x8x420xf32, #tpu.memory_space<vmem>>, vector<1x4x18xf32>,
    %c0_42 = arith.constant 0 : index
    %c0_43 = arith.constant 0 : index
    %c0_44 = arith.constant 0 : index
    %94 = vector.load %arg1[%c0_42, %c0_43, %c0_44] : memref<1x8x64xf32, #tpu.memory_space<vmem>>, vector<1x8x64xf32>
    %95 = vector.shape_cast %94 : vector<1x8x64xf32> to vector<8x64xf32>
    %c0_45 = arith.constant 0 : index
    %c0_46 = arith.constant 0 : index
    %96 = vector.load %arg4[%c0_45, %c0_46] : memref<4x1xf32, #tpu.memory_space<vmem>>, vector<4x1xf32>
    %c0_47 = arith.constant 0 : index
    %c0_48 = arith.constant 0 : index
    %c0_49 = arith.constant 0 : index
    %c0_50 = arith.constant 0 : index
    %97 = vector.load %arg3[%c0_47, %c0_48, %c0_49, %c0_50] : memref<2x2x4x8xf32, #tpu.memory_space<vmem>>, vector<1x1x4x8xf32>
    %98 = vector.shape_cast %97 : vector<1x1x4x8xf32> to vector<4x8xf32>
    %cst_51 = arith.constant dense<0.000000e+00> : vector<4x64xf32>
    %99 = tpu.matmul %98, %95, %cst_51 {dimension_numbers = #tpu.dot_dimension_numbers<[1], [0], [0], [1], [0, 0, 1, 1], [], []>} : vector<4x8xf32>, vector<8x64xf32>, vector<4x64xf32> -> vector<4x64xf32>
    %100 = vector.broadcast %96 : vector<4x1xf32> to vector<4x64xf32>
    %101 = arith.addf %99, %100 : vector<4x64xf32>
    %c0_52 = arith.constant 0 : index
    %c1 = arith.constant 1 : index
    %c0_53 = arith.constant 0 : index
    %c0_54 = arith.constant 0 : index
    %102 = vector.load %arg3[%c0_52, %c1, %c0_53, %c0_54] : memref<2x2x4x8xf32, #tpu.memory_space<vmem>>, vector<1x1x4x8xf32>
    %103 = vector.shape_cast %102 : vector<1x1x4x8xf32> to vector<4x8xf32>
    %cst_55 = arith.constant dense<0.000000e+00> : vector<4x64xf32>
    %104 = tpu.matmul %103, %95, %cst_55 {dimension_numbers = #tpu.dot_dimension_numbers<[1], [0], [0], [1], [0, 0, 1, 1], [], []>} : vector<4x8xf32>, vector<8x64xf32>, vector<4x64xf32> -> vector<4x64xf32>
    %105 = vector.broadcast %96 : vector<4x1xf32> to vector<4x64xf32>
    %106 = arith.addf %104, %105 : vector<4x64xf32>
    %c1_56 = arith.constant 1 : index
    %c0_57 = arith.constant 0 : index
    %c0_58 = arith.constant 0 : index
    %c0_59 = arith.constant 0 : index
    %107 = vector.load %arg3[%c1_56, %c0_57, %c0_58, %c0_59] : memref<2x2x4x8xf32, #tpu.memory_space<vmem>>, vector<1x1x4x8xf32>
    %108 = vector.shape_cast %107 : vector<1x1x4x8xf32> to vector<4x8xf32>
    %cst_60 = arith.constant dense<0.000000e+00> : vector<4x64xf32>
    %109 = tpu.matmul %108, %95, %cst_60 {dimension_numbers = #tpu.dot_dimension_numbers<[1], [0], [0], [1], [0, 0, 1, 1], [], []>} : vector<4x8xf32>, vector<8x64xf32>, vector<4x64xf32> -> vector<4x64xf32>
    %110 = vector.broadcast %96 : vector<4x1xf32> to vector<4x64xf32>
    %111 = arith.addf %109, %110 : vector<4x64xf32>
    %c1_61 = arith.constant 1 : index
    %c1_62 = arith.constant 1 : index
    %c0_63 = arith.constant 0 : index
    %c0_64 = arith.constant 0 : index
    %112 = vector.load %arg3[%c1_61, %c1_62, %c0_63, %c0_64] : memref<2x2x4x8xf32, #tpu.memory_space<vmem>>, vector<1x1x4x8xf32>
    %113 = vector.shape_cast %112 : vector<1x1x4x8xf32> to vector<4x8xf32>
    %cst_65 = arith.constant dense<0.000000e+00> : vector<4x64xf32>
    %114 = tpu.matmul %113, %95, %cst_65 {dimension_numbers = #tpu.dot_dimension_numbers<[1], [0], [0], [1], [0, 0, 1, 1], [], []>} : vector<4x8xf32>, vector<8x64xf32>, vector<4x64xf32> -> vector<4x64xf32>
    %115 = vector.broadcast %96 : vector<4x1xf32> to vector<4x64xf32>
    %116 = arith.addf %114, %115 : vector<4x64xf32>
    %c0_66 = arith.constant 0 : index
    %c0_67 = arith.constant 0 : index
    %c0_68 = arith.constant 0 : index
    %117 = vector.load %arg5[%c0_66, %c0_67, %c0_68] : memref<2x8x16xf32, #tpu.memory_space<vmem>>, vector<1x8x16xf32>
    %118 = vector.shape_cast %117 : vector<1x8x16xf32> to vector<8x16xf32>
    %c1_69 = arith.constant 1 : index
    %c0_70 = arith.constant 0 : index
    %c0_71 = arith.constant 0 : index
    %119 = vector.load %arg5[%c1_69, %c0_70, %c0_71] : memref<2x8x16xf32, #tpu.memory_space<vmem>>, vector<1x8x16xf32>
    %120 = vector.shape_cast %119 : vector<1x8x16xf32> to vector<8x16xf32>
    %121 = vector.extract_strided_slice %101 {offsets = [0, 0], sizes = [4, 8], strides = [1, 1]} : vector<4x64xf32> to vector<4x8xf32>
    %122 = vector.extract_strided_slice %106 {offsets = [0, 0], sizes = [4, 8], strides = [1, 1]} : vector<4x64xf32> to vector<4x8xf32>
    %cst_72 = arith.constant dense<0.000000e+00> : vector<4x16xf32>
    %123 = tpu.matmul %121, %118, %cst_72 {dimension_numbers = #tpu.dot_dimension_numbers<[1], [0], [0], [1], [0, 0, 1, 1], [], []>} : vector<4x8xf32>, vector<8x16xf32>, vector<4x16xf32> -> vector<4x16xf32>
    %cst_73 = arith.constant dense<0.000000e+00> : vector<4x16xf32>
    %124 = tpu.matmul %122, %120, %cst_73 {dimension_numbers = #tpu.dot_dimension_numbers<[1], [0], [0], [1], [0, 0, 1, 1], [], []>} : vector<4x8xf32>, vector<8x16xf32>, vector<4x16xf32> -> vector<4x16xf32>
    %125 = arith.addf %123, %124 : vector<4x16xf32>
    %c0_74 = arith.constant 0 : index
    %c4 = arith.constant 4 : index
    %c42 = arith.constant 42 : index
    %126 = vector.load %arg6[%c0_74, %c4, %c42] : memref<1x8x420xf32, #tpu.memory_space<vmem>>, vector<1x4x16xf32>
    %127 = vector.shape_cast %126 : vector<1x4x16xf32> to vector<4x16xf32>
    %128 = vector.shape_cast %125 : vector<4x16xf32> to vector<1x4x16xf32>
    tpu.vector_store %arg6[%c0_74, %c4, %c42], %128 {strides = array<i32>} : memref<1x8x420xf32, #tpu.memory_space<vmem>>, vector<1x4x16xf32>,
    %129 = vector.extract_strided_slice %111 {offsets = [0, 0], sizes = [4, 8], strides = [1, 1]} : vector<4x64xf32> to vector<4x8xf32>
    %130 = vector.extract_strided_slice %116 {offsets = [0, 0], sizes = [4, 8], strides = [1, 1]} : vector<4x64xf32> to vector<4x8xf32>
    %cst_75 = arith.constant dense<0.000000e+00> : vector<4x16xf32>
    %131 = tpu.matmul %129, %118, %cst_75 {dimension_numbers = #tpu.dot_dimension_numbers<[1], [0], [0], [1], [0, 0, 1, 1], [], []>} : vector<4x8xf32>, vector<8x16xf32>, vector<4x16xf32> -> vector<4x16xf32>
    %cst_76 = arith.constant dense<0.000000e+00> : vector<4x16xf32>
    %132 = tpu.matmul %130, %120, %cst_76 {dimension_numbers = #tpu.dot_dimension_numbers<[1], [0], [0], [1], [0, 0, 1, 1], [], []>} : vector<4x8xf32>, vector<8x16xf32>, vector<4x16xf32> -> vector<4x16xf32>
    %133 = arith.addf %131, %132 : vector<4x16xf32>
    %c0_77 = arith.constant 0 : index
    %c4_78 = arith.constant 4 : index
    %c62 = arith.constant 62 : index
    %134 = vector.load %arg6[%c0_77, %c4_78, %c62] : memref<1x8x420xf32, #tpu.memory_space<vmem>>, vector<1x4x16xf32>
    %135 = vector.shape_cast %134 : vector<1x4x16xf32> to vector<4x16xf32>
    %136 = vector.shape_cast %133 : vector<4x16xf32> to vector<1x4x16xf32>
    tpu.vector_store %arg6[%c0_77, %c4_78, %c62], %136 {strides = array<i32>} : memref<1x8x420xf32, #tpu.memory_space<vmem>>, vector<1x4x16xf32>,
    %137 = vector.extract_strided_slice %101 {offsets = [0, 8], sizes = [4, 8], strides = [1, 1]} : vector<4x64xf32> to vector<4x8xf32>
    %138 = vector.extract_strided_slice %106 {offsets = [0, 8], sizes = [4, 8], strides = [1, 1]} : vector<4x64xf32> to vector<4x8xf32>
    %cst_79 = arith.constant dense<0.000000e+00> : vector<4x16xf32>
    %139 = tpu.matmul %137, %118, %cst_79 {dimension_numbers = #tpu.dot_dimension_numbers<[1], [0], [0], [1], [0, 0, 1, 1], [], []>} : vector<4x8xf32>, vector<8x16xf32>, vector<4x16xf32> -> vector<4x16xf32>
    %cst_80 = arith.constant dense<0.000000e+00> : vector<4x16xf32>
    %140 = tpu.matmul %138, %120, %cst_80 {dimension_numbers = #tpu.dot_dimension_numbers<[1], [0], [0], [1], [0, 0, 1, 1], [], []>} : vector<4x8xf32>, vector<8x16xf32>, vector<4x16xf32> -> vector<4x16xf32>
    %141 = arith.addf %139, %140 : vector<4x16xf32>
    %c0_81 = arith.constant 0 : index
    %c4_82 = arith.constant 4 : index
    %c82 = arith.constant 82 : index
    %142 = vector.load %arg6[%c0_81, %c4_82, %c82] : memref<1x8x420xf32, #tpu.memory_space<vmem>>, vector<1x4x16xf32>
    %143 = vector.shape_cast %142 : vector<1x4x16xf32> to vector<4x16xf32>
    %144 = vector.shape_cast %141 : vector<4x16xf32> to vector<1x4x16xf32>
    tpu.vector_store %arg6[%c0_81, %c4_82, %c82], %144 {strides = array<i32>} : memref<1x8x420xf32, #tpu.memory_space<vmem>>, vector<1x4x16xf32>,
    %145 = vector.extract_strided_slice %111 {offsets = [0, 8], sizes = [4, 8], strides = [1, 1]} : vector<4x64xf32> to vector<4x8xf32>
    %146 = vector.extract_strided_slice %116 {offsets = [0, 8], sizes = [4, 8], strides = [1, 1]} : vector<4x64xf32> to vector<4x8xf32>
    %cst_83 = arith.constant dense<0.000000e+00> : vector<4x16xf32>
    %147 = tpu.matmul %145, %118, %cst_83 {dimension_numbers = #tpu.dot_dimension_numbers<[1], [0], [0], [1], [0, 0, 1, 1], [], []>} : vector<4x8xf32>, vector<8x16xf32>, vector<4x16xf32> -> vector<4x16xf32>
    %cst_84 = arith.constant dense<0.000000e+00> : vector<4x16xf32>
    %148 = tpu.matmul %146, %120, %cst_84 {dimension_numbers = #tpu.dot_dimension_numbers<[1], [0], [0], [1], [0, 0, 1, 1], [], []>} : vector<4x8xf32>, vector<8x16xf32>, vector<4x16xf32> -> vector<4x16xf32>
    %149 = arith.addf %147, %148 : vector<4x16xf32>
    %c0_85 = arith.constant 0 : index
    %c4_86 = arith.constant 4 : index
    %c102 = arith.constant 102 : index
    %150 = vector.load %arg6[%c0_85, %c4_86, %c102] : memref<1x8x420xf32, #tpu.memory_space<vmem>>, vector<1x4x16xf32>
    %151 = vector.shape_cast %150 : vector<1x4x16xf32> to vector<4x16xf32>
    %152 = vector.shape_cast %149 : vector<4x16xf32> to vector<1x4x16xf32>
    tpu.vector_store %arg6[%c0_85, %c4_86, %c102], %152 {strides = array<i32>} : memref<1x8x420xf32, #tpu.memory_space<vmem>>, vector<1x4x16xf32>,
    %153 = vector.extract_strided_slice %101 {offsets = [0, 16], sizes = [4, 8], strides = [1, 1]} : vector<4x64xf32> to vector<4x8xf32>
    %154 = vector.extract_strided_slice %106 {offsets = [0, 16], sizes = [4, 8], strides = [1, 1]} : vector<4x64xf32> to vector<4x8xf32>
    %cst_87 = arith.constant dense<0.000000e+00> : vector<4x16xf32>
    %155 = tpu.matmul %153, %118, %cst_87 {dimension_numbers = #tpu.dot_dimension_numbers<[1], [0], [0], [1], [0, 0, 1, 1], [], []>} : vector<4x8xf32>, vector<8x16xf32>, vector<4x16xf32> -> vector<4x16xf32>
    %cst_88 = arith.constant dense<0.000000e+00> : vector<4x16xf32>
    %156 = tpu.matmul %154, %120, %cst_88 {dimension_numbers = #tpu.dot_dimension_numbers<[1], [0], [0], [1], [0, 0, 1, 1], [], []>} : vector<4x8xf32>, vector<8x16xf32>, vector<4x16xf32> -> vector<4x16xf32>
    %157 = arith.addf %155, %156 : vector<4x16xf32>
    %c0_89 = arith.constant 0 : index
    %c4_90 = arith.constant 4 : index
    %c122 = arith.constant 122 : index
    %158 = vector.load %arg6[%c0_89, %c4_90, %c122] : memref<1x8x420xf32, #tpu.memory_space<vmem>>, vector<1x4x16xf32>
    %159 = vector.shape_cast %158 : vector<1x4x16xf32> to vector<4x16xf32>
    %160 = vector.shape_cast %157 : vector<4x16xf32> to vector<1x4x16xf32>
    tpu.vector_store %arg6[%c0_89, %c4_90, %c122], %160 {strides = array<i32>} : memref<1x8x420xf32, #tpu.memory_space<vmem>>, vector<1x4x16xf32>,
    %161 = vector.extract_strided_slice %111 {offsets = [0, 16], sizes = [4, 8], strides = [1, 1]} : vector<4x64xf32> to vector<4x8xf32>
    %162 = vector.extract_strided_slice %116 {offsets = [0, 16], sizes = [4, 8], strides = [1, 1]} : vector<4x64xf32> to vector<4x8xf32>
    %cst_91 = arith.constant dense<0.000000e+00> : vector<4x16xf32>
    %163 = tpu.matmul %161, %118, %cst_91 {dimension_numbers = #tpu.dot_dimension_numbers<[1], [0], [0], [1], [0, 0, 1, 1], [], []>} : vector<4x8xf32>, vector<8x16xf32>, vector<4x16xf32> -> vector<4x16xf32>
    %cst_92 = arith.constant dense<0.000000e+00> : vector<4x16xf32>
    %164 = tpu.matmul %162, %120, %cst_92 {dimension_numbers = #tpu.dot_dimension_numbers<[1], [0], [0], [1], [0, 0, 1, 1], [], []>} : vector<4x8xf32>, vector<8x16xf32>, vector<4x16xf32> -> vector<4x16xf32>
    %165 = arith.addf %163, %164 : vector<4x16xf32>
    %c0_93 = arith.constant 0 : index
    %c4_94 = arith.constant 4 : index
    %c142 = arith.constant 142 : index
    %166 = vector.load %arg6[%c0_93, %c4_94, %c142] : memref<1x8x420xf32, #tpu.memory_space<vmem>>, vector<1x4x16xf32>
    %167 = vector.shape_cast %166 : vector<1x4x16xf32> to vector<4x16xf32>
    %168 = vector.shape_cast %165 : vector<4x16xf32> to vector<1x4x16xf32>
    tpu.vector_store %arg6[%c0_93, %c4_94, %c142], %168 {strides = array<i32>} : memref<1x8x420xf32, #tpu.memory_space<vmem>>, vector<1x4x16xf32>,
    %169 = vector.extract_strided_slice %101 {offsets = [0, 24], sizes = [4, 8], strides = [1, 1]} : vector<4x64xf32> to vector<4x8xf32>
    %170 = vector.extract_strided_slice %106 {offsets = [0, 24], sizes = [4, 8], strides = [1, 1]} : vector<4x64xf32> to vector<4x8xf32>
    %cst_95 = arith.constant dense<0.000000e+00> : vector<4x16xf32>
    %171 = tpu.matmul %169, %118, %cst_95 {dimension_numbers = #tpu.dot_dimension_numbers<[1], [0], [0], [1], [0, 0, 1, 1], [], []>} : vector<4x8xf32>, vector<8x16xf32>, vector<4x16xf32> -> vector<4x16xf32>
    %cst_96 = arith.constant dense<0.000000e+00> : vector<4x16xf32>
    %172 = tpu.matmul %170, %120, %cst_96 {dimension_numbers = #tpu.dot_dimension_numbers<[1], [0], [0], [1], [0, 0, 1, 1], [], []>} : vector<4x8xf32>, vector<8x16xf32>, vector<4x16xf32> -> vector<4x16xf32>
    %173 = arith.addf %171, %172 : vector<4x16xf32>
    %c0_97 = arith.constant 0 : index
    %c4_98 = arith.constant 4 : index
    %c162 = arith.constant 162 : index
    %174 = vector.load %arg6[%c0_97, %c4_98, %c162] : memref<1x8x420xf32, #tpu.memory_space<vmem>>, vector<1x4x16xf32>
    %175 = vector.shape_cast %174 : vector<1x4x16xf32> to vector<4x16xf32>
    %176 = vector.shape_cast %173 : vector<4x16xf32> to vector<1x4x16xf32>
    tpu.vector_store %arg6[%c0_97, %c4_98, %c162], %176 {strides = array<i32>} : memref<1x8x420xf32, #tpu.memory_space<vmem>>, vector<1x4x16xf32>,
    %177 = vector.extract_strided_slice %111 {offsets = [0, 24], sizes = [4, 8], strides = [1, 1]} : vector<4x64xf32> to vector<4x8xf32>
    %178 = vector.extract_strided_slice %116 {offsets = [0, 24], sizes = [4, 8], strides = [1, 1]} : vector<4x64xf32> to vector<4x8xf32>
    %cst_99 = arith.constant dense<0.000000e+00> : vector<4x16xf32>
    %179 = tpu.matmul %177, %118, %cst_99 {dimension_numbers = #tpu.dot_dimension_numbers<[1], [0], [0], [1], [0, 0, 1, 1], [], []>} : vector<4x8xf32>, vector<8x16xf32>, vector<4x16xf32> -> vector<4x16xf32>
    %cst_100 = arith.constant dense<0.000000e+00> : vector<4x16xf32>
    %180 = tpu.matmul %178, %120, %cst_100 {dimension_numbers = #tpu.dot_dimension_numbers<[1], [0], [0], [1], [0, 0, 1, 1], [], []>} : vector<4x8xf32>, vector<8x16xf32>, vector<4x16xf32> -> vector<4x16xf32>
    %181 = arith.addf %179, %180 : vector<4x16xf32>
    %c0_101 = arith.constant 0 : index
    %c4_102 = arith.constant 4 : index
    %c182 = arith.constant 182 : index
    %182 = vector.load %arg6[%c0_101, %c4_102, %c182] : memref<1x8x420xf32, #tpu.memory_space<vmem>>, vector<1x4x16xf32>
    %183 = vector.shape_cast %182 : vector<1x4x16xf32> to vector<4x16xf32>
    %184 = vector.shape_cast %181 : vector<4x16xf32> to vector<1x4x16xf32>
    tpu.vector_store %arg6[%c0_101, %c4_102, %c182], %184 {strides = array<i32>} : memref<1x8x420xf32, #tpu.memory_space<vmem>>, vector<1x4x16xf32>,
    %185 = vector.extract_strided_slice %101 {offsets = [0, 32], sizes = [4, 8], strides = [1, 1]} : vector<4x64xf32> to vector<4x8xf32>
    %186 = vector.extract_strided_slice %106 {offsets = [0, 32], sizes = [4, 8], strides = [1, 1]} : vector<4x64xf32> to vector<4x8xf32>
    %cst_103 = arith.constant dense<0.000000e+00> : vector<4x16xf32>
    %187 = tpu.matmul %185, %118, %cst_103 {dimension_numbers = #tpu.dot_dimension_numbers<[1], [0], [0], [1], [0, 0, 1, 1], [], []>} : vector<4x8xf32>, vector<8x16xf32>, vector<4x16xf32> -> vector<4x16xf32>
    %cst_104 = arith.constant dense<0.000000e+00> : vector<4x16xf32>
    %188 = tpu.matmul %186, %120, %cst_104 {dimension_numbers = #tpu.dot_dimension_numbers<[1], [0], [0], [1], [0, 0, 1, 1], [], []>} : vector<4x8xf32>, vector<8x16xf32>, vector<4x16xf32> -> vector<4x16xf32>
    %189 = arith.addf %187, %188 : vector<4x16xf32>
    %c0_105 = arith.constant 0 : index
    %c4_106 = arith.constant 4 : index
    %c202 = arith.constant 202 : index
    %190 = vector.load %arg6[%c0_105, %c4_106, %c202] : memref<1x8x420xf32, #tpu.memory_space<vmem>>, vector<1x4x16xf32>
    %191 = vector.shape_cast %190 : vector<1x4x16xf32> to vector<4x16xf32>
    %192 = vector.shape_cast %189 : vector<4x16xf32> to vector<1x4x16xf32>
    tpu.vector_store %arg6[%c0_105, %c4_106, %c202], %192 {strides = array<i32>} : memref<1x8x420xf32, #tpu.memory_space<vmem>>, vector<1x4x16xf32>,
    %193 = vector.extract_strided_slice %111 {offsets = [0, 32], sizes = [4, 8], strides = [1, 1]} : vector<4x64xf32> to vector<4x8xf32>
    %194 = vector.extract_strided_slice %116 {offsets = [0, 32], sizes = [4, 8], strides = [1, 1]} : vector<4x64xf32> to vector<4x8xf32>
    %cst_107 = arith.constant dense<0.000000e+00> : vector<4x16xf32>
    %195 = tpu.matmul %193, %118, %cst_107 {dimension_numbers = #tpu.dot_dimension_numbers<[1], [0], [0], [1], [0, 0, 1, 1], [], []>} : vector<4x8xf32>, vector<8x16xf32>, vector<4x16xf32> -> vector<4x16xf32>
    %cst_108 = arith.constant dense<0.000000e+00> : vector<4x16xf32>
    %196 = tpu.matmul %194, %120, %cst_108 {dimension_numbers = #tpu.dot_dimension_numbers<[1], [0], [0], [1], [0, 0, 1, 1], [], []>} : vector<4x8xf32>, vector<8x16xf32>, vector<4x16xf32> -> vector<4x16xf32>
    %197 = arith.addf %195, %196 : vector<4x16xf32>
    %c0_109 = arith.constant 0 : index
    %c4_110 = arith.constant 4 : index
    %c222 = arith.constant 222 : index
    %198 = vector.load %arg6[%c0_109, %c4_110, %c222] : memref<1x8x420xf32, #tpu.memory_space<vmem>>, vector<1x4x16xf32>
    %199 = vector.shape_cast %198 : vector<1x4x16xf32> to vector<4x16xf32>
    %200 = vector.shape_cast %197 : vector<4x16xf32> to vector<1x4x16xf32>
    tpu.vector_store %arg6[%c0_109, %c4_110, %c222], %200 {strides = array<i32>} : memref<1x8x420xf32, #tpu.memory_space<vmem>>, vector<1x4x16xf32>,
    %201 = vector.extract_strided_slice %101 {offsets = [0, 40], sizes = [4, 8], strides = [1, 1]} : vector<4x64xf32> to vector<4x8xf32>
    %202 = vector.extract_strided_slice %106 {offsets = [0, 40], sizes = [4, 8], strides = [1, 1]} : vector<4x64xf32> to vector<4x8xf32>
    %cst_111 = arith.constant dense<0.000000e+00> : vector<4x16xf32>
    %203 = tpu.matmul %201, %118, %cst_111 {dimension_numbers = #tpu.dot_dimension_numbers<[1], [0], [0], [1], [0, 0, 1, 1], [], []>} : vector<4x8xf32>, vector<8x16xf32>, vector<4x16xf32> -> vector<4x16xf32>
    %cst_112 = arith.constant dense<0.000000e+00> : vector<4x16xf32>
    %204 = tpu.matmul %202, %120, %cst_112 {dimension_numbers = #tpu.dot_dimension_numbers<[1], [0], [0], [1], [0, 0, 1, 1], [], []>} : vector<4x8xf32>, vector<8x16xf32>, vector<4x16xf32> -> vector<4x16xf32>
    %205 = arith.addf %203, %204 : vector<4x16xf32>
    %c0_113 = arith.constant 0 : index
    %c4_114 = arith.constant 4 : index
    %c242 = arith.constant 242 : index
    %206 = vector.load %arg6[%c0_113, %c4_114, %c242] : memref<1x8x420xf32, #tpu.memory_space<vmem>>, vector<1x4x16xf32>
    %207 = vector.shape_cast %206 : vector<1x4x16xf32> to vector<4x16xf32>
    %208 = vector.shape_cast %205 : vector<4x16xf32> to vector<1x4x16xf32>
    tpu.vector_store %arg6[%c0_113, %c4_114, %c242], %208 {strides = array<i32>} : memref<1x8x420xf32, #tpu.memory_space<vmem>>, vector<1x4x16xf32>,
    %209 = vector.extract_strided_slice %111 {offsets = [0, 40], sizes = [4, 8], strides = [1, 1]} : vector<4x64xf32> to vector<4x8xf32>
    %210 = vector.extract_strided_slice %116 {offsets = [0, 40], sizes = [4, 8], strides = [1, 1]} : vector<4x64xf32> to vector<4x8xf32>
    %cst_115 = arith.constant dense<0.000000e+00> : vector<4x16xf32>
    %211 = tpu.matmul %209, %118, %cst_115 {dimension_numbers = #tpu.dot_dimension_numbers<[1], [0], [0], [1], [0, 0, 1, 1], [], []>} : vector<4x8xf32>, vector<8x16xf32>, vector<4x16xf32> -> vector<4x16xf32>
    %cst_116 = arith.constant dense<0.000000e+00> : vector<4x16xf32>
    %212 = tpu.matmul %210, %120, %cst_116 {dimension_numbers = #tpu.dot_dimension_numbers<[1], [0], [0], [1], [0, 0, 1, 1], [], []>} : vector<4x8xf32>, vector<8x16xf32>, vector<4x16xf32> -> vector<4x16xf32>
    %213 = arith.addf %211, %212 : vector<4x16xf32>
    %c0_117 = arith.constant 0 : index
    %c4_118 = arith.constant 4 : index
    %c262 = arith.constant 262 : index
    %214 = vector.load %arg6[%c0_117, %c4_118, %c262] : memref<1x8x420xf32, #tpu.memory_space<vmem>>, vector<1x4x16xf32>
    %215 = vector.shape_cast %214 : vector<1x4x16xf32> to vector<4x16xf32>
    %216 = vector.shape_cast %213 : vector<4x16xf32> to vector<1x4x16xf32>
    tpu.vector_store %arg6[%c0_117, %c4_118, %c262], %216 {strides = array<i32>} : memref<1x8x420xf32, #tpu.memory_space<vmem>>, vector<1x4x16xf32>,
    %217 = vector.extract_strided_slice %101 {offsets = [0, 48], sizes = [4, 8], strides = [1, 1]} : vector<4x64xf32> to vector<4x8xf32>
    %218 = vector.extract_strided_slice %106 {offsets = [0, 48], sizes = [4, 8], strides = [1, 1]} : vector<4x64xf32> to vector<4x8xf32>
    %cst_119 = arith.constant dense<0.000000e+00> : vector<4x16xf32>
    %219 = tpu.matmul %217, %118, %cst_119 {dimension_numbers = #tpu.dot_dimension_numbers<[1], [0], [0], [1], [0, 0, 1, 1], [], []>} : vector<4x8xf32>, vector<8x16xf32>, vector<4x16xf32> -> vector<4x16xf32>
    %cst_120 = arith.constant dense<0.000000e+00> : vector<4x16xf32>
    %220 = tpu.matmul %218, %120, %cst_120 {dimension_numbers = #tpu.dot_dimension_numbers<[1], [0], [0], [1], [0, 0, 1, 1], [], []>} : vector<4x8xf32>, vector<8x16xf32>, vector<4x16xf32> -> vector<4x16xf32>
    %221 = arith.addf %219, %220 : vector<4x16xf32>
    %c0_121 = arith.constant 0 : index
    %c4_122 = arith.constant 4 : index
    %c282 = arith.constant 282 : index
    %222 = vector.load %arg6[%c0_121, %c4_122, %c282] : memref<1x8x420xf32, #tpu.memory_space<vmem>>, vector<1x4x16xf32>
    %223 = vector.shape_cast %222 : vector<1x4x16xf32> to vector<4x16xf32>
    %224 = vector.shape_cast %221 : vector<4x16xf32> to vector<1x4x16xf32>
    tpu.vector_store %arg6[%c0_121, %c4_122, %c282], %224 {strides = array<i32>} : memref<1x8x420xf32, #tpu.memory_space<vmem>>, vector<1x4x16xf32>,
    %225 = vector.extract_strided_slice %111 {offsets = [0, 48], sizes = [4, 8], strides = [1, 1]} : vector<4x64xf32> to vector<4x8xf32>
    %226 = vector.extract_strided_slice %116 {offsets = [0, 48], sizes = [4, 8], strides = [1, 1]} : vector<4x64xf32> to vector<4x8xf32>
    %cst_123 = arith.constant dense<0.000000e+00> : vector<4x16xf32>
    %227 = tpu.matmul %225, %118, %cst_123 {dimension_numbers = #tpu.dot_dimension_numbers<[1], [0], [0], [1], [0, 0, 1, 1], [], []>} : vector<4x8xf32>, vector<8x16xf32>, vector<4x16xf32> -> vector<4x16xf32>
    %cst_124 = arith.constant dense<0.000000e+00> : vector<4x16xf32>
    %228 = tpu.matmul %226, %120, %cst_124 {dimension_numbers = #tpu.dot_dimension_numbers<[1], [0], [0], [1], [0, 0, 1, 1], [], []>} : vector<4x8xf32>, vector<8x16xf32>, vector<4x16xf32> -> vector<4x16xf32>
    %229 = arith.addf %227, %228 : vector<4x16xf32>
    %c0_125 = arith.constant 0 : index
    %c4_126 = arith.constant 4 : index
    %c302 = arith.constant 302 : index
    %230 = vector.load %arg6[%c0_125, %c4_126, %c302] : memref<1x8x420xf32, #tpu.memory_space<vmem>>, vector<1x4x16xf32>
    %231 = vector.shape_cast %230 : vector<1x4x16xf32> to vector<4x16xf32>
    %232 = vector.shape_cast %229 : vector<4x16xf32> to vector<1x4x16xf32>
    tpu.vector_store %arg6[%c0_125, %c4_126, %c302], %232 {strides = array<i32>} : memref<1x8x420xf32, #tpu.memory_space<vmem>>, vector<1x4x16xf32>,
    %233 = vector.extract_strided_slice %101 {offsets = [0, 56], sizes = [4, 8], strides = [1, 1]} : vector<4x64xf32> to vector<4x8xf32>
    %234 = vector.extract_strided_slice %106 {offsets = [0, 56], sizes = [4, 8], strides = [1, 1]} : vector<4x64xf32> to vector<4x8xf32>
    %cst_127 = arith.constant dense<0.000000e+00> : vector<4x16xf32>
    %235 = tpu.matmul %233, %118, %cst_127 {dimension_numbers = #tpu.dot_dimension_numbers<[1], [0], [0], [1], [0, 0, 1, 1], [], []>} : vector<4x8xf32>, vector<8x16xf32>, vector<4x16xf32> -> vector<4x16xf32>
    %cst_128 = arith.constant dense<0.000000e+00> : vector<4x16xf32>
    %236 = tpu.matmul %234, %120, %cst_128 {dimension_numbers = #tpu.dot_dimension_numbers<[1], [0], [0], [1], [0, 0, 1, 1], [], []>} : vector<4x8xf32>, vector<8x16xf32>, vector<4x16xf32> -> vector<4x16xf32>
    %237 = arith.addf %235, %236 : vector<4x16xf32>
    %c0_129 = arith.constant 0 : index
    %c4_130 = arith.constant 4 : index
    %c322 = arith.constant 322 : index
    %238 = vector.load %arg6[%c0_129, %c4_130, %c322] : memref<1x8x420xf32, #tpu.memory_space<vmem>>, vector<1x4x16xf32>
    %239 = vector.shape_cast %238 : vector<1x4x16xf32> to vector<4x16xf32>
    %240 = vector.shape_cast %237 : vector<4x16xf32> to vector<1x4x16xf32>
    tpu.vector_store %arg6[%c0_129, %c4_130, %c322], %240 {strides = array<i32>} : memref<1x8x420xf32, #tpu.memory_space<vmem>>, vector<1x4x16xf32>,
    %241 = vector.extract_strided_slice %111 {offsets = [0, 56], sizes = [4, 8], strides = [1, 1]} : vector<4x64xf32> to vector<4x8xf32>
    %242 = vector.extract_strided_slice %116 {offsets = [0, 56], sizes = [4, 8], strides = [1, 1]} : vector<4x64xf32> to vector<4x8xf32>
    %cst_131 = arith.constant dense<0.000000e+00> : vector<4x16xf32>
    %243 = tpu.matmul %241, %118, %cst_131 {dimension_numbers = #tpu.dot_dimension_numbers<[1], [0], [0], [1], [0, 0, 1, 1], [], []>} : vector<4x8xf32>, vector<8x16xf32>, vector<4x16xf32> -> vector<4x16xf32>
    %cst_132 = arith.constant dense<0.000000e+00> : vector<4x16xf32>
    %244 = tpu.matmul %242, %120, %cst_132 {dimension_numbers = #tpu.dot_dimension_numbers<[1], [0], [0], [1], [0, 0, 1, 1], [], []>} : vector<4x8xf32>, vector<8x16xf32>, vector<4x16xf32> -> vector<4x16xf32>
    %245 = arith.addf %243, %244 : vector<4x16xf32>
    %c0_133 = arith.constant 0 : index
    %c4_134 = arith.constant 4 : index
    %c342 = arith.constant 342 : index
    %246 = vector.load %arg6[%c0_133, %c4_134, %c342] : memref<1x8x420xf32, #tpu.memory_space<vmem>>, vector<1x4x16xf32>
    %247 = vector.shape_cast %246 : vector<1x4x16xf32> to vector<4x16xf32>
    %248 = vector.shape_cast %245 : vector<4x16xf32> to vector<1x4x16xf32>
    tpu.vector_store %arg6[%c0_133, %c4_134, %c342], %248 {strides = array<i32>} : memref<1x8x420xf32, #tpu.memory_space<vmem>>, vector<1x4x16xf32>,
    return
  }
  func.func @transform_0(%arg0: i32) -> (i32, i32, i32) {
    %c0_i32 = arith.constant 0 : i32
    %c0_i32_0 = arith.constant 0 : i32
    %c0_i32_1 = arith.constant 0 : i32
    return %arg0, %c0_i32, %c0_i32_0 : i32, i32, i32
  }
  func.func @transform_1(%arg0: i32) -> (i32, i32, i32, i32) {
    %c0_i32 = arith.constant 0 : i32
    %c0_i32_0 = arith.constant 0 : i32
    %c0_i32_1 = arith.constant 0 : i32
    %c0_i32_2 = arith.constant 0 : i32
    return %arg0, %c0_i32, %c0_i32_0, %c0_i32_1 : i32, i32, i32, i32
  }
  func.func @transform_2(%arg0: i32) -> (i32, i32, i32, i32) {
    %c0_i32 = arith.constant 0 : i32
    %c0_i32_0 = arith.constant 0 : i32
    %c0_i32_1 = arith.constant 0 : i32
    %c0_i32_2 = arith.constant 0 : i32
    %c0_i32_3 = arith.constant 0 : i32
    return %c0_i32, %c0_i32_0, %c0_i32_1, %c0_i32_2 : i32, i32, i32, i32
  }
  func.func @transform_3(%arg0: i32) -> (i32, i32) {
    %c0_i32 = arith.constant 0 : i32
    %c0_i32_0 = arith.constant 0 : i32
    %c0_i32_1 = arith.constant 0 : i32
    return %c0_i32, %c0_i32_0 : i32, i32
  }
  func.func @transform_4(%arg0: i32) -> (i32, i32, i32) {
    %c0_i32 = arith.constant 0 : i32
    %c0_i32_0 = arith.constant 0 : i32
    %c0_i32_1 = arith.constant 0 : i32
    %c0_i32_2 = arith.constant 0 : i32
    return %c0_i32, %c0_i32_0, %c0_i32_1 : i32, i32, i32
  }
  func.func @transform_5(%arg0: i32) -> (i32, i32, i32) {
    %c0_i32 = arith.constant 0 : i32
    %c0_i32_0 = arith.constant 0 : i32
    %c0_i32_1 = arith.constant 0 : i32
    return %arg0, %c0_i32, %c0_i32_0 : i32, i32, i32
  }
}

module attributes {stable_mosaic.version = 11 : i64} {
  func.func @kernel(%arg0: i32, %arg1: memref<1x8x420xf32, #tpu.memory_space<vmem>>, %arg2: memref<1x420xf32, #tpu.memory_space<vmem>>, %arg3: memref<3x3x4x8xf32, #tpu.memory_space<vmem>>, %arg4: memref<4x1xf32, #tpu.memory_space<vmem>>, %arg5: memref<1x4x420xf32, #tpu.memory_space<vmem>>, %arg6: memref<1x4x1xf32, #tpu.memory_space<vmem>>, %arg7: memref<1x4x1xf32, #tpu.memory_space<vmem>>) attributes {dimension_semantics = [#tpu.dimension_semantics<parallel>], iteration_bounds = array<i64: 2>, scalar_prefetch = 0 : i64, scratch_operands = 0 : i64, tpu.core_type = #tpu.core_type<tc>, window_params = [{transform_indices = @transform_0, window_bounds = array<i64: 1, 8, 420>}, {pipeline_mode = #tpu.pipeline_mode<synchronous>, transform_indices = @transform_1, window_bounds = array<i64: 1, 420>}, {pipeline_mode = #tpu.pipeline_mode<synchronous>, transform_indices = @transform_2, window_bounds = array<i64: 3, 3, 4, 8>}, {pipeline_mode = #tpu.pipeline_mode<synchronous>, transform_indices = @transform_3, window_bounds = array<i64: 4, 1>}, {transform_indices = @transform_4, window_bounds = array<i64: 1, 4, 420>}, {transform_indices = @transform_5, window_bounds = array<i64: 1, 4, 1>}, {transform_indices = @transform_6, window_bounds = array<i64: 1, 4, 1>}]} {
    %c0 = arith.constant 0 : index
    %c0_0 = arith.constant 0 : index
    %c0_1 = arith.constant 0 : index
    %0 = vector.load %arg1[%c0, %c0_0, %c0_1] : memref<1x8x420xf32, #tpu.memory_space<vmem>>, vector<1x8x420xf32>
    %1 = vector.shape_cast %0 : vector<1x8x420xf32> to vector<8x420xf32>
    %c0_2 = arith.constant 0 : index
    %c0_3 = arith.constant 0 : index
    %2 = vector.load %arg2[%c0_2, %c0_3] : memref<1x420xf32, #tpu.memory_space<vmem>>, vector<1x420xf32>
    %c0_4 = arith.constant 0 : index
    %c0_5 = arith.constant 0 : index
    %c0_6 = arith.constant 0 : index
    %c0_7 = arith.constant 0 : index
    %3 = vector.load %arg3[%c0_4, %c0_5, %c0_6, %c0_7] : memref<3x3x4x8xf32, #tpu.memory_space<vmem>>, vector<1x1x4x8xf32>
    %4 = vector.shape_cast %3 : vector<1x1x4x8xf32> to vector<4x8xf32>
    %5 = vector.extract_strided_slice %1 {offsets = [0, 0], sizes = [8, 360], strides = [1, 1]} : vector<8x420xf32> to vector<8x360xf32>
    %cst = arith.constant dense<0.000000e+00> : vector<4x360xf32>
    %6 = tpu.matmul %4, %5, %cst {dimension_numbers = #tpu.dot_dimension_numbers<[1], [0], [0], [1], [0, 0, 1, 1], [], []>} : vector<4x8xf32>, vector<8x360xf32>, vector<4x360xf32> -> vector<4x360xf32>
    %c0_8 = arith.constant 0 : index
    %c1 = arith.constant 1 : index
    %c0_9 = arith.constant 0 : index
    %c0_10 = arith.constant 0 : index
    %7 = vector.load %arg3[%c0_8, %c1, %c0_9, %c0_10] : memref<3x3x4x8xf32, #tpu.memory_space<vmem>>, vector<1x1x4x8xf32>
    %8 = vector.shape_cast %7 : vector<1x1x4x8xf32> to vector<4x8xf32>
    %9 = vector.extract_strided_slice %1 {offsets = [0, 1], sizes = [8, 360], strides = [1, 1]} : vector<8x420xf32> to vector<8x360xf32>
    %cst_11 = arith.constant dense<0.000000e+00> : vector<4x360xf32>
    %10 = tpu.matmul %8, %9, %cst_11 {dimension_numbers = #tpu.dot_dimension_numbers<[1], [0], [0], [1], [0, 0, 1, 1], [], []>} : vector<4x8xf32>, vector<8x360xf32>, vector<4x360xf32> -> vector<4x360xf32>
    %11 = arith.addf %6, %10 : vector<4x360xf32>
    %c0_12 = arith.constant 0 : index
    %c2 = arith.constant 2 : index
    %c0_13 = arith.constant 0 : index
    %c0_14 = arith.constant 0 : index
    %12 = vector.load %arg3[%c0_12, %c2, %c0_13, %c0_14] : memref<3x3x4x8xf32, #tpu.memory_space<vmem>>, vector<1x1x4x8xf32>
    %13 = vector.shape_cast %12 : vector<1x1x4x8xf32> to vector<4x8xf32>
    %14 = vector.extract_strided_slice %1 {offsets = [0, 2], sizes = [8, 360], strides = [1, 1]} : vector<8x420xf32> to vector<8x360xf32>
    %cst_15 = arith.constant dense<0.000000e+00> : vector<4x360xf32>
    %15 = tpu.matmul %13, %14, %cst_15 {dimension_numbers = #tpu.dot_dimension_numbers<[1], [0], [0], [1], [0, 0, 1, 1], [], []>} : vector<4x8xf32>, vector<8x360xf32>, vector<4x360xf32> -> vector<4x360xf32>
    %16 = arith.addf %11, %15 : vector<4x360xf32>
    %c1_16 = arith.constant 1 : index
    %c0_17 = arith.constant 0 : index
    %c0_18 = arith.constant 0 : index
    %c0_19 = arith.constant 0 : index
    %17 = vector.load %arg3[%c1_16, %c0_17, %c0_18, %c0_19] : memref<3x3x4x8xf32, #tpu.memory_space<vmem>>, vector<1x1x4x8xf32>
    %18 = vector.shape_cast %17 : vector<1x1x4x8xf32> to vector<4x8xf32>
    %19 = vector.extract_strided_slice %1 {offsets = [0, 20], sizes = [8, 360], strides = [1, 1]} : vector<8x420xf32> to vector<8x360xf32>
    %cst_20 = arith.constant dense<0.000000e+00> : vector<4x360xf32>
    %20 = tpu.matmul %18, %19, %cst_20 {dimension_numbers = #tpu.dot_dimension_numbers<[1], [0], [0], [1], [0, 0, 1, 1], [], []>} : vector<4x8xf32>, vector<8x360xf32>, vector<4x360xf32> -> vector<4x360xf32>
    %21 = arith.addf %16, %20 : vector<4x360xf32>
    %c1_21 = arith.constant 1 : index
    %c1_22 = arith.constant 1 : index
    %c0_23 = arith.constant 0 : index
    %c0_24 = arith.constant 0 : index
    %22 = vector.load %arg3[%c1_21, %c1_22, %c0_23, %c0_24] : memref<3x3x4x8xf32, #tpu.memory_space<vmem>>, vector<1x1x4x8xf32>
    %23 = vector.shape_cast %22 : vector<1x1x4x8xf32> to vector<4x8xf32>
    %24 = vector.extract_strided_slice %1 {offsets = [0, 21], sizes = [8, 360], strides = [1, 1]} : vector<8x420xf32> to vector<8x360xf32>
    %cst_25 = arith.constant dense<0.000000e+00> : vector<4x360xf32>
    %25 = tpu.matmul %23, %24, %cst_25 {dimension_numbers = #tpu.dot_dimension_numbers<[1], [0], [0], [1], [0, 0, 1, 1], [], []>} : vector<4x8xf32>, vector<8x360xf32>, vector<4x360xf32> -> vector<4x360xf32>
    %26 = arith.addf %21, %25 : vector<4x360xf32>
    %c1_26 = arith.constant 1 : index
    %c2_27 = arith.constant 2 : index
    %c0_28 = arith.constant 0 : index
    %c0_29 = arith.constant 0 : index
    %27 = vector.load %arg3[%c1_26, %c2_27, %c0_28, %c0_29] : memref<3x3x4x8xf32, #tpu.memory_space<vmem>>, vector<1x1x4x8xf32>
    %28 = vector.shape_cast %27 : vector<1x1x4x8xf32> to vector<4x8xf32>
    %29 = vector.extract_strided_slice %1 {offsets = [0, 22], sizes = [8, 360], strides = [1, 1]} : vector<8x420xf32> to vector<8x360xf32>
    %cst_30 = arith.constant dense<0.000000e+00> : vector<4x360xf32>
    %30 = tpu.matmul %28, %29, %cst_30 {dimension_numbers = #tpu.dot_dimension_numbers<[1], [0], [0], [1], [0, 0, 1, 1], [], []>} : vector<4x8xf32>, vector<8x360xf32>, vector<4x360xf32> -> vector<4x360xf32>
    %31 = arith.addf %26, %30 : vector<4x360xf32>
    %c2_31 = arith.constant 2 : index
    %c0_32 = arith.constant 0 : index
    %c0_33 = arith.constant 0 : index
    %c0_34 = arith.constant 0 : index
    %32 = vector.load %arg3[%c2_31, %c0_32, %c0_33, %c0_34] : memref<3x3x4x8xf32, #tpu.memory_space<vmem>>, vector<1x1x4x8xf32>
    %33 = vector.shape_cast %32 : vector<1x1x4x8xf32> to vector<4x8xf32>
    %34 = vector.extract_strided_slice %1 {offsets = [0, 40], sizes = [8, 360], strides = [1, 1]} : vector<8x420xf32> to vector<8x360xf32>
    %cst_35 = arith.constant dense<0.000000e+00> : vector<4x360xf32>
    %35 = tpu.matmul %33, %34, %cst_35 {dimension_numbers = #tpu.dot_dimension_numbers<[1], [0], [0], [1], [0, 0, 1, 1], [], []>} : vector<4x8xf32>, vector<8x360xf32>, vector<4x360xf32> -> vector<4x360xf32>
    %36 = arith.addf %31, %35 : vector<4x360xf32>
    %c2_36 = arith.constant 2 : index
    %c1_37 = arith.constant 1 : index
    %c0_38 = arith.constant 0 : index
    %c0_39 = arith.constant 0 : index
    %37 = vector.load %arg3[%c2_36, %c1_37, %c0_38, %c0_39] : memref<3x3x4x8xf32, #tpu.memory_space<vmem>>, vector<1x1x4x8xf32>
    %38 = vector.shape_cast %37 : vector<1x1x4x8xf32> to vector<4x8xf32>
    %39 = vector.extract_strided_slice %1 {offsets = [0, 41], sizes = [8, 360], strides = [1, 1]} : vector<8x420xf32> to vector<8x360xf32>
    %cst_40 = arith.constant dense<0.000000e+00> : vector<4x360xf32>
    %40 = tpu.matmul %38, %39, %cst_40 {dimension_numbers = #tpu.dot_dimension_numbers<[1], [0], [0], [1], [0, 0, 1, 1], [], []>} : vector<4x8xf32>, vector<8x360xf32>, vector<4x360xf32> -> vector<4x360xf32>
    %41 = arith.addf %36, %40 : vector<4x360xf32>
    %c2_41 = arith.constant 2 : index
    %c2_42 = arith.constant 2 : index
    %c0_43 = arith.constant 0 : index
    %c0_44 = arith.constant 0 : index
    %42 = vector.load %arg3[%c2_41, %c2_42, %c0_43, %c0_44] : memref<3x3x4x8xf32, #tpu.memory_space<vmem>>, vector<1x1x4x8xf32>
    %43 = vector.shape_cast %42 : vector<1x1x4x8xf32> to vector<4x8xf32>
    %44 = vector.extract_strided_slice %1 {offsets = [0, 42], sizes = [8, 360], strides = [1, 1]} : vector<8x420xf32> to vector<8x360xf32>
    %cst_45 = arith.constant dense<0.000000e+00> : vector<4x360xf32>
    %45 = tpu.matmul %43, %44, %cst_45 {dimension_numbers = #tpu.dot_dimension_numbers<[1], [0], [0], [1], [0, 0, 1, 1], [], []>} : vector<4x8xf32>, vector<8x360xf32>, vector<4x360xf32> -> vector<4x360xf32>
    %46 = arith.addf %41, %45 : vector<4x360xf32>
    %c0_46 = arith.constant 0 : index
    %c0_47 = arith.constant 0 : index
    %47 = vector.load %arg4[%c0_46, %c0_47] : memref<4x1xf32, #tpu.memory_space<vmem>>, vector<4x1xf32>
    %48 = vector.broadcast %47 : vector<4x1xf32> to vector<4x360xf32>
    %49 = arith.addf %46, %48 : vector<4x360xf32>
    %50 = vector.extract_strided_slice %2 {offsets = [0, 21], sizes = [1, 360], strides = [1, 1]} : vector<1x420xf32> to vector<1x360xf32>
    %51 = vector.broadcast %50 : vector<1x360xf32> to vector<4x360xf32>
    %52 = arith.mulf %49, %51 : vector<4x360xf32>
    %cst_48 = arith.constant dense<0.000000e+00> : vector<4xf32>
    %53 = vector.multi_reduction <add>, %52, %cst_48 [1] : vector<4x360xf32> to vector<4xf32>
    %54 = vector.shape_cast %53 : vector<4xf32> to vector<4x1xf32>
    %c0_49 = arith.constant 0 : index
    %c0_50 = arith.constant 0 : index
    %c0_51 = arith.constant 0 : index
    %55 = vector.load %arg6[%c0_49, %c0_50, %c0_51] : memref<1x4x1xf32, #tpu.memory_space<vmem>>, vector<1x4x1xf32>
    %56 = vector.shape_cast %55 : vector<1x4x1xf32> to vector<4x1xf32>
    %57 = vector.shape_cast %54 : vector<4x1xf32> to vector<1x4x1xf32>
    tpu.vector_store %arg6[%c0_49, %c0_50, %c0_51], %57 {strides = array<i32>} : memref<1x4x1xf32, #tpu.memory_space<vmem>>, vector<1x4x1xf32>,
    %58 = arith.mulf %52, %52 : vector<4x360xf32>
    %cst_52 = arith.constant dense<0.000000e+00> : vector<4xf32>
    %59 = vector.multi_reduction <add>, %58, %cst_52 [1] : vector<4x360xf32> to vector<4xf32>
    %60 = vector.shape_cast %59 : vector<4xf32> to vector<4x1xf32>
    %c0_53 = arith.constant 0 : index
    %c0_54 = arith.constant 0 : index
    %c0_55 = arith.constant 0 : index
    %61 = vector.load %arg7[%c0_53, %c0_54, %c0_55] : memref<1x4x1xf32, #tpu.memory_space<vmem>>, vector<1x4x1xf32>
    %62 = vector.shape_cast %61 : vector<1x4x1xf32> to vector<4x1xf32>
    %63 = vector.shape_cast %60 : vector<4x1xf32> to vector<1x4x1xf32>
    tpu.vector_store %arg7[%c0_53, %c0_54, %c0_55], %63 {strides = array<i32>} : memref<1x4x1xf32, #tpu.memory_space<vmem>>, vector<1x4x1xf32>,
    %cst_56 = arith.constant 0.000000e+00 : f32
    %64 = vector.broadcast %cst_56 : f32 to vector<1x4x420xf32>
    %c0_57 = arith.constant 0 : index
    %c0_58 = arith.constant 0 : index
    %c0_59 = arith.constant 0 : index
    %65 = vector.load %arg5[%c0_57, %c0_58, %c0_59] : memref<1x4x420xf32, #tpu.memory_space<vmem>>, vector<1x4x420xf32>
    tpu.vector_store %arg5[%c0_57, %c0_58, %c0_59], %64 {strides = array<i32>} : memref<1x4x420xf32, #tpu.memory_space<vmem>>, vector<1x4x420xf32>,
    %c0_60 = arith.constant 0 : index
    %c0_61 = arith.constant 0 : index
    %c21 = arith.constant 21 : index
    %66 = vector.load %arg5[%c0_60, %c0_61, %c21] : memref<1x4x420xf32, #tpu.memory_space<vmem>>, vector<1x4x360xf32>
    %67 = vector.shape_cast %66 : vector<1x4x360xf32> to vector<4x360xf32>
    %68 = vector.shape_cast %52 : vector<4x360xf32> to vector<1x4x360xf32>
    tpu.vector_store %arg5[%c0_60, %c0_61, %c21], %68 {strides = array<i32>} : memref<1x4x420xf32, #tpu.memory_space<vmem>>, vector<1x4x360xf32>,
    return
  }
  func.func @transform_0(%arg0: i32) -> (i32, i32, i32) {
    %c0_i32 = arith.constant 0 : i32
    %c0_i32_0 = arith.constant 0 : i32
    %c0_i32_1 = arith.constant 0 : i32
    return %arg0, %c0_i32, %c0_i32_0 : i32, i32, i32
  }
  func.func @transform_1(%arg0: i32) -> (i32, i32) {
    %c0_i32 = arith.constant 0 : i32
    %c0_i32_0 = arith.constant 0 : i32
    %c0_i32_1 = arith.constant 0 : i32
    return %c0_i32, %c0_i32_0 : i32, i32
  }
  func.func @transform_2(%arg0: i32) -> (i32, i32, i32, i32) {
    %c0_i32 = arith.constant 0 : i32
    %c0_i32_0 = arith.constant 0 : i32
    %c0_i32_1 = arith.constant 0 : i32
    %c0_i32_2 = arith.constant 0 : i32
    %c0_i32_3 = arith.constant 0 : i32
    return %c0_i32, %c0_i32_0, %c0_i32_1, %c0_i32_2 : i32, i32, i32, i32
  }
  func.func @transform_3(%arg0: i32) -> (i32, i32) {
    %c0_i32 = arith.constant 0 : i32
    %c0_i32_0 = arith.constant 0 : i32
    %c0_i32_1 = arith.constant 0 : i32
    return %c0_i32, %c0_i32_0 : i32, i32
  }
  func.func @transform_4(%arg0: i32) -> (i32, i32, i32) {
    %c0_i32 = arith.constant 0 : i32
    %c0_i32_0 = arith.constant 0 : i32
    %c0_i32_1 = arith.constant 0 : i32
    return %arg0, %c0_i32, %c0_i32_0 : i32, i32, i32
  }
  func.func @transform_5(%arg0: i32) -> (i32, i32, i32) {
    %c0_i32 = arith.constant 0 : i32
    %c0_i32_0 = arith.constant 0 : i32
    %c0_i32_1 = arith.constant 0 : i32
    return %arg0, %c0_i32, %c0_i32_0 : i32, i32, i32
  }
  func.func @transform_6(%arg0: i32) -> (i32, i32, i32) {
    %c0_i32 = arith.constant 0 : i32
    %c0_i32_0 = arith.constant 0 : i32
    %c0_i32_1 = arith.constant 0 : i32
    return %arg0, %c0_i32, %c0_i32_0 : i32, i32, i32
  }
}

module attributes {stable_mosaic.version = 11 : i64} {
  func.func @kernel(%arg0: i32, %arg1: memref<1x4x420xf32, #tpu.memory_space<vmem>>, %arg2: memref<1x420xf32, #tpu.memory_space<vmem>>, %arg3: memref<3x3x4x4xf32, #tpu.memory_space<vmem>>, %arg4: memref<4x1xf32, #tpu.memory_space<vmem>>, %arg5: memref<4x1xf32, #tpu.memory_space<vmem>>, %arg6: memref<4x1xf32, #tpu.memory_space<vmem>>, %arg7: memref<1x4x420xf32, #tpu.memory_space<vmem>>, %arg8: memref<1x4x1xf32, #tpu.memory_space<vmem>>, %arg9: memref<1x4x1xf32, #tpu.memory_space<vmem>>) attributes {dimension_semantics = [#tpu.dimension_semantics<parallel>], iteration_bounds = array<i64: 2>, scalar_prefetch = 0 : i64, scratch_operands = 0 : i64, tpu.core_type = #tpu.core_type<tc>, window_params = [{transform_indices = @transform_0, window_bounds = array<i64: 1, 4, 420>}, {pipeline_mode = #tpu.pipeline_mode<synchronous>, transform_indices = @transform_1, window_bounds = array<i64: 1, 420>}, {pipeline_mode = #tpu.pipeline_mode<synchronous>, transform_indices = @transform_2, window_bounds = array<i64: 3, 3, 4, 4>}, {pipeline_mode = #tpu.pipeline_mode<synchronous>, transform_indices = @transform_3, window_bounds = array<i64: 4, 1>}, {pipeline_mode = #tpu.pipeline_mode<synchronous>, transform_indices = @transform_4, window_bounds = array<i64: 4, 1>}, {pipeline_mode = #tpu.pipeline_mode<synchronous>, transform_indices = @transform_5, window_bounds = array<i64: 4, 1>}, {transform_indices = @transform_6, window_bounds = array<i64: 1, 4, 420>}, {transform_indices = @transform_7, window_bounds = array<i64: 1, 4, 1>}, {transform_indices = @transform_8, window_bounds = array<i64: 1, 4, 1>}]} {
    %c0 = arith.constant 0 : index
    %c0_0 = arith.constant 0 : index
    %c0_1 = arith.constant 0 : index
    %0 = vector.load %arg1[%c0, %c0_0, %c0_1] : memref<1x4x420xf32, #tpu.memory_space<vmem>>, vector<1x4x420xf32>
    %1 = vector.shape_cast %0 : vector<1x4x420xf32> to vector<4x420xf32>
    %c0_2 = arith.constant 0 : index
    %c0_3 = arith.constant 0 : index
    %2 = vector.load %arg2[%c0_2, %c0_3] : memref<1x420xf32, #tpu.memory_space<vmem>>, vector<1x420xf32>
    %c0_4 = arith.constant 0 : index
    %c0_5 = arith.constant 0 : index
    %3 = vector.load %arg5[%c0_4, %c0_5] : memref<4x1xf32, #tpu.memory_space<vmem>>, vector<4x1xf32>
    %4 = vector.broadcast %3 : vector<4x1xf32> to vector<4x420xf32>
    %5 = arith.mulf %1, %4 : vector<4x420xf32>
    %c0_6 = arith.constant 0 : index
    %c0_7 = arith.constant 0 : index
    %6 = vector.load %arg6[%c0_6, %c0_7] : memref<4x1xf32, #tpu.memory_space<vmem>>, vector<4x1xf32>
    %7 = vector.broadcast %6 : vector<4x1xf32> to vector<4x420xf32>
    %8 = arith.addf %5, %7 : vector<4x420xf32>
    %cst = arith.constant 0.000000e+00 : f32
    %9 = vector.broadcast %cst : f32 to vector<4x420xf32>
    %10 = arith.maximumf %8, %9 : vector<4x420xf32>
    %11 = vector.broadcast %2 : vector<1x420xf32> to vector<4x420xf32>
    %12 = arith.mulf %10, %11 : vector<4x420xf32>
    %c0_8 = arith.constant 0 : index
    %c0_9 = arith.constant 0 : index
    %c0_10 = arith.constant 0 : index
    %c0_11 = arith.constant 0 : index
    %13 = vector.load %arg3[%c0_8, %c0_9, %c0_10, %c0_11] : memref<3x3x4x4xf32, #tpu.memory_space<vmem>>, vector<1x1x4x4xf32>
    %14 = vector.shape_cast %13 : vector<1x1x4x4xf32> to vector<4x4xf32>
    %15 = vector.extract_strided_slice %12 {offsets = [0, 0], sizes = [4, 360], strides = [1, 1]} : vector<4x420xf32> to vector<4x360xf32>
    %cst_12 = arith.constant dense<0.000000e+00> : vector<4x360xf32>
    %16 = tpu.matmul %14, %15, %cst_12 {dimension_numbers = #tpu.dot_dimension_numbers<[1], [0], [0], [1], [0, 0, 1, 1], [], []>} : vector<4x4xf32>, vector<4x360xf32>, vector<4x360xf32> -> vector<4x360xf32>
    %c0_13 = arith.constant 0 : index
    %c1 = arith.constant 1 : index
    %c0_14 = arith.constant 0 : index
    %c0_15 = arith.constant 0 : index
    %17 = vector.load %arg3[%c0_13, %c1, %c0_14, %c0_15] : memref<3x3x4x4xf32, #tpu.memory_space<vmem>>, vector<1x1x4x4xf32>
    %18 = vector.shape_cast %17 : vector<1x1x4x4xf32> to vector<4x4xf32>
    %19 = vector.extract_strided_slice %12 {offsets = [0, 1], sizes = [4, 360], strides = [1, 1]} : vector<4x420xf32> to vector<4x360xf32>
    %cst_16 = arith.constant dense<0.000000e+00> : vector<4x360xf32>
    %20 = tpu.matmul %18, %19, %cst_16 {dimension_numbers = #tpu.dot_dimension_numbers<[1], [0], [0], [1], [0, 0, 1, 1], [], []>} : vector<4x4xf32>, vector<4x360xf32>, vector<4x360xf32> -> vector<4x360xf32>
    %21 = arith.addf %16, %20 : vector<4x360xf32>
    %c0_17 = arith.constant 0 : index
    %c2 = arith.constant 2 : index
    %c0_18 = arith.constant 0 : index
    %c0_19 = arith.constant 0 : index
    %22 = vector.load %arg3[%c0_17, %c2, %c0_18, %c0_19] : memref<3x3x4x4xf32, #tpu.memory_space<vmem>>, vector<1x1x4x4xf32>
    %23 = vector.shape_cast %22 : vector<1x1x4x4xf32> to vector<4x4xf32>
    %24 = vector.extract_strided_slice %12 {offsets = [0, 2], sizes = [4, 360], strides = [1, 1]} : vector<4x420xf32> to vector<4x360xf32>
    %cst_20 = arith.constant dense<0.000000e+00> : vector<4x360xf32>
    %25 = tpu.matmul %23, %24, %cst_20 {dimension_numbers = #tpu.dot_dimension_numbers<[1], [0], [0], [1], [0, 0, 1, 1], [], []>} : vector<4x4xf32>, vector<4x360xf32>, vector<4x360xf32> -> vector<4x360xf32>
    %26 = arith.addf %21, %25 : vector<4x360xf32>
    %c1_21 = arith.constant 1 : index
    %c0_22 = arith.constant 0 : index
    %c0_23 = arith.constant 0 : index
    %c0_24 = arith.constant 0 : index
    %27 = vector.load %arg3[%c1_21, %c0_22, %c0_23, %c0_24] : memref<3x3x4x4xf32, #tpu.memory_space<vmem>>, vector<1x1x4x4xf32>
    %28 = vector.shape_cast %27 : vector<1x1x4x4xf32> to vector<4x4xf32>
    %29 = vector.extract_strided_slice %12 {offsets = [0, 20], sizes = [4, 360], strides = [1, 1]} : vector<4x420xf32> to vector<4x360xf32>
    %cst_25 = arith.constant dense<0.000000e+00> : vector<4x360xf32>
    %30 = tpu.matmul %28, %29, %cst_25 {dimension_numbers = #tpu.dot_dimension_numbers<[1], [0], [0], [1], [0, 0, 1, 1], [], []>} : vector<4x4xf32>, vector<4x360xf32>, vector<4x360xf32> -> vector<4x360xf32>
    %31 = arith.addf %26, %30 : vector<4x360xf32>
    %c1_26 = arith.constant 1 : index
    %c1_27 = arith.constant 1 : index
    %c0_28 = arith.constant 0 : index
    %c0_29 = arith.constant 0 : index
    %32 = vector.load %arg3[%c1_26, %c1_27, %c0_28, %c0_29] : memref<3x3x4x4xf32, #tpu.memory_space<vmem>>, vector<1x1x4x4xf32>
    %33 = vector.shape_cast %32 : vector<1x1x4x4xf32> to vector<4x4xf32>
    %34 = vector.extract_strided_slice %12 {offsets = [0, 21], sizes = [4, 360], strides = [1, 1]} : vector<4x420xf32> to vector<4x360xf32>
    %cst_30 = arith.constant dense<0.000000e+00> : vector<4x360xf32>
    %35 = tpu.matmul %33, %34, %cst_30 {dimension_numbers = #tpu.dot_dimension_numbers<[1], [0], [0], [1], [0, 0, 1, 1], [], []>} : vector<4x4xf32>, vector<4x360xf32>, vector<4x360xf32> -> vector<4x360xf32>
    %36 = arith.addf %31, %35 : vector<4x360xf32>
    %c1_31 = arith.constant 1 : index
    %c2_32 = arith.constant 2 : index
    %c0_33 = arith.constant 0 : index
    %c0_34 = arith.constant 0 : index
    %37 = vector.load %arg3[%c1_31, %c2_32, %c0_33, %c0_34] : memref<3x3x4x4xf32, #tpu.memory_space<vmem>>, vector<1x1x4x4xf32>
    %38 = vector.shape_cast %37 : vector<1x1x4x4xf32> to vector<4x4xf32>
    %39 = vector.extract_strided_slice %12 {offsets = [0, 22], sizes = [4, 360], strides = [1, 1]} : vector<4x420xf32> to vector<4x360xf32>
    %cst_35 = arith.constant dense<0.000000e+00> : vector<4x360xf32>
    %40 = tpu.matmul %38, %39, %cst_35 {dimension_numbers = #tpu.dot_dimension_numbers<[1], [0], [0], [1], [0, 0, 1, 1], [], []>} : vector<4x4xf32>, vector<4x360xf32>, vector<4x360xf32> -> vector<4x360xf32>
    %41 = arith.addf %36, %40 : vector<4x360xf32>
    %c2_36 = arith.constant 2 : index
    %c0_37 = arith.constant 0 : index
    %c0_38 = arith.constant 0 : index
    %c0_39 = arith.constant 0 : index
    %42 = vector.load %arg3[%c2_36, %c0_37, %c0_38, %c0_39] : memref<3x3x4x4xf32, #tpu.memory_space<vmem>>, vector<1x1x4x4xf32>
    %43 = vector.shape_cast %42 : vector<1x1x4x4xf32> to vector<4x4xf32>
    %44 = vector.extract_strided_slice %12 {offsets = [0, 40], sizes = [4, 360], strides = [1, 1]} : vector<4x420xf32> to vector<4x360xf32>
    %cst_40 = arith.constant dense<0.000000e+00> : vector<4x360xf32>
    %45 = tpu.matmul %43, %44, %cst_40 {dimension_numbers = #tpu.dot_dimension_numbers<[1], [0], [0], [1], [0, 0, 1, 1], [], []>} : vector<4x4xf32>, vector<4x360xf32>, vector<4x360xf32> -> vector<4x360xf32>
    %46 = arith.addf %41, %45 : vector<4x360xf32>
    %c2_41 = arith.constant 2 : index
    %c1_42 = arith.constant 1 : index
    %c0_43 = arith.constant 0 : index
    %c0_44 = arith.constant 0 : index
    %47 = vector.load %arg3[%c2_41, %c1_42, %c0_43, %c0_44] : memref<3x3x4x4xf32, #tpu.memory_space<vmem>>, vector<1x1x4x4xf32>
    %48 = vector.shape_cast %47 : vector<1x1x4x4xf32> to vector<4x4xf32>
    %49 = vector.extract_strided_slice %12 {offsets = [0, 41], sizes = [4, 360], strides = [1, 1]} : vector<4x420xf32> to vector<4x360xf32>
    %cst_45 = arith.constant dense<0.000000e+00> : vector<4x360xf32>
    %50 = tpu.matmul %48, %49, %cst_45 {dimension_numbers = #tpu.dot_dimension_numbers<[1], [0], [0], [1], [0, 0, 1, 1], [], []>} : vector<4x4xf32>, vector<4x360xf32>, vector<4x360xf32> -> vector<4x360xf32>
    %51 = arith.addf %46, %50 : vector<4x360xf32>
    %c2_46 = arith.constant 2 : index
    %c2_47 = arith.constant 2 : index
    %c0_48 = arith.constant 0 : index
    %c0_49 = arith.constant 0 : index
    %52 = vector.load %arg3[%c2_46, %c2_47, %c0_48, %c0_49] : memref<3x3x4x4xf32, #tpu.memory_space<vmem>>, vector<1x1x4x4xf32>
    %53 = vector.shape_cast %52 : vector<1x1x4x4xf32> to vector<4x4xf32>
    %54 = vector.extract_strided_slice %12 {offsets = [0, 42], sizes = [4, 360], strides = [1, 1]} : vector<4x420xf32> to vector<4x360xf32>
    %cst_50 = arith.constant dense<0.000000e+00> : vector<4x360xf32>
    %55 = tpu.matmul %53, %54, %cst_50 {dimension_numbers = #tpu.dot_dimension_numbers<[1], [0], [0], [1], [0, 0, 1, 1], [], []>} : vector<4x4xf32>, vector<4x360xf32>, vector<4x360xf32> -> vector<4x360xf32>
    %56 = arith.addf %51, %55 : vector<4x360xf32>
    %c0_51 = arith.constant 0 : index
    %c0_52 = arith.constant 0 : index
    %57 = vector.load %arg4[%c0_51, %c0_52] : memref<4x1xf32, #tpu.memory_space<vmem>>, vector<4x1xf32>
    %58 = vector.broadcast %57 : vector<4x1xf32> to vector<4x360xf32>
    %59 = arith.addf %56, %58 : vector<4x360xf32>
    %60 = vector.extract_strided_slice %2 {offsets = [0, 21], sizes = [1, 360], strides = [1, 1]} : vector<1x420xf32> to vector<1x360xf32>
    %61 = vector.broadcast %60 : vector<1x360xf32> to vector<4x360xf32>
    %62 = arith.mulf %59, %61 : vector<4x360xf32>
    %cst_53 = arith.constant dense<0.000000e+00> : vector<4xf32>
    %63 = vector.multi_reduction <add>, %62, %cst_53 [1] : vector<4x360xf32> to vector<4xf32>
    %64 = vector.shape_cast %63 : vector<4xf32> to vector<4x1xf32>
    %c0_54 = arith.constant 0 : index
    %c0_55 = arith.constant 0 : index
    %c0_56 = arith.constant 0 : index
    %65 = vector.load %arg8[%c0_54, %c0_55, %c0_56] : memref<1x4x1xf32, #tpu.memory_space<vmem>>, vector<1x4x1xf32>
    %66 = vector.shape_cast %65 : vector<1x4x1xf32> to vector<4x1xf32>
    %67 = vector.shape_cast %64 : vector<4x1xf32> to vector<1x4x1xf32>
    tpu.vector_store %arg8[%c0_54, %c0_55, %c0_56], %67 {strides = array<i32>} : memref<1x4x1xf32, #tpu.memory_space<vmem>>, vector<1x4x1xf32>,
    %68 = arith.mulf %62, %62 : vector<4x360xf32>
    %cst_57 = arith.constant dense<0.000000e+00> : vector<4xf32>
    %69 = vector.multi_reduction <add>, %68, %cst_57 [1] : vector<4x360xf32> to vector<4xf32>
    %70 = vector.shape_cast %69 : vector<4xf32> to vector<4x1xf32>
    %c0_58 = arith.constant 0 : index
    %c0_59 = arith.constant 0 : index
    %c0_60 = arith.constant 0 : index
    %71 = vector.load %arg9[%c0_58, %c0_59, %c0_60] : memref<1x4x1xf32, #tpu.memory_space<vmem>>, vector<1x4x1xf32>
    %72 = vector.shape_cast %71 : vector<1x4x1xf32> to vector<4x1xf32>
    %73 = vector.shape_cast %70 : vector<4x1xf32> to vector<1x4x1xf32>
    tpu.vector_store %arg9[%c0_58, %c0_59, %c0_60], %73 {strides = array<i32>} : memref<1x4x1xf32, #tpu.memory_space<vmem>>, vector<1x4x1xf32>,
    %cst_61 = arith.constant 0.000000e+00 : f32
    %74 = vector.broadcast %cst_61 : f32 to vector<1x4x420xf32>
    %c0_62 = arith.constant 0 : index
    %c0_63 = arith.constant 0 : index
    %c0_64 = arith.constant 0 : index
    %75 = vector.load %arg7[%c0_62, %c0_63, %c0_64] : memref<1x4x420xf32, #tpu.memory_space<vmem>>, vector<1x4x420xf32>
    tpu.vector_store %arg7[%c0_62, %c0_63, %c0_64], %74 {strides = array<i32>} : memref<1x4x420xf32, #tpu.memory_space<vmem>>, vector<1x4x420xf32>,
    %c0_65 = arith.constant 0 : index
    %c0_66 = arith.constant 0 : index
    %c21 = arith.constant 21 : index
    %76 = vector.load %arg7[%c0_65, %c0_66, %c21] : memref<1x4x420xf32, #tpu.memory_space<vmem>>, vector<1x4x360xf32>
    %77 = vector.shape_cast %76 : vector<1x4x360xf32> to vector<4x360xf32>
    %78 = vector.shape_cast %62 : vector<4x360xf32> to vector<1x4x360xf32>
    tpu.vector_store %arg7[%c0_65, %c0_66, %c21], %78 {strides = array<i32>} : memref<1x4x420xf32, #tpu.memory_space<vmem>>, vector<1x4x360xf32>,
    return
  }
  func.func @transform_0(%arg0: i32) -> (i32, i32, i32) {
    %c0_i32 = arith.constant 0 : i32
    %c0_i32_0 = arith.constant 0 : i32
    %c0_i32_1 = arith.constant 0 : i32
    return %arg0, %c0_i32, %c0_i32_0 : i32, i32, i32
  }
  func.func @transform_1(%arg0: i32) -> (i32, i32) {
    %c0_i32 = arith.constant 0 : i32
    %c0_i32_0 = arith.constant 0 : i32
    %c0_i32_1 = arith.constant 0 : i32
    return %c0_i32, %c0_i32_0 : i32, i32
  }
  func.func @transform_2(%arg0: i32) -> (i32, i32, i32, i32) {
    %c0_i32 = arith.constant 0 : i32
    %c0_i32_0 = arith.constant 0 : i32
    %c0_i32_1 = arith.constant 0 : i32
    %c0_i32_2 = arith.constant 0 : i32
    %c0_i32_3 = arith.constant 0 : i32
    return %c0_i32, %c0_i32_0, %c0_i32_1, %c0_i32_2 : i32, i32, i32, i32
  }
  func.func @transform_3(%arg0: i32) -> (i32, i32) {
    %c0_i32 = arith.constant 0 : i32
    %c0_i32_0 = arith.constant 0 : i32
    %c0_i32_1 = arith.constant 0 : i32
    return %c0_i32, %c0_i32_0 : i32, i32
  }
  func.func @transform_4(%arg0: i32) -> (i32, i32) {
    %c0_i32 = arith.constant 0 : i32
    %c0_i32_0 = arith.constant 0 : i32
    %c0_i32_1 = arith.constant 0 : i32
    return %c0_i32, %c0_i32_0 : i32, i32
  }
  func.func @transform_5(%arg0: i32) -> (i32, i32) {
    %c0_i32 = arith.constant 0 : i32
    %c0_i32_0 = arith.constant 0 : i32
    %c0_i32_1 = arith.constant 0 : i32
    return %c0_i32, %c0_i32_0 : i32, i32
  }
  func.func @transform_6(%arg0: i32) -> (i32, i32, i32) {
    %c0_i32 = arith.constant 0 : i32
    %c0_i32_0 = arith.constant 0 : i32
    %c0_i32_1 = arith.constant 0 : i32
    return %arg0, %c0_i32, %c0_i32_0 : i32, i32, i32
  }
  func.func @transform_7(%arg0: i32) -> (i32, i32, i32) {
    %c0_i32 = arith.constant 0 : i32
    %c0_i32_0 = arith.constant 0 : i32
    %c0_i32_1 = arith.constant 0 : i32
    return %arg0, %c0_i32, %c0_i32_0 : i32, i32, i32
  }
  func.func @transform_8(%arg0: i32) -> (i32, i32, i32) {
    %c0_i32 = arith.constant 0 : i32
    %c0_i32_0 = arith.constant 0 : i32
    %c0_i32_1 = arith.constant 0 : i32
    return %arg0, %c0_i32, %c0_i32_0 : i32, i32, i32
  }
}

module attributes {stable_mosaic.version = 11 : i64} {
  func.func @kernel(%arg0: i32, %arg1: memref<1x4x21x20xf32, #tpu.memory_space<vmem>>, %arg2: memref<4x1x1xf32, #tpu.memory_space<vmem>>, %arg3: memref<4x1x1xf32, #tpu.memory_space<vmem>>, %arg4: memref<1x4x18x18xf32, #tpu.memory_space<vmem>>) attributes {dimension_semantics = [#tpu.dimension_semantics<parallel>], iteration_bounds = array<i64: 2>, scalar_prefetch = 0 : i64, scratch_operands = 0 : i64, tpu.core_type = #tpu.core_type<tc>, window_params = [{transform_indices = @transform_0, window_bounds = array<i64: 1, 4, 21, 20>}, {pipeline_mode = #tpu.pipeline_mode<synchronous>, transform_indices = @transform_1, window_bounds = array<i64: 4, 1, 1>}, {pipeline_mode = #tpu.pipeline_mode<synchronous>, transform_indices = @transform_2, window_bounds = array<i64: 4, 1, 1>}, {transform_indices = @transform_3, window_bounds = array<i64: 1, 4, 18, 18>}]} {
    %c0 = arith.constant 0 : index
    %c0_0 = arith.constant 0 : index
    %c1 = arith.constant 1 : index
    %c1_1 = arith.constant 1 : index
    %0 = vector.load %arg1[%c0, %c0_0, %c1, %c1_1] : memref<1x4x21x20xf32, #tpu.memory_space<vmem>>, vector<1x4x18x18xf32>
    %1 = vector.shape_cast %0 : vector<1x4x18x18xf32> to vector<4x18x18xf32>
    %c0_2 = arith.constant 0 : index
    %c0_3 = arith.constant 0 : index
    %c0_4 = arith.constant 0 : index
    %2 = vector.load %arg2[%c0_2, %c0_3, %c0_4] : memref<4x1x1xf32, #tpu.memory_space<vmem>>, vector<4x1x1xf32>
    %3 = vector.broadcast %2 : vector<4x1x1xf32> to vector<4x18x18xf32>
    %4 = arith.mulf %1, %3 : vector<4x18x18xf32>
    %c0_5 = arith.constant 0 : index
    %c0_6 = arith.constant 0 : index
    %c0_7 = arith.constant 0 : index
    %5 = vector.load %arg3[%c0_5, %c0_6, %c0_7] : memref<4x1x1xf32, #tpu.memory_space<vmem>>, vector<4x1x1xf32>
    %6 = vector.broadcast %5 : vector<4x1x1xf32> to vector<4x18x18xf32>
    %7 = arith.addf %4, %6 : vector<4x18x18xf32>
    %cst = arith.constant 0.000000e+00 : f32
    %8 = vector.broadcast %cst : f32 to vector<4x18x18xf32>
    %9 = arith.maximumf %7, %8 : vector<4x18x18xf32>
    %c0_8 = arith.constant 0 : index
    %c0_9 = arith.constant 0 : index
    %c0_10 = arith.constant 0 : index
    %c0_11 = arith.constant 0 : index
    %10 = vector.load %arg4[%c0_8, %c0_9, %c0_10, %c0_11] : memref<1x4x18x18xf32, #tpu.memory_space<vmem>>, vector<1x4x18x18xf32>
    %11 = vector.shape_cast %10 : vector<1x4x18x18xf32> to vector<4x18x18xf32>
    %12 = vector.shape_cast %9 : vector<4x18x18xf32> to vector<1x4x18x18xf32>
    tpu.vector_store %arg4[%c0_8, %c0_9, %c0_10, %c0_11], %12 {strides = array<i32>} : memref<1x4x18x18xf32, #tpu.memory_space<vmem>>, vector<1x4x18x18xf32>,
    return
  }
  func.func @transform_0(%arg0: i32) -> (i32, i32, i32, i32) {
    %c0_i32 = arith.constant 0 : i32
    %c0_i32_0 = arith.constant 0 : i32
    %c0_i32_1 = arith.constant 0 : i32
    %c0_i32_2 = arith.constant 0 : i32
    return %arg0, %c0_i32, %c0_i32_0, %c0_i32_1 : i32, i32, i32, i32
  }
  func.func @transform_1(%arg0: i32) -> (i32, i32, i32) {
    %c0_i32 = arith.constant 0 : i32
    %c0_i32_0 = arith.constant 0 : i32
    %c0_i32_1 = arith.constant 0 : i32
    %c0_i32_2 = arith.constant 0 : i32
    return %c0_i32, %c0_i32_0, %c0_i32_1 : i32, i32, i32
  }
  func.func @transform_2(%arg0: i32) -> (i32, i32, i32) {
    %c0_i32 = arith.constant 0 : i32
    %c0_i32_0 = arith.constant 0 : i32
    %c0_i32_1 = arith.constant 0 : i32
    %c0_i32_2 = arith.constant 0 : i32
    return %c0_i32, %c0_i32_0, %c0_i32_1 : i32, i32, i32
  }
  func.func @transform_3(%arg0: i32) -> (i32, i32, i32, i32) {
    %c0_i32 = arith.constant 0 : i32
    %c0_i32_0 = arith.constant 0 : i32
    %c0_i32_1 = arith.constant 0 : i32
    %c0_i32_2 = arith.constant 0 : i32
    return %arg0, %c0_i32, %c0_i32_0, %c0_i32_1 : i32, i32, i32, i32
  }
}

</mosaic_0001>

<bundles_post_ra>
// kernel: up_forward.7
= control target key start
LH: loop header
LB: loop body
LE: loop exit
PB: predicated region body
PF: predicated region fallthrough
CT: control target
= control target key end

     0   :  { %s453_s12 = smov 0   ;;  %s539_s0 = inlined_call_operand.vmem [shape: f32[2,4,21,20], index: 0, kind: input, shape index: {}]   ;;  %s540_s1 = inlined_call_operand.vmem [shape: f32[4,1,1], index: 1, kind: input, shape index: {}]   ;;  %s541_s2 = inlined_call_operand.vmem [shape: f32[4,1,1], index: 2, kind: input, shape index: {}]   ;;  %s542_s3 = inlined_call_operand.vmem [shape: f32[2,4,18,18], index: 3, kind: output, shape index: {}]  }
   0x1 LB: > { %s392_s13 = sadd.s32 4294967295, %s429_s12   ;;  %p396_p0 = scmp.ge.s32.totalorder %s429_s12, 1  ;;  %s429_s12 = sphi %s453_s12, %s13_s12  }
   0x2   : > { %p137_p1 = scmp.lt.s32.totalorder %s429_s12, 3 }
   0x4   : > { %p138_p2 = pnand %p396_p0, %p137_p1 }
   0x5   : > { %p161_p3 = scmp.lt.s32.totalorder (!%p138_p2), %s392_s13, 1  ;;  %s432_s7 = smov (!%p138_p2), 127  }
   0x6   : > { %141 = sbr.rel (%p138_p2) target bundleno = 276 (0x114), region = 32 }
   0xb   : > { %v415_v0 = vld [vmem:[%s540_s1 + $0x2] ss:$0 sm:$0xff]  ;;  %v431_v1 = vmov 0   ;;  %v416_v2 = vld [vmem:[%s540_s1] ss:$0 sm:$0xff]  ;;  %s544_s13 = smov (!%p161_p3, %s392_s13), 1 }
   0xc   : > { %413 = vset.pattern.permute.xlu1 %v431_v1  ;;  %412 = vset.pattern.permute.xlu0 %v431_v1  ;;  %v421_v3 = vld [vmem:[%s541_s2] ss:$0 sm:$0xff]  ;;  %v417_v4 = vld [vmem:[%s540_s1 + $0x3] ss:$0 sm:$0xff]  ;;  %v418_v5 = vld [vmem:[%s540_s1 + $0x1] ss:$0 sm:$0xff] }
   0xd   : > { %204 = vperm.xlu1 %413, %v415_v0   ;;  %414 = vset.pattern.permute.xlu2 %v431_v1  ;;  %v422_v6 = vld [vmem:[%s541_s2 + $0x1] ss:$0 sm:$0xff]  ;;  %v419_v7 = vld [vmem:[%s541_s2 + $0x3] ss:$0 sm:$0xff]  ;;  %v420_v8 = vld [vmem:[%s541_s2 + $0x2] ss:$0 sm:$0xff] }
   0xe   : > { %196 = vperm.xlu0 %412, %v416_v2   ;;  %236 = vperm.xlu2 %414, %v421_v3   ;;  %s401_s30 = smul.u32 96, %s544_s13  ;;  %vm323_vm0 = vcmask 146432   ;;  %vm326_vm1 = vcmask 140288  }
  0x10   : > { %s493_s6 = scalar_lea.vmem %s539_s0, %s401_s30  ;;  %s170_s10 = scalar_lea.vmem %s542_s3, %s401_s30 }
  0x11   : > { %v171_v9 = vld [vmem:[%s493_s6 + $0x1] sm:$0xff]  ;;  %v172_v10 = vld [vmem:[%s493_s6 + $0x9] sm:$0xff]  ;;  %v173_v11 = vld [vmem:[%s493_s6 + $0x11] sm:$0x3] }
  0x12   : > { %v174_v24 = vld [vmem:[%s493_s6 + $0x19] sm:$0xff]  ;;  %v175_v25 = vld [vmem:[%s493_s6 + $0x21] sm:$0xff]  ;;  %v176_v26 = vld [vmem:[%s493_s6 + $0x29] sm:$0x3] }
  0x13   : > { %v178_v35 = vld [vmem:[%s493_s6 + $0x39] sm:$0xff]  ;;  %v179_v36 = vld [vmem:[%s493_s6 + $0x41] sm:$0x3]  ;;  %v177_v38 = vld [vmem:[%s493_s6 + $0x31] sm:$0xff] }
  0x14   : > { %v181_v49 = vld [vmem:[%s493_s6 + $0x51] sm:$0xff]  ;;  %v182_v50 = vld [vmem:[%s493_s6 + $0x59] sm:$0x3]  ;;  %v180_v51 = vld [vmem:[%s493_s6 + $0x49] sm:$0xff] }
  0x15   : > { %208 = vperm.xlu1 %413, %v417_v4  }
  0x16   : > { %200 = vperm.xlu0 %412, %v418_v5   ;;  %240 = vperm.xlu2 %414, %v422_v6  }
  0x1d   : > { %248 = vperm.xlu1 %413, %v419_v7  }
  0x1e   : > { %244 = vperm.xlu0 %412, %v420_v8  }
  0x68   : > { %v237_v12 = vpop.permute.xlu2 %236 }
  0x70   : > { %v241_v31 = vpop.permute.xlu2 %240 }
  0x7f   : > { %v205_v17 = vpop.permute.xlu1 %204 }
  0x80   : > { %v197_v13 = vpop.permute.xlu0 %196  ;;  %v218_v42 = vmul.f32 %v205_v17, %v178_v35  ;;  %v219_v43 = vmul.f32 %v205_v17, %v179_v36  ;;  %v217_v44 = vmul.f32 %v205_v17, %v177_v38 }
  0x81   : > { %v211_v14 = vmul.f32 %v197_v13, %v171_v9  ;;  %v212_v15 = vmul.f32 %v197_v13, %v172_v10  ;;  %v213_v16 = vmul.f32 %v197_v13, %v173_v11 }
  0x83   : > { %v253_v18 = vadd.f32 %v237_v12, %v213_v16  ;;  %v252_v19 = vadd.f32 %v237_v12, %v212_v15  ;;  %v251_v20 = vadd.f32 %v237_v12, %v211_v14 }
  0x85   : > { %v265_v21 = vmax.f32 %v253_v18, 0.0  ;;  %v264_v22 = vmax.f32 %v252_v19, 0.0  ;;  %v263_v23 = vmax.f32 %v251_v20, 0.0 }
  0x87   : > { %291 = vrot.lane.b32.xlu1 %v265_v21, %s432_s7  ;;  %289 = vrot.lane.b32.xlu0 %v264_v22, %s432_s7  ;;  %v209_v37 = vpop.permute.xlu1 %208 }
  0x88   : > { %287 = vrot.lane.b32.xlu2 %v263_v23, %s432_s7  ;;  %v201_v27 = vpop.permute.xlu0 %200  ;;  %v221_v56 = vmul.f32 %v209_v37, %v181_v49  ;;  %v222_v57 = vmul.f32 %v209_v37, %v182_v50  ;;  %v220_v58 = vmul.f32 %v209_v37, %v180_v51 }
  0x89   : > { %v214_v28 = vmul.f32 %v201_v27, %v174_v24  ;;  %v215_v29 = vmul.f32 %v201_v27, %v175_v25  ;;  %v216_v30 = vmul.f32 %v201_v27, %v176_v26 }
  0x8b   : > { %v256_v32 = vadd.f32 %v241_v31, %v216_v30  ;;  %v255_v33 = vadd.f32 %v241_v31, %v215_v29  ;;  %v254_v34 = vadd.f32 %v241_v31, %v214_v28 }
  0x8d   : > { %v268_v39 = vmax.f32 %v256_v32, 0.0  ;;  %v267_v40 = vmax.f32 %v255_v33, 0.0  ;;  %v266_v41 = vmax.f32 %v254_v34, 0.0 }
  0x8f   : > { %297 = vrot.lane.b32.xlu1 %v268_v39, %s432_s7  ;;  %295 = vrot.lane.b32.xlu0 %v267_v40, %s432_s7  ;;  %v249_v54 = vpop.permute.xlu1 %248 }
  0x90   : > { %293 = vrot.lane.b32.xlu2 %v266_v41, %s432_s7  ;;  %v245_v45 = vpop.permute.xlu0 %244  ;;  %v261_v59 = vadd.f32 %v249_v54, %v221_v56  ;;  %v262_v60 = vadd.f32 %v249_v54, %v222_v57  ;;  %v260_v61 = vadd.f32 %v249_v54, %v220_v58 }
  0x91   : > { %v258_v46 = vadd.f32 %v245_v45, %v218_v42  ;;  %v259_v47 = vadd.f32 %v245_v45, %v219_v43  ;;  %v257_v48 = vadd.f32 %v245_v45, %v217_v44 }
  0x92   : > { %v274_v62 = vmax.f32 %v262_v60, 0.0  ;;  %v273_v63 = vmax.f32 %v261_v59, 0.0  ;;  %v272_v0 = vmax.f32 %v260_v61, 0.0 }
  0x93   : > { %v271_v52 = vmax.f32 %v259_v47, 0.0  ;;  %v270_v53 = vmax.f32 %v258_v46, 0.0  ;;  %v269_v55 = vmax.f32 %v257_v48, 0.0 }
  0x97   : > { %303 = vrot.lane.b32.xlu1 %v271_v52, %s432_s7  ;;  %301 = vrot.lane.b32.xlu0 %v270_v53, %s432_s7 }
  0x98   : > { %299 = vrot.lane.b32.xlu2 %v269_v55, %s432_s7 }
  0x9f   : > { %309 = vrot.lane.b32.xlu1 %v274_v62, %s432_s7  ;;  %307 = vrot.lane.b32.xlu0 %v273_v63, %s432_s7 }
  0xa0   : > { %305 = vrot.lane.b32.xlu2 %v272_v0, %s432_s7 }
  0xe2   : > { %v288_v1 = vpop.permute.xlu2 %287 }
  0xe3   : > { %324 = vst.msk [vmem:[%s170_s10] sm:$0xff] %vm323_vm0, %v288_v1 }
  0xea   : > { %v294_v2 = vpop.permute.xlu2 %293 }
  0xeb   : > { %328 = vst.msk [vmem:[%s170_s10 + $0x18] sm:$0xff] %vm323_vm0, %v294_v2 }
  0xf2   : > { %v300_v3 = vpop.permute.xlu2 %299 }
  0xf3   : > { %331 = vst.msk [vmem:[%s170_s10 + $0x30] sm:$0xff] %vm323_vm0, %v300_v3 }
  0xf9   : > { %v292_v4 = vpop.permute.xlu1 %291  ;;  %v290_v5 = vpop.permute.xlu0 %289 }
  0xfa   : > { %327 = vst.msk [vmem:[%s170_s10 + $0x10] sm:$0x3] %vm326_vm1, %v292_v4  ;;  %v306_v6 = vpop.permute.xlu2 %305 }
  0xfb   : > { %325 = vst.msk [vmem:[%s170_s10 + $0x8] sm:$0xff] %vm323_vm0, %v290_v5 }
  0xfc   : > { %334 = vst.msk [vmem:[%s170_s10 + $0x48] sm:$0xff] %vm323_vm0, %v306_v6 }
 0x101   : > { %v298_v7 = vpop.permute.xlu1 %297  ;;  %v296_v8 = vpop.permute.xlu0 %295 }
 0x102   : > { %330 = vst.msk [vmem:[%s170_s10 + $0x28] sm:$0x3] %vm326_vm1, %v298_v7 }
 0x103   : > { %329 = vst.msk [vmem:[%s170_s10 + $0x20] sm:$0xff] %vm323_vm0, %v296_v8 }
 0x109   : > { %v304_v9 = vpop.permute.xlu1 %303  ;;  %v302_v10 = vpop.permute.xlu0 %301 }
 0x10a   : > { %333 = vst.msk [vmem:[%s170_s10 + $0x40] sm:$0x3] %vm326_vm1, %v304_v9 }
 0x10b   : > { %332 = vst.msk [vmem:[%s170_s10 + $0x38] sm:$0xff] %vm323_vm0, %v302_v10 }
 0x111   : > { %v310_v11 = vpop.permute.xlu1 %309  ;;  %v308_v12 = vpop.permute.xlu0 %307 }
 0x112   : > { %336 = vst.msk [vmem:[%s170_s10 + $0x58] sm:$0x3] %vm326_vm1, %v310_v11 }
 0x113   : > { %335 = vst.msk [vmem:[%s170_s10 + $0x50] sm:$0xff] %vm323_vm0, %v308_v12 }
 0x114 PF: > { %s13_s12 = sadd.s32 1, %s429_s12  }
 0x115   : > { %p10_p4 = scmp.ge.s32.totalorder %s13_s12, 4  }
 0x117   :  { %12 = sbr.rel (!%p10_p4) target bundleno = 1 (0x1), region = 62 }

// kernel: up_forward.5
= control target key start
LH: loop header
LB: loop body
LE: loop exit
PB: predicated region body
PF: predicated region fallthrough
CT: control target
= control target key end

     0   :  { %s1364_s21 = smov 0   ;;  %s1505_s0 = inlined_call_operand.vmem [shape: f32[2,8,420], index: 0, kind: input, shape index: {}]   ;;  %s1506_s1 = inlined_call_operand.vmem [shape: f32[1,420], index: 1, kind: input, shape index: {}]   ;;  %s1507_s2 = inlined_call_operand.vmem [shape: f32[3,3,4,8], index: 2, kind: input, shape index: {}]   ;;  %s1508_s3 = inlined_call_operand.vmem [shape: f32[4,1], index: 3, kind: input, shape index: {}]   ;;  %s1509_s4 = inlined_call_operand.vmem [shape: f32[2,4,420], index: 4, kind: output, shape index: {0}]   ;;  %s1510_s5 = inlined_call_operand.vmem [shape: f32[2,4,1], index: 5, kind: output, shape index: {1}]   ;;  %s1511_s6 = inlined_call_operand.vmem [shape: f32[2,4,1], index: 6, kind: output, shape index: {2}]  }
   0x1 LB: > { %s1184_s22 = sadd.s32 4294967295, %s1316_s21   ;;  %p1188_p0 = scmp.ge.s32.totalorder %s1316_s21, 1  ;;  %s1316_s21 = sphi %s1364_s21, %s17_s21  }
   0x2   : > { %p217_p1 = scmp.lt.s32.totalorder %s1316_s21, 3 }
   0x4   : > { %p218_p2 = pnand %p1188_p0, %p217_p1 }
   0x5   : > { %p255_p3 = scmp.lt.s32.totalorder (!%p218_p2), %s1184_s22, 1  ;;  %s1318_s27 = smov (!%p218_p2), 126  }
   0x6   : > { %221 = sbr.rel (%p218_p2) target bundleno = 447 (0x1bf), region = 36  ;;  %s1319_s28 = smov (!%p218_p2), 127  }
   0x7   : > { %s1320_s29 = smov (!%p218_p2), 108   ;;  %s1321_s30 = smov (!%p218_p2), 107  }
   0x8   : > { %s1322_s7 = smov (!%p218_p2), 106   ;;  %s1323_s8 = smov (!%p218_p2), 88  }
   0x9   : > { %s1324_s9 = smov (!%p218_p2), 87   ;;  %s1325_s10 = smov (!%p218_p2), 86  }
   0xa   : > { %s1328_s15 = smov (!%p218_p2), 21  }
   0xb   : > { %s1513_s22 = smov (!%p255_p3, %s1184_s22), 1  ;;  %vm296_vm0 = vcmask 64512   ;;  %v278_v9 = vld [vmem:[%s1507_s2] sm:$0xf]  ;;  %vm431_vm1 = vcmask 1031168   ;;  %vm511_vm2 = vcmask 883712  }
   0xc   : > { %s1232_s23 = sshll.u32 %s1513_s22, 5  ;;  %v1195_v19 = vld [vmem:[%s1507_s2 + $0x4] sm:$0xf]  ;;  %vm290_vm3 = vcmask 1039360   ;;  %v1202_v31 = vld [vmem:[%s1507_s2 + $0x8] sm:$0xf] }
   0xd   : > { %s259_s26 = scalar_lea.vmem %s1505_s0, %s1232_s23  ;;  %vm671_vm4 = vcmask 867328   ;;  %vm591_vm5 = vcmask 875520   ;;  %v1206_v38 = vld [vmem:[%s1507_s2 + $0xc] sm:$0xf]  ;;  %vm754_vm6 = vcmask 719872   ;;  %v1326_v59 = vmov 0  }
   0xe   : > { %v273_v0 = vld [vmem:[%s259_s26] sm:$0xff]  ;;  %v1378_v1 = vld [vmem:[%s259_s26 + $0x8] sm:$0xff]  ;;  %v1380_v2 = vld [vmem:[%s259_s26 + $0x10] sm:$0xff]  ;;  %1308 = vset.pattern.permute.xlu1 %v1326_v59  ;;  %vm837_vm7 = vcmask 711680   ;;  %vm920_vm8 = vcmask 703488   ;;  %1309 = vset.pattern.permute.xlu0 %v1326_v59  ;;  %s1233_s11 = sshll.u32 %s1513_s22, 4 }
   0xf   : > { %v1258_v3 = vpack.i.bf16 %v1378_v1, %v273_v0  ;;  %v1253_v4 = vpack.i.bf16 %v273_v0, %v1380_v2  ;;  %v1263_v5 = vpack.i.bf16 %v1380_v2, %v1378_v1  ;;  %378 = vmatpush.msra.mxu3 %v273_v0  ;;  %v276_v6 = vld [vmem:[%s259_s26 + $0x18] sm:$0xff]  ;;  %v1210_v48 = vld [vmem:[%s1507_s2 + $0x10] sm:$0xf]  ;;  %v1214_v52 = vld [vmem:[%s1507_s2 + $0x14] sm:$0xf]  ;;  %s1479_s14 = scalar_lea.vmem %s1509_s4, %s1233_s11  ;;  %vm1020_vm9 = vcmask 1043456  }
  0x10   : > { %v1283_v7 = vpack.i.bf16 %v276_v6, %v1380_v2  ;;  %v1293_v8 = vpack.i.bf16 %v276_v6, %v273_v0  ;;  %1199 = vmatmul.msk.f32.vlgmr.msra.gmra.mxu3 %vm296_vm0, %v278_v9  ;;  %v277_v53 = vld [vmem:[%s1506_s1] sm:$0xf]  ;;  %vm1024_vm10 = vcmask 846848   ;;  %vm1043_vm11 = vcmask 293892   ;;  %s1193_s16 = sshll.u32 %s1513_s22, 2 }
  0x11   : > { %1259 = vrot.lane.b32.xlu1 %v1258_v3, %s1318_s27  ;;  %1254 = vrot.lane.b32.xlu0 %v1253_v4, %s1319_s28  ;;  %v993_v55 = vld [vmem:[%s1508_s3] sm:$0xf]  ;;  %v1004_v56 = vperm.slane %v277_v53, 1  ;;  %v1003_v57 = vperm.slane %v277_v53, 0  ;;  %vm1044_vm12 = vmor %vm1043_vm11, %vm1020_vm9  ;;  %vm1061_vm13 = vcmask 1043624   ;;  %vm1062_vm14 = vcmask 1047556   ;;  %s268_s19 = scalar_lea.vmem %s1510_s5, %s1193_s16  ;;  %s272_s24 = scalar_lea.vmem %s1511_s6, %s1193_s16 }
  0x12   : > { %1264 = vrot.lane.b32.xlu2 %v1263_v5, %s1320_s29  ;;  %vm1056_vm15 = vcmask 171008  }
  0x19   : > { %429 = vrot.lane.b32.xlu1 %v1380_v2, %s1318_s27  ;;  %286 = vrot.lane.b32.xlu0 %v1378_v1, %s1319_s28 }
  0x1a   : > { %505 = vrot.lane.b32.xlu2 %v273_v0, %s1320_s29 }
  0x21   : > { %587 = vrot.lane.b32.xlu1 %v1378_v1, %s1321_s30  ;;  %1269 = vrot.lane.b32.xlu0 %v1253_v4, %s1321_s30  ;;  %v1218_v4 = vld [vmem:[%s1507_s2 + $0x18] sm:$0xf] }
  0x22   : > { %1274 = vrot.lane.b32.xlu2 %v1258_v3, %s1322_s7 }
  0x29   : > { %669 = vrot.lane.b32.xlu1 %v1380_v2, %s1322_s7  ;;  %1279 = vrot.lane.b32.xlu0 %v1258_v3, %s1323_s8 }
  0x2a   : > { %1284 = vrot.lane.b32.xlu2 %v1283_v7, %s1323_s8 }
  0x31   : > { %1294 = vrot.lane.b32.xlu1 %v1293_v8, %s1324_s9  ;;  %1289 = vrot.lane.b32.xlu0 %v1263_v5, %s1324_s9 }
  0x32   : > { %1299 = vrot.lane.b32.xlu2 %v1283_v7, %s1325_s10 }
  0x39   : > { %1304 = vrot.lane.b32.xlu0 %v1258_v3, %s1325_s10  ;;  %996 = vperm.xlu1 %1308, %v993_v55  }
  0x3a   : > { %1006 = vrot.lane.b32.xlu2 %v1003_v57, %s1321_s30 }
  0x41   : > { %1008 = vrot.lane.b32.xlu0 %v1004_v56, %s1321_s30 }
  0x6c   : > { %v1265_v10 = vpop.permute.xlu2 %1264 }
  0x6d   : > { %v1267_v12 = vunpack.i.h.bf16 %v1265_v10  ;;  %v1266_v13 = vunpack.i.l.bf16 %v1265_v10 }
  0x6f   : > { %v513_v21 = vsel %vm511_vm2, %v1266_v13, %v1267_v12 }
  0x74   : > { %v506_v11 = vpop.permute.xlu2 %505 }
  0x75   : > { %v512_v32 = vsel %vm511_vm2, %v506_v11, %v1266_v13  ;;  %v1222_v13 = vld [vmem:[%s1507_s2 + $0x1c] sm:$0xf]  ;;  %vm1029_vm2 = vcmask 3072  }
  0x7c   : > { %v1275_v22 = vpop.permute.xlu2 %1274 }
  0x7d   : > { %v1277_v26 = vunpack.i.h.bf16 %v1275_v22  ;;  %v1276_v30 = vunpack.i.l.bf16 %v1275_v22 }
  0x7f   : > { %v672_v33 = vsel %vm671_vm4, %v1276_v30, %v1277_v26 }
  0x83   : > { %v1260_v14 = vpop.permute.xlu1 %1259  ;;  %v1255_v15 = vpop.permute.xlu0 %1254 }
  0x84   : > { %v1262_v16 = vunpack.i.h.bf16 %v1260_v14  ;;  %v1261_v17 = vunpack.i.l.bf16 %v1260_v14  ;;  %v1256_v18 = vunpack.i.l.bf16 %v1255_v15  ;;  %v1257_v23 = vunpack.i.h.bf16 %v1255_v15  ;;  %v1285_v41 = vpop.permute.xlu2 %1284 }
  0x85   : > { %v1286_v42 = vunpack.i.l.bf16 %v1285_v41  ;;  %v1287_v49 = vunpack.i.h.bf16 %v1285_v41 }
  0x86   : > { %355 = vmatpush.msra.mxu2 %v1256_v18  ;;  %v432_v20 = vsel %vm431_vm1, %v1261_v17, %v1262_v16 }
  0x87   : > { %1198 = vmatmul.msk.f32.vlgmr.msra.gmra.mxu2 %vm296_vm0, %v1195_v19  ;;  %v757_v58 = vsel %vm754_vm6, %v1286_v42, %v1287_v49 }
  0x88   : > { %455 = vmatpush.msrb.mxu2 %v432_v20 }
  0x8a   : > { %555 = vmatpush.msra.mxu2 %v513_v21 }
  0x8b   : > { %v430_v24 = vpop.permute.xlu1 %429  ;;  %v287_v25 = vpop.permute.xlu0 %286 }
  0x8c   : > { %v291_v27 = vsel %vm290_vm3, %v1257_v23, %v287_v25  ;;  %v292_v28 = vsel %vm290_vm3, %v287_v25, %v1256_v18  ;;  %v433_v29 = vsel %vm431_vm1, %v1262_v16, %v430_v24  ;;  %v1300_v54 = vpop.permute.xlu2 %1299  ;;  %v1226_v16 = vld [vmem:[%s1507_s2 + $0x20] sm:$0xf]  ;;  %vm1065_vm1 = vcmask 1018880  }
  0x8d   : > { %315 = vmatpush.msra.mxu0 %v291_v27  ;;  %335 = vmatpush.msra.mxu1 %v292_v28  ;;  %v1302_v62 = vunpack.i.h.bf16 %v1300_v54  ;;  %v1301_v63 = vunpack.i.l.bf16 %v1300_v54 }
  0x8e   : > { %475 = vmatpush.msrb.mxu3 %v433_v29  ;;  %1196 = vmatmul.msk.f32.vlgmr.msra.gmra.mxu0 %vm296_vm0, %v1195_v19 }
  0x8f   : > { %1197 = vmatmul.msk.f32.vlgmr.msra.gmra.mxu1 %vm296_vm0, %v1195_v19  ;;  %398 = vmatpush.msrb.mxu0 %v1378_v1  ;;  %v923_v8 = vsel %vm920_vm8, %v1301_v63, %v1302_v62 }
  0x90   : > { %418 = vmatpush.msrb.mxu1 %v1380_v2  ;;  %1203 = vmatmul.msk.f32.vlgmr.msrb.gmra.mxu2 %vm296_vm0, %v1202_v31 }
  0x91   : > { %495 = vmatpush.msra.mxu0 %v430_v24  ;;  %575 = vmatpush.msra.mxu3 %v1267_v12 }
  0x92   : > { %535 = vmatpush.msra.mxu1 %v512_v32  ;;  %1204 = vmatmul.msk.f32.vlgmr.msrb.gmra.mxu3 %vm296_vm0, %v1202_v31 }
  0x93   : > { %v588_v34 = vpop.permute.xlu1 %587  ;;  %v1270_v35 = vpop.permute.xlu0 %1269  ;;  %695 = vmatpush.msrb.mxu3 %v672_v33 }
  0x94   : > { %v1272_v36 = vunpack.i.h.bf16 %v1270_v35  ;;  %v1271_v37 = vunpack.i.l.bf16 %v1270_v35  ;;  %v380_v20 = vpop.f32.mrf.mxu3 }
  0x96   : > { %1200 = vmatmul.msk.f32.vlgmr.msrb.gmra.mxu0 %vm296_vm0, %v278_v9  ;;  %655 = vmatpush.msrb.mxu2 %v1271_v37  ;;  %v592_v39 = vsel %vm591_vm5, %v1272_v36, %v588_v34  ;;  %v593_v40 = vsel %vm591_vm5, %v588_v34, %v1271_v37 }
  0x97   : > { %1201 = vmatmul.msk.f32.vlgmr.msrb.gmra.mxu1 %vm296_vm0, %v278_v9  ;;  %615 = vmatpush.msrb.mxu0 %v592_v39  ;;  %v1005_v9 = vperm.slane %v277_v53, 2 }
  0x98   : > { %1208 = vmatmul.msk.f32.vlgmr.msra.gmra.mxu2 %vm296_vm0, %v1206_v38  ;;  %635 = vmatpush.msrb.mxu1 %v593_v40 }
  0x99   : > { %1010 = vrot.lane.b32.xlu1 %v1005_v9, %s1321_s30 }
  0x9a   : > { %1209 = vmatmul.msk.f32.vlgmr.msra.gmra.mxu3 %vm296_vm0, %v1206_v38 }
  0x9b   : > { %v670_v43 = vpop.permute.xlu1 %669  ;;  %v1280_v44 = vpop.permute.xlu0 %1279 }
  0x9c   : > { %v673_v45 = vsel %vm671_vm4, %v1277_v26, %v670_v43  ;;  %v1282_v46 = vunpack.i.h.bf16 %v1280_v44  ;;  %v1281_v47 = vunpack.i.l.bf16 %v1280_v44 }
  0x9e   : > { %1205 = vmatmul.msk.f32.vlgmr.msra.gmra.mxu0 %vm296_vm0, %v1202_v31  ;;  %v755_v50 = vsel %vm754_vm6, %v1281_v47, %v1282_v46  ;;  %v756_v51 = vsel %vm754_vm6, %v1282_v46, %v1286_v42 }
  0x9f   : > { %1207 = vmatmul.msk.f32.vlgmr.msra.gmra.mxu1 %vm296_vm0, %v1206_v38  ;;  %715 = vmatpush.msra.mxu0 %v673_v45 }
  0xa0   : > { %1213 = vmatmul.msk.f32.vlgmr.msrb.gmra.mxu2 %vm296_vm0, %v1210_v48  ;;  %799 = vmatpush.msra.mxu3 %v756_v51 }
  0xa1   : > { %779 = vmatpush.msra.mxu2 %v755_v50  ;;  %735 = vmatpush.msra.mxu1 %v670_v43  ;;  %v1327_v43 = vmov 0.0  }
  0xa2   : > { %1215 = vmatmul.msk.f32.vlgmr.msrb.gmra.mxu3 %vm296_vm0, %v1214_v52  ;;  %1042 = vst [vmem:[%s1479_s14] sm:$0xff] %v1327_v43 }
  0xa3   : > { %v1295_v60 = vpop.permute.xlu1 %1294  ;;  %v1290_v61 = vpop.permute.xlu0 %1289  ;;  %1045 = vst.msk [vmem:[%s1479_s14 + $0x8] sm:$0xff] %vm1044_vm12, %v1327_v43 }
  0xa4   : > { %v1297_v0 = vunpack.i.h.bf16 %v1295_v60  ;;  %v1296_v1 = vunpack.i.l.bf16 %v1295_v60  ;;  %v1292_v2 = vunpack.i.h.bf16 %v1290_v61  ;;  %v1291_v3 = vunpack.i.l.bf16 %v1290_v61  ;;  %v1007_v61 = vpop.permute.xlu2 %1006 }
  0xa6   : > { %1211 = vmatmul.msk.f32.vlgmr.msrb.gmra.mxu0 %vm296_vm0, %v1210_v48  ;;  %v838_v5 = vsel %vm837_vm7, %v1296_v1, %v1291_v3  ;;  %v839_v6 = vsel %vm837_vm7, %v1291_v3, %v1292_v2  ;;  %v840_v7 = vsel %vm837_vm7, %v1292_v2, %v1297_v0 }
  0xa7   : > { %1212 = vmatmul.msk.f32.vlgmr.msrb.gmra.mxu1 %vm296_vm0, %v1210_v48  ;;  %819 = vmatpush.msrb.mxu0 %v757_v58 }
  0xa8   : > { %1219 = vmatmul.msk.f32.vlgmr.msra.gmra.mxu2 %vm296_vm0, %v1218_v4  ;;  %862 = vmatpush.msrb.mxu1 %v838_v5 }
  0xa9   : > { %882 = vmatpush.msrb.mxu2 %v839_v6  ;;  %902 = vmatpush.msrb.mxu3 %v840_v7 }
  0xaa   : > { %1220 = vmatmul.msk.f32.vlgmr.msra.gmra.mxu3 %vm296_vm0, %v1218_v4 }
  0xab   : > { %985 = vmatpush.msra.mxu2 %v923_v8  ;;  %v1305_v10 = vpop.permute.xlu0 %1304  ;;  %v997_v46 = vpop.permute.xlu1 %996 }
  0xac   : > { %v1307_v11 = vunpack.i.h.bf16 %v1305_v10  ;;  %v1306_v12 = vunpack.i.l.bf16 %v1305_v10 }
  0xae   : > { %1216 = vmatmul.msk.f32.vlgmr.msra.gmra.mxu0 %vm296_vm0, %v1214_v52  ;;  %v922_v14 = vsel %vm920_vm8, %v1307_v11, %v1301_v63  ;;  %v921_v15 = vsel %vm920_vm8, %v1306_v12, %v1307_v11 }
  0xaf   : > { %1217 = vmatmul.msk.f32.vlgmr.msra.gmra.mxu1 %vm296_vm0, %v1214_v52  ;;  %945 = vmatpush.msra.mxu0 %v921_v15 }
  0xb0   : > { %1224 = vmatmul.msk.f32.vlgmr.msrb.gmra.mxu2 %vm296_vm0, %v1222_v13  ;;  %965 = vmatpush.msra.mxu1 %v922_v14 }
  0xb2   : > { %1225 = vmatmul.msk.f32.vlgmr.msrb.gmra.mxu3 %vm296_vm0, %v1222_v13 }
  0xb3   : > { %v1009_v1 = vpop.permute.xlu0 %1008 }
  0xb4   : > { %v1012_v9 = vsel %vm591_vm5, %v1007_v61, %v1009_v1 }
  0xb6   : > { %1221 = vmatmul.msk.f32.vlgmr.msrb.gmra.mxu0 %vm296_vm0, %v1218_v4 }
  0xb7   : > { %1223 = vmatmul.msk.f32.vlgmr.msrb.gmra.mxu1 %vm296_vm0, %v1222_v13 }
  0xb8   : > { %1229 = vmatmul.msk.f32.vlgmr.msra.gmra.mxu2 %vm296_vm0, %v1226_v16 }
  0xbe   : > { %1227 = vmatmul.msk.f32.vlgmr.msra.gmra.mxu0 %vm296_vm0, %v1226_v16 }
  0xbf   : > { %1228 = vmatmul.msk.f32.vlgmr.msra.gmra.mxu1 %vm296_vm0, %v1226_v16  ;;  %vm1063_vm0 = vmor %vm1062_vm14, %vm1061_vm13 }
 0x10a   : > { %v357_v17 = vpop.f32.mrf.mxu2 }
 0x10b   : > { %v317_v18 = vpop.f32.mrf.mxu0  ;;  %v1011_v0 = vpop.permute.xlu1 %1010 }
 0x10c   : > { %v337_v19 = vpop.f32.mrf.mxu1  ;;  %v381_v37 = vadd.f32 %v380_v20, %v317_v18  ;;  %v1013_v12 = vsel %vm591_vm5, %v1009_v1, %v1011_v0 }
 0x113   : > { %v457_v21 = vpop.f32.mrf.mxu2  ;;  %v400_v22 = vpop.f32.mrf.mxu0 }
 0x114   : > { %v420_v23 = vpop.f32.mrf.mxu1  ;;  %v401_v34 = vadd.f32 %v400_v22, %v337_v19  ;;  %v500_v41 = vadd.f32 %v457_v21, %v381_v37 }
 0x115   : > { %v477_v24 = vpop.f32.mrf.mxu3  ;;  %v421_v33 = vadd.f32 %v420_v23, %v357_v17 }
 0x116   : > { %v501_v42 = vadd.f32 %v477_v24, %v401_v34 }
 0x11b   : > { %v557_v25 = vpop.f32.mrf.mxu2  ;;  %v497_v26 = vpop.f32.mrf.mxu0 }
 0x11c   : > { %v537_v27 = vpop.f32.mrf.mxu1  ;;  %v502_v38 = vadd.f32 %v497_v26, %v421_v33  ;;  %v581_v47 = vadd.f32 %v557_v25, %v501_v42 }
 0x11d   : > { %v577_v28 = vpop.f32.mrf.mxu3  ;;  %v580_v44 = vadd.f32 %v537_v27, %v500_v41 }
 0x11e   : > { %v582_v45 = vadd.f32 %v577_v28, %v502_v38 }
 0x123   : > { %v657_v29 = vpop.f32.mrf.mxu2  ;;  %v617_v30 = vpop.f32.mrf.mxu0 }
 0x124   : > { %v637_v31 = vpop.f32.mrf.mxu1  ;;  %v662_v48 = vadd.f32 %v657_v29, %v582_v45  ;;  %v660_v49 = vadd.f32 %v617_v30, %v580_v44 }
 0x125   : > { %v697_v32 = vpop.f32.mrf.mxu3  ;;  %v661_v50 = vadd.f32 %v637_v31, %v581_v47 }
 0x126   : > { %v740_v56 = vadd.f32 %v697_v32, %v660_v49 }
 0x12b   : > { %v781_v35 = vpop.f32.mrf.mxu2  ;;  %v717_v36 = vpop.f32.mrf.mxu0 }
 0x12c   : > { %v737_v39 = vpop.f32.mrf.mxu1  ;;  %v741_v55 = vadd.f32 %v717_v36, %v661_v50  ;;  %v824_v59 = vadd.f32 %v781_v35, %v740_v56 }
 0x12d   : > { %v801_v40 = vpop.f32.mrf.mxu3  ;;  %v742_v53 = vadd.f32 %v737_v39, %v662_v48 }
 0x12e   : > { %v825_v60 = vadd.f32 %v801_v40, %v741_v55 }
 0x133   : > { %v884_v51 = vpop.f32.mrf.mxu2  ;;  %v821_v52 = vpop.f32.mrf.mxu0 }
 0x134   : > { %v864_v54 = vpop.f32.mrf.mxu1  ;;  %v826_v57 = vadd.f32 %v821_v52, %v742_v53  ;;  %v908_v2 = vadd.f32 %v884_v51, %v825_v60 }
 0x135   : > { %v904_v58 = vpop.f32.mrf.mxu3  ;;  %v907_v62 = vadd.f32 %v864_v54, %v824_v59 }
 0x136   : > { %v909_v63 = vadd.f32 %v904_v58, %v826_v57 }
 0x13b   : > { %v987_v3 = vpop.f32.mrf.mxu2  ;;  %v947_v4 = vpop.f32.mrf.mxu0 }
 0x13c   : > { %v992_v5 = vadd.f32 %v987_v3, %v909_v63  ;;  %v990_v6 = vadd.f32 %v947_v4, %v907_v62  ;;  %v967_v7 = vpop.f32.mrf.mxu1 }
 0x13d   : > { %v991_v8 = vadd.f32 %v967_v7, %v908_v2 }
 0x13e   : > { %v1001_v10 = vadd.f32 %v997_v46, %v992_v5  ;;  %v999_v11 = vadd.f32 %v997_v46, %v990_v6 }
 0x13f   : > { %v1000_v13 = vadd.f32 %v997_v46, %v991_v8 }
 0x140   : > { %v1019_v14 = vmul.f32 %v1011_v0, %v1001_v10  ;;  %v1017_v15 = vmul.f32 %v1012_v9, %v999_v11 }
 0x141   : > { %v1018_v16 = vmul.f32 %v1013_v12, %v1000_v13 }
 0x142   : > { %v1021_v17 = vsel %vm1020_vm9, %v1017_v15, 0.0  ;;  %v1031_v18 = vmul.f32 %v1017_v15, %v1017_v15  ;;  %v1033_v22 = vmul.f32 %v1019_v14, %v1019_v14  ;;  %v1025_v26 = vsel %vm1024_vm10, %v1019_v14, 0.0 }
 0x143   : > { %v1049_v19 = vrot.slane %v1018_v16, 4  ;;  %v1022_v20 = vsel %vm1020_vm9, %v1018_v16, 0.0  ;;  %v1032_v21 = vmul.f32 %v1018_v16, %v1018_v16 }
 0x144   : > { %v1023_v23 = vadd.f32 %v1022_v20, %v1021_v17  ;;  %v1034_v24 = vsel %vm1020_vm9, %v1031_v18, 0.0  ;;  %v1037_v30 = vsel %vm1024_vm10, %v1033_v22, 0.0 }
 0x145   : > { %v1050_v25 = vsel %vm1020_vm9, %v1017_v15, %v1049_v19  ;;  %v1035_v27 = vsel %vm1020_vm9, %v1032_v21, 0.0 }
 0x146   : > { %1051 = vrot.lane.b32.xlu2 %v1050_v25, %s1328_s15  ;;  %v1026_v28 = vadd.f32 %v1025_v26, %v1023_v23  ;;  %v1036_v29 = vadd.f32 %v1035_v27, %v1034_v24 }
 0x148   : > { %1027 = vadd.xlane.f32.xlu0 %v1026_v28  ;;  %v1038_v31 = vadd.f32 %v1037_v30, %v1036_v29 }
 0x14a   : > { %1039 = vadd.xlane.f32.xlu1 %v1038_v31 }
 0x14e   : > { %1053 = vrot.lane.b32.xlu2 %v1019_v14, %s1328_s15 }
 0x1a0   : > { %v1052_v32 = vpop.permute.xlu2 %1051 }
 0x1a1   : > { %v1055_v33 = vrot.slane %v1052_v32, 4 }
 0x1a3   : > { %v1057_v34 = vsel %vm1056_vm15, %v1055_v33, %v1052_v32 }
 0x1a4   : > { %1064 = vst.msk [vmem:[%s1479_s14] sm:$0xff] %vm1063_vm0, %v1057_v34 }
 0x1a8   : > { %v1054_v35 = vpop.permute.xlu2 %1053 }
 0x1a9   : > { %v1058_v36 = vsel %vm1056_vm15, %v1055_v33, %v1054_v35 }
 0x1aa   : > { %1066 = vst.msk [vmem:[%s1479_s14 + $0x8] sm:$0xf] %vm1065_vm1, %v1058_v36 }
 0x1bb   : > { %v1028_v37 = vpop.xlane.xlu0 %1027 }
 0x1bc   : > { %1030 = vst.msk [vmem:[%s268_s19] sm:$0xf] %vm1029_vm2, %v1028_v37 }
 0x1bd   : > { %v1040_v38 = vpop.xlane.xlu1 %1039 }
 0x1be   : > { %1041 = vst.msk [vmem:[%s272_s24] sm:$0xf] %vm1029_vm2, %v1040_v38 }
 0x1bf PF: > { %s17_s21 = sadd.s32 1, %s1316_s21  }
 0x1c0   : > { %p14_p4 = scmp.ge.s32.totalorder %s17_s21, 4  }
 0x1c2   :  { %16 = sbr.rel (!%p14_p4) target bundleno = 1 (0x1), region = 98 }

// kernel: up_forward.4
= control target key start
LH: loop header
LB: loop body
LE: loop exit
PB: predicated region body
PF: predicated region fallthrough
CT: control target
= control target key end

     0   :  { %s1727_s18 = smov 0   ;;  %s2093_s0 = inlined_call_operand.vmem [shape: f32[2,8,64], index: 0, kind: input, shape index: {}]   ;;  %s2094_s1 = inlined_call_operand.vmem [shape: f32[2,4,18,18], index: 1, kind: input, shape index: {}]   ;;  %s2095_s2 = inlined_call_operand.vmem [shape: f32[2,2,4,8], index: 2, kind: input, shape index: {}]   ;;  %s2096_s3 = inlined_call_operand.vmem [shape: f32[4,1], index: 3, kind: input, shape index: {}]   ;;  %s2097_s4 = inlined_call_operand.vmem [shape: f32[2,8,16], index: 4, kind: input, shape index: {}]   ;;  %s2098_s5 = inlined_call_operand.vmem [shape: f32[2,8,420], index: 5, kind: output, shape index: {}]  }
   0x1 LB: > { %s1541_s19 = sadd.s32 4294967295, %s1652_s18   ;;  %p1545_p0 = scmp.ge.s32.totalorder %s1652_s18, 1  ;;  %s1652_s18 = sphi %s1727_s18, %s15_s18  }
   0x2   : > { %p196_p1 = scmp.lt.s32.totalorder %s1652_s18, 3 }
   0x4   : > { %p197_p2 = pnand %p1545_p0, %p196_p1 }
   0x5   : > { %p228_p3 = scmp.lt.s32.totalorder (!%p197_p2), %s1541_s19, 1  ;;  %s1655_s13 = smov (!%p197_p2), 120  }
   0x6   : > { %200 = sbr.rel (%p197_p2) target bundleno = 580 (0x244), region = 40  ;;  %s1656_s14 = smov (!%p197_p2), 104  }
   0x7   : > { %s1657_s15 = smov (!%p197_p2), 112   ;;  %s1658_s16 = smov (!%p197_p2), 96  }
   0x8   : > { %s1659_s17 = smov (!%p197_p2), 88   ;;  %s1660_s20 = smov (!%p197_p2), 80  }
   0x9   : > { %s1662_s26 = smov (!%p197_p2), 21   ;;  %s1663_s27 = smov (!%p197_p2), 41  }
   0xa   : > { %s1664_s28 = smov (!%p197_p2), 81   ;;  %s1665_s29 = smov (!%p197_p2), 101  }
   0xb   : > { %s2100_s19 = smov (!%p228_p3, %s1541_s19), 1  ;;  %v1654_v0 = vmov 0   ;;  %v485_v1 = vld [vmem:[%s2096_s3] sm:$0xf]  ;;  %vm492_vm0 = vcmask 64512   ;;  %v1763_v7 = vld [vmem:[%s2097_s4 + $0x8] sm:$0xff] }
   0xc   : > { %1645 = vset.pattern.permute.xlu0 %v1654_v0  ;;  %s1546_s22 = sshll.u32 %s2100_s19, 3  ;;  %v486_v3 = vld [vmem:[%s2095_s2] sm:$0xf]  ;;  %v1551_v4 = vld [vmem:[%s2095_s2 + $0x4] sm:$0xf]  ;;  %s1593_s21 = smul.u32 96, %s2100_s19 }
   0xd   : > { %489 = vperm.xlu0 %1645, %v485_v1   ;;  %s231_s25 = scalar_lea.vmem %s2093_s0, %s1546_s22  ;;  %v1553_v5 = vld [vmem:[%s2095_s2 + $0x8] sm:$0xf]  ;;  %v1555_v6 = vld [vmem:[%s2095_s2 + $0xc] sm:$0xf]  ;;  %v1768_v8 = vld [vmem:[%s2097_s4] sm:$0xff]  ;;  %vm264_vm1 = vcmask 1041409  }
   0xe   : > { %v484_v2 = vld [vmem:[%s231_s25] sm:$0xff]  ;;  %s1798_s24 = scalar_lea.vmem %s2094_s1, %s1593_s21  ;;  %s1661_s25 = smov 72   ;;  %vm267_vm2 = vcmask 1042434   ;;  %vm270_vm3 = vcmask 1043459   ;;  %vm245_vm4 = vcmask 293888   ;;  %vm275_vm5 = vcmask 314536  }
   0xf   : > { %511 = vmatpush.msra.mxu0 %v484_v2  ;;  %536 = vmatpush.msra.mxu1 %v484_v2  ;;  %v1802_v18 = vld [vmem:[%s1798_s24 + $0x18] sm:$0xff]  ;;  %v1805_v19 = vld [vmem:[%s1798_s24] sm:$0xff]  ;;  %v1808_v20 = vld [vmem:[%s1798_s24 + $0x30] sm:$0xff]  ;;  %s1666_s30 = smov 13   ;;  %s1667_s6 = smov 33   ;;  %vm286_vm6 = vcmask 478536  }
  0x10   : > { %561 = vmatpush.msra.mxu2 %v484_v2  ;;  %586 = vmatpush.msra.mxu3 %v484_v2  ;;  %v263_v21 = vrot.slane %v1802_v18, 7  ;;  %v277_v22 = vrot.slane %v1805_v19, 1  ;;  %v1813_v23 = vld [vmem:[%s1798_s24 + $0x48] sm:$0xff]  ;;  %v266_v24 = vrot.slane %v1808_v20, 6  ;;  %v279_v25 = vrot.slane %v1808_v20, 7  ;;  %v1857_v59 = vld [vmem:[%s1798_s24 + $0x20] sm:$0xff] }
  0x11   : > { %1550 = vmatmul.msk.f32.vlgmr.msra.gmra.mxu0 %vm492_vm0, %v486_v3  ;;  %1552 = vmatmul.msk.f32.vlgmr.msra.gmra.mxu1 %vm492_vm0, %v1551_v4  ;;  %v269_v28 = vrot.slane %v1813_v23, 5  ;;  %v281_v29 = vrot.slane %v1813_v23, 6  ;;  %v299_v32 = vrot.slane %v1805_v19, 3  ;;  %v300_v33 = vrot.slane %v1802_v18, 2  ;;  %v1851_v55 = vld [vmem:[%s1798_s24 + $0x8] sm:$0xff]  ;;  %v1861_v61 = vld [vmem:[%s1798_s24 + $0x38] sm:$0xff] }
  0x12   : > { %1554 = vmatmul.msk.f32.vlgmr.msra.gmra.mxu2 %vm492_vm0, %v1553_v5  ;;  %1556 = vmatmul.msk.f32.vlgmr.msra.gmra.mxu3 %vm492_vm0, %v1555_v6  ;;  %v265_v26 = vsel %vm264_vm1, %v263_v21, %v1805_v19  ;;  %v278_v27 = vsel %vm264_vm1, %v1802_v18, %v277_v22  ;;  %v310_v34 = vrot.slane %v1805_v19, 4  ;;  %v311_v35 = vrot.slane %v1802_v18, 3  ;;  %v1869_v3 = vld [vmem:[%s1798_s24 + $0x50] sm:$0xff]  ;;  %s1668_s7 = smov 73   ;;  %s1669_s8 = smov 93  }
  0x13   : > { %612 = vmatpush.msrb.mxu0 %v1763_v7  ;;  %635 = vmatpush.msrb.mxu1 %v1768_v8  ;;  %v268_v30 = vsel %vm267_vm2, %v266_v24, %v265_v26  ;;  %v280_v31 = vsel %vm267_vm2, %v279_v25, %v278_v27  ;;  %v302_v38 = vrot.slane %v1808_v20, 1  ;;  %v313_v39 = vrot.slane %v1808_v20, 2  ;;  %s1670_s9 = smov 5   ;;  %s1671_s10 = smov 25  }
  0x14   : > { %665 = vmatpush.msrb.mxu2 %v1763_v7  ;;  %688 = vmatpush.msrb.mxu3 %v1768_v8  ;;  %v271_v36 = vsel %vm270_vm3, %v269_v28, %v268_v30  ;;  %v282_v37 = vsel %vm270_vm3, %v281_v29, %v280_v31  ;;  %v301_v40 = vsel %vm264_vm1, %v300_v33, %v299_v32  ;;  %v315_v42 = vrot.slane %v1813_v23, 1  ;;  %v1895_v30 = vld [vmem:[%s1798_s24 + $0x28] sm:$0x3]  ;;  %s1672_s11 = smov 65   ;;  %s1673_s12 = smov 85  }
  0x15   : > { %743 = vmatpush.msra.mxu1 %v1768_v8  ;;  %719 = vmatpush.msra.mxu0 %v1763_v7  ;;  %v312_v41 = vsel %vm264_vm1, %v311_v35, %v310_v34  ;;  %v303_v43 = vsel %vm267_vm2, %v302_v38, %v301_v40  ;;  %v336_v45 = vrot.slane %v1805_v19, 6  ;;  %v337_v46 = vrot.slane %v1802_v18, 5  ;;  %v1907_v38 = vld [vmem:[%s1798_s24 + $0x10] sm:$0x3]  ;;  %s1678_s21 = smov 121   ;;  %s1679_s22 = smov 53  }
  0x16   : > { %774 = vmatpush.msra.mxu2 %v1763_v7  ;;  %798 = vmatpush.msra.mxu3 %v1768_v8  ;;  %v314_v44 = vsel %vm267_vm2, %v313_v39, %v312_v41  ;;  %v348_v47 = vrot.slane %v1805_v19, 7  ;;  %v349_v48 = vrot.slane %v1802_v18, 6  ;;  %v304_v49 = vsel %vm270_vm3, %v1813_v23, %v303_v43  ;;  %s1680_s23 = smov 113  }
  0x17   : > { %v316_v50 = vsel %vm270_vm3, %v315_v42, %v314_v44  ;;  %v339_v51 = vrot.slane %v1808_v20, 4  ;;  %v351_v52 = vrot.slane %v1808_v20, 5  ;;  %v338_v53 = vsel %vm264_vm1, %v337_v46, %v336_v45  ;;  %v1914_v42 = vld [vmem:[%s1798_s24 + $0x58] sm:$0x3] }
  0x18   : > { %v350_v54 = vsel %vm264_vm1, %v349_v48, %v348_v47  ;;  %v341_v56 = vrot.slane %v1813_v23, 3  ;;  %v353_v57 = vrot.slane %v1813_v23, 4  ;;  %v375_v62 = vrot.slane %v1851_v55, 1 }
  0x19   : > { %v340_v58 = vsel %vm267_vm2, %v339_v51, %v338_v53  ;;  %v352_v60 = vsel %vm267_vm2, %v351_v52, %v350_v54  ;;  %v386_v63 = vrot.slane %v1851_v55, 2  ;;  %v387_v0 = vrot.slane %v1857_v59, 1 }
  0x1a   : > { %v342_v1 = vsel %vm270_vm3, %v341_v56, %v340_v58  ;;  %v354_v2 = vsel %vm270_vm3, %v353_v57, %v352_v60  ;;  %v377_v4 = vrot.slane %v1861_v61, 7  ;;  %v376_v5 = vsel %vm264_vm1, %v1857_v59, %v375_v62 }
  0x1b   : > { %v388_v6 = vsel %vm264_vm1, %v387_v0, %v386_v63  ;;  %v413_v24 = vrot.slane %v1861_v61, 2  ;;  %v425_v25 = vrot.slane %v1861_v61, 3  ;;  %v415_v28 = vrot.slane %v1869_v3, 1 }
  0x1c   : > { %v427_v29 = vrot.slane %v1869_v3, 2  ;;  %v446_v34 = vrot.slane %v1851_v55, 7  ;;  %v447_v35 = vrot.slane %v1857_v59, 6  ;;  %v449_v41 = vrot.slane %v1861_v61, 5 }
  0x1d   : > { %v451_v46 = vrot.slane %v1869_v3, 4  ;;  %v466_v47 = vrot.slane %v1914_v42, 5  ;;  %vm645_vm7 = vcmask 474452   ;;  %vm698_vm8 = vcmask 638452  }
  0x1e   : > { %v448_v44 = vsel %vm264_vm1, %v447_v35, %v446_v34  ;;  %vm297_vm9 = vcmask 642536   ;;  %vm308_vm10 = vcmask 806536   ;;  %vm320_vm11 = vcmask 970536  }
  0x1f   : > { %vm332_vm12 = vcmask 1044424   ;;  %vm334_vm13 = vcmask 84992   ;;  %vm346_vm14 = vcmask 248936   ;;  %vm358_vm15 = vcmask 412936  }
  0x7f   : > { %v490_v9 = vpop.permute.xlu0 %489 }
  0x8e   : > { %v513_v10 = vpop.f32.mrf.mxu0  ;;  %v538_v11 = vpop.f32.mrf.mxu1 }
  0x8f   : > { %v1778_v12 = vadd.f32 %v513_v10, %v490_v9  ;;  %v539_v13 = vadd.f32 %v538_v11, %v490_v9  ;;  %v390_v10 = vrot.slane %v1869_v3, 7 }
  0x91   : > { %700 = vrot.lane.b32.xlu1 %v539_v13, %s1655_s13  ;;  %1558 = vmatmul.msk.f32.vlgmr.msrb.gmra.mxu0 %vm492_vm0, %v539_v13 }
  0x92   : > { %946 = vrot.lane.b32.xlu0 %v1778_v12, %s1656_s14  ;;  %724 = vrot.lane.b32.xlu2 %v1778_v12, %s1655_s13 }
  0x93   : > { %1559 = vmatmul.msk.f32.vlgmr.msrb.gmra.mxu1 %vm492_vm0, %v1778_v12  ;;  %829 = vmatpush.msrb.mxu0 %v1763_v7 }
  0x94   : > { %853 = vmatpush.msrb.mxu1 %v1768_v8 }
  0x95   : > { %v563_v14 = vpop.f32.mrf.mxu2  ;;  %v588_v15 = vpop.f32.mrf.mxu3 }
  0x96   : > { %v564_v16 = vadd.f32 %v563_v14, %v490_v9  ;;  %v589_v17 = vadd.f32 %v588_v15, %v490_v9  ;;  %v379_v9 = vrot.slane %v1869_v3, 6  ;;  %v410_v14 = vrot.slane %v1851_v55, 4 }
  0x97   : > { %v411_v15 = vrot.slane %v1857_v59, 3 }
  0x98   : > { %1560 = vmatmul.msk.f32.vlgmr.msrb.gmra.mxu2 %vm492_vm0, %v589_v17  ;;  %1561 = vmatmul.msk.f32.vlgmr.msrb.gmra.mxu3 %vm492_vm0, %v564_v16 }
  0x99   : > { %810 = vrot.lane.b32.xlu1 %v539_v13, %s1657_s15  ;;  %886 = vmatpush.msrb.mxu2 %v1763_v7  ;;  %v412_v26 = vsel %vm264_vm1, %v411_v15, %v410_v14  ;;  %v1675_v15 = vmov 0.0  }
  0x9a   : > { %755 = vrot.lane.b32.xlu0 %v589_v17, %s1655_s13  ;;  %834 = vrot.lane.b32.xlu2 %v1778_v12, %s1657_s15  ;;  %v414_v32 = vsel %vm267_vm2, %v413_v24, %v412_v26 }
  0x9b   : > { %910 = vmatpush.msrb.mxu3 %v1768_v8  ;;  %v416_v39 = vsel %vm270_vm3, %v415_v28, %v414_v32  ;;  %v292_v32 = vrot.slane %v1813_v23, 7 }
  0xa1   : > { %779 = vrot.lane.b32.xlu1 %v564_v16, %s1655_s13  ;;  %s1674_s13 = smov 42  }
  0xa2   : > { %891 = vrot.lane.b32.xlu0 %v564_v16, %s1657_s15  ;;  %922 = vrot.lane.b32.xlu2 %v539_v13, %s1656_s14 }
  0xa9   : > { %1056 = vrot.lane.b32.xlu1 %v1778_v12, %s1658_s16 }
  0xaa   : > { %977 = vrot.lane.b32.xlu0 %v589_v17, %s1656_s14  ;;  %867 = vrot.lane.b32.xlu2 %v589_v17, %s1657_s15 }
  0xb1   : > { %1001 = vrot.lane.b32.xlu1 %v564_v16, %s1656_s14  ;;  %s1592_s14 = sshll.u32 %s2100_s19, 5  ;;  %s1676_s19 = smov 62  }
  0xb2   : > { %1032 = vrot.lane.b32.xlu0 %v539_v13, %s1658_s16  ;;  %1166 = vrot.lane.b32.xlu2 %v1778_v12, %s1659_s17 }
  0xb9   : > { %1087 = vrot.lane.b32.xlu1 %v589_v17, %s1658_s16 }
  0xba   : > { %1223 = vrot.lane.b32.xlu0 %v564_v16, %s1659_s17  ;;  %1111 = vrot.lane.b32.xlu2 %v564_v16, %s1658_s16 }
  0xc1   : > { %1142 = vrot.lane.b32.xlu1 %v539_v13, %s1659_s17 }
  0xc2   : > { %1309 = vrot.lane.b32.xlu0 %v589_v17, %s1660_s20  ;;  %1199 = vrot.lane.b32.xlu2 %v589_v17, %s1659_s17  ;;  %s1944_s17 = scalar_lea.vmem %s2098_s5, %s1592_s14  ;;  %s1696_s14 = smov 66  }
  0xc3   : > { %242 = vst [vmem:[%s1944_s17] sm:$0xff] %v1675_v15 }
  0xc4   : > { %246 = vst.msk [vmem:[%s1944_s17 + $0x18] sm:$0xff] %vm245_vm4, %v1675_v15  ;;  %vm408_vm4 = vcmask 19456  }
  0xc5   : > { %243 = vst [vmem:[%s1944_s17 + $0x8] sm:$0xff] %v1675_v15 }
  0xc6   : > { %244 = vst [vmem:[%s1944_s17 + $0x10] sm:$0xff] %v1675_v15 }
  0xc9   : > { %1333 = vrot.lane.b32.xlu1 %v564_v16, %s1660_s20 }
  0xca   : > { %1278 = vrot.lane.b32.xlu0 %v1778_v12, %s1660_s20  ;;  %1254 = vrot.lane.b32.xlu2 %v539_v13, %s1660_s20  ;;  %s1677_s20 = smov 61  }
  0xd1   : > { %1419 = vrot.lane.b32.xlu1 %v589_v17, %s1661_s25  ;;  %v423_v17 = vrot.slane %v1857_v59, 4 }
  0xd2   : > { %1364 = vrot.lane.b32.xlu0 %v539_v13, %s1661_s25  ;;  %1443 = vrot.lane.b32.xlu2 %v564_v16, %s1661_s25  ;;  %v389_v13 = vsel %vm267_vm2, %v1861_v61, %v388_v6  ;;  %v422_v16 = vrot.slane %v1851_v55, 5 }
  0xd3   : > { %v391_v22 = vsel %vm270_vm3, %v390_v10, %v389_v13 }
  0xd4   : > { %v424_v27 = vsel %vm264_vm1, %v423_v17, %v422_v16 }
  0xd5   : > { %v426_v33 = vsel %vm267_vm2, %v425_v25, %v424_v27 }
  0xd6   : > { %v428_v40 = vsel %vm270_vm3, %v427_v29, %v426_v33  ;;  %v288_v29 = vrot.slane %v1805_v19, 2 }
  0xd9   : > { %1388 = vrot.lane.b32.xlu1 %v1778_v12, %s1661_s25  ;;  %v378_v12 = vsel %vm267_vm2, %v377_v4, %v376_v5  ;;  %s1682_s25 = smov 105  }
  0xda   : > { %272 = vrot.lane.b32.xlu2 %v271_v36, %s1662_s26  ;;  %283 = vrot.lane.b32.xlu0 %v282_v37, %s1663_s27  ;;  %v380_v21 = vsel %vm270_vm3, %v379_v9, %v378_v12  ;;  %v1903_v36 = vld [vmem:[%s1798_s24 + $0x40] sm:$0x3]  ;;  %v462_v37 = vrot.slane %v1895_v30, 7  ;;  %s1681_s24 = smov 45   ;;  %s1683_s26 = smov 82  }
  0xdb   : > { %v464_v43 = vrot.slane %v1903_v36, 6  ;;  %s1684_s27 = smov 122  }
  0xdc   : > { %v463_v45 = vsel %vm264_vm1, %v462_v37, %v1907_v38 }
  0xe2   : > { %305 = vrot.lane.b32.xlu2 %v304_v49, %s1664_s28  ;;  %317 = vrot.lane.b32.xlu0 %v316_v50, %s1665_s29  ;;  %v450_v49 = vsel %vm267_vm2, %v449_v41, %v448_v44  ;;  %v465_v50 = vsel %vm267_vm2, %v464_v43, %v463_v45  ;;  %v325_v41 = vrot.slane %v1808_v20, 3  ;;  %v327_v43 = vrot.slane %v1813_v23, 2  ;;  %s1685_s28 = smov 34   ;;  %s1686_s29 = smov 102  }
  0xe3   : > { %v452_v51 = vsel %vm270_vm3, %v451_v46, %v450_v49  ;;  %v467_v52 = vsel %vm270_vm3, %v466_v47, %v465_v50  ;;  %v366_v49 = vrot.slane %v1861_v61, 6 }
  0xea   : > { %343 = vrot.lane.b32.xlu2 %v342_v1, %s1666_s30  ;;  %355 = vrot.lane.b32.xlu0 %v354_v2, %s1667_s6  ;;  %s1687_s30 = smov 14   ;;  %s1688_s6 = smov 74  }
  0xec   : > { %v725_v11 = vpop.permute.xlu2 %724 }
  0xed   : > { %1563 = vmatmul.msk.f32.vlgmr.msra.gmra.mxu1 %vm492_vm0, %v725_v11 }
  0xee   : > { %965 = vmatpush.msra.mxu1 %v1768_v8 }
  0xf2   : > { %381 = vrot.lane.b32.xlu2 %v380_v21, %s1668_s7  ;;  %392 = vrot.lane.b32.xlu0 %v391_v22, %s1669_s8  ;;  %s1689_s7 = smov 54   ;;  %s1690_s8 = smov 114  }
  0xf4   : > { %v835_v31 = vpop.permute.xlu2 %834 }
  0xf5   : > { %1567 = vmatmul.msk.f32.vlgmr.msrb.gmra.mxu1 %vm492_vm0, %v835_v31  ;;  %v289_v31 = vrot.slane %v1802_v18, 1 }
  0xf6   : > { %1075 = vmatpush.msrb.mxu1 %v1768_v8 }
  0xf7   : > { %v290_v33 = vsel %vm264_vm1, %v289_v31, %v288_v29 }
  0xf8   : > { %v291_v34 = vsel %vm267_vm2, %v1808_v20, %v290_v33  ;;  %v364_v20 = vrot.slane %v1857_v59, 7 }
  0xf9   : > { %v293_v35 = vsel %vm270_vm3, %v292_v32, %v291_v34 }
  0xfa   : > { %417 = vrot.lane.b32.xlu2 %v416_v39, %s1670_s9  ;;  %429 = vrot.lane.b32.xlu0 %v428_v40, %s1671_s10  ;;  %v365_v50 = vsel %vm264_vm1, %v364_v20, %v1851_v55  ;;  %s1691_s9 = smov 6   ;;  %s1692_s10 = smov 94  }
  0xfb   : > { %294 = vrot.lane.b32.xlu1 %v293_v35, %s1677_s20 }
  0xfc   : > { %v923_v48 = vpop.permute.xlu2 %922 }
 0x102   : > { %453 = vrot.lane.b32.xlu2 %v452_v51, %s1672_s11  ;;  %468 = vrot.lane.b32.xlu0 %v467_v52, %s1673_s12  ;;  %v368_v51 = vrot.slane %v1869_v3, 5  ;;  %v367_v52 = vsel %vm267_vm2, %v366_v49, %v365_v50  ;;  %s1693_s11 = smov 26   ;;  %s1694_s12 = smov 46  }
 0x103   : > { %v701_v53 = vpop.permute.xlu1 %700 }
 0x104   : > { %v947_v54 = vpop.permute.xlu0 %946  ;;  %v868_v56 = vpop.permute.xlu2 %867  ;;  %1562 = vmatmul.msk.f32.vlgmr.msra.gmra.mxu0 %vm492_vm0, %v701_v53  ;;  %v369_v53 = vsel %vm270_vm3, %v368_v51, %v367_v52 }
 0x105   : > { %1571 = vmatmul.msk.f32.vlgmr.msra.gmra.mxu1 %vm492_vm0, %v947_v54  ;;  %941 = vmatpush.msra.mxu0 %v1763_v7 }
 0x106   : > { %1185 = vmatpush.msra.mxu1 %v1768_v8 }
 0x10b   : > { %v811_v57 = vpop.permute.xlu1 %810 }
 0x10c   : > { %v756_v58 = vpop.permute.xlu0 %755  ;;  %v1167_v60 = vpop.permute.xlu2 %1166  ;;  %1566 = vmatmul.msk.f32.vlgmr.msrb.gmra.mxu0 %vm492_vm0, %v811_v57  ;;  %v398_v57 = vrot.slane %v1857_v59, 2 }
 0x10d   : > { %1564 = vmatmul.msk.f32.vlgmr.msra.gmra.mxu2 %vm492_vm0, %v756_v58  ;;  %1051 = vmatpush.msrb.mxu0 %v1763_v7  ;;  %v400_v58 = vrot.slane %v1861_v61, 1 }
 0x10e   : > { %v614_v62 = vpop.f32.mrf.mxu0  ;;  %996 = vmatpush.msra.mxu2 %v1763_v7 }
 0x110   : > { %v637_v63 = vpop.f32.mrf.mxu1 }
 0x111   : > { %v638_v0 = vadd.f32 %v637_v63, %v614_v62  ;;  %v435_v62 = vrot.slane %v1857_v59, 5 }
 0x113   : > { %v641_v1 = vrot.slane %v638_v0, 4  ;;  %v780_v2 = vpop.permute.xlu1 %779 }
 0x114   : > { %v892_v4 = vpop.permute.xlu0 %891  ;;  %v1112_v5 = vpop.permute.xlu2 %1111  ;;  %1565 = vmatmul.msk.f32.vlgmr.msra.gmra.mxu3 %vm492_vm0, %v780_v2  ;;  %1570 = vmatmul.msk.f32.vlgmr.msra.gmra.mxu0 %vm492_vm0, %v923_v48  ;;  %v437_v2 = vrot.slane %v1861_v61, 4 }
 0x115   : > { %642 = vrot.lane.b32.xlu2 %v641_v1, %s1674_s13  ;;  %1568 = vmatmul.msk.f32.vlgmr.msrb.gmra.mxu2 %vm492_vm0, %v868_v56  ;;  %v397_v56 = vrot.slane %v1851_v55, 3  ;;  %s1695_s13 = smov 86  }
 0x116   : > { %1020 = vmatpush.msra.mxu3 %v1768_v8  ;;  %1106 = vmatpush.msrb.mxu2 %v1763_v7 }
 0x117   : > { %1161 = vmatpush.msra.mxu0 %v1763_v7  ;;  %v399_v63 = vsel %vm264_vm1, %v398_v57, %v397_v56 }
 0x118   : > { %v401_v0 = vsel %vm267_vm2, %v400_v58, %v399_v63 }
 0x119   : > { %v402_v1 = vsel %vm270_vm3, %v1869_v3, %v401_v0 }
 0x11b   : > { %v667_v6 = vpop.f32.mrf.mxu2  ;;  %v690_v9 = vpop.f32.mrf.mxu3 }
 0x11c   : > { %v691_v10 = vadd.f32 %v690_v9, %v667_v6  ;;  %v1057_v11 = vpop.permute.xlu1 %1056  ;;  %v978_v12 = vpop.permute.xlu0 %977  ;;  %1569 = vmatmul.msk.f32.vlgmr.msrb.gmra.mxu3 %vm492_vm0, %v892_v4  ;;  %v473_v9 = vrot.slane %v1907_v38, 1 }
 0x11d   : > { %v1200_v13 = vpop.permute.xlu2 %1199  ;;  %1572 = vmatmul.msk.f32.vlgmr.msra.gmra.mxu2 %vm492_vm0, %v978_v12  ;;  %1575 = vmatmul.msk.f32.vlgmr.msrb.gmra.mxu1 %vm492_vm0, %v1057_v11  ;;  %v475_v11 = vrot.slane %v1903_v36, 7 }
 0x11e   : > { %v694_v14 = vrot.slane %v691_v10, 4  ;;  %1130 = vmatpush.msrb.mxu3 %v1768_v8  ;;  %1218 = vmatpush.msra.mxu2 %v1763_v7  ;;  %v474_v61 = vsel %vm264_vm1, %v1895_v30, %v473_v9 }
 0x11f   : > { %1297 = vmatpush.msrb.mxu1 %v1768_v8 }
 0x120   : > { %695 = vrot.lane.b32.xlu0 %v694_v14, %s1676_s19 }
 0x124   : > { %v1002_v16 = vpop.permute.xlu1 %1001  ;;  %v1033_v17 = vpop.permute.xlu0 %1032 }
 0x125   : > { %v1255_v21 = vpop.permute.xlu2 %1254  ;;  %1573 = vmatmul.msk.f32.vlgmr.msra.gmra.mxu3 %vm492_vm0, %v1002_v16  ;;  %1574 = vmatmul.msk.f32.vlgmr.msrb.gmra.mxu0 %vm492_vm0, %v1033_v17 }
 0x126   : > { %1579 = vmatmul.msk.f32.vlgmr.msra.gmra.mxu1 %vm492_vm0, %v1167_v60  ;;  %1242 = vmatpush.msra.mxu3 %v1768_v8  ;;  %v434_v60 = vrot.slane %v1851_v55, 6 }
 0x127   : > { %1273 = vmatpush.msrb.mxu0 %v1763_v7  ;;  %1407 = vmatpush.msra.mxu1 %v1768_v8 }
 0x128   : > { %v436_v4 = vsel %vm264_vm1, %v435_v62, %v434_v60 }
 0x129   : > { %v438_v6 = vsel %vm267_vm2, %v437_v2, %v436_v4 }
 0x12c   : > { %v1088_v22 = vpop.permute.xlu1 %1087  ;;  %v1224_v24 = vpop.permute.xlu0 %1223 }
 0x12d   : > { %v1444_v25 = vpop.permute.xlu2 %1443  ;;  %1576 = vmatmul.msk.f32.vlgmr.msrb.gmra.mxu2 %vm492_vm0, %v1088_v22  ;;  %1577 = vmatmul.msk.f32.vlgmr.msrb.gmra.mxu3 %vm492_vm0, %v1112_v5  ;;  %v439_v5 = vrot.slane %v1869_v3, 3  ;;  %v477_v3 = vrot.slane %v1914_v42, 6 }
 0x12e   : > { %1328 = vmatpush.msrb.mxu2 %v1763_v7  ;;  %1352 = vmatpush.msrb.mxu3 %v1768_v8 }
 0x12f   : > { %v440_v59 = vsel %vm270_vm3, %v439_v5, %v438_v6 }
 0x134   : > { %v1143_v26 = vpop.permute.xlu1 %1142  ;;  %v1310_v27 = vpop.permute.xlu0 %1309 }
 0x135   : > { %1578 = vmatmul.msk.f32.vlgmr.msra.gmra.mxu0 %vm492_vm0, %v1143_v26  ;;  %1580 = vmatmul.msk.f32.vlgmr.msra.gmra.mxu2 %vm492_vm0, %v1200_v13  ;;  %v273_v28 = vpop.permute.xlu2 %272  ;;  %v476_v13 = vsel %vm267_vm2, %v475_v11, %v474_v61 }
 0x136   : > { %1581 = vmatmul.msk.f32.vlgmr.msra.gmra.mxu3 %vm492_vm0, %v1224_v24  ;;  %276 = vst.msk [vmem:[%s1944_s17] sm:$0xf] %vm275_vm5, %v273_v28  ;;  %1383 = vmatpush.msra.mxu0 %v1763_v7  ;;  %v478_v14 = vsel %vm270_vm3, %v477_v3, %v476_v13  ;;  %vm420_vm5 = vcmask 183336  }
 0x137   : > { %1438 = vmatpush.msra.mxu2 %v1763_v7  ;;  %1462 = vmatpush.msra.mxu3 %v1768_v8  ;;  %v322_v7 = vrot.slane %v1805_v19, 5  ;;  %v323_v8 = vrot.slane %v1802_v18, 4 }
 0x139   : > { %v324_v44 = vsel %vm264_vm1, %v323_v8, %v322_v7  ;;  %vm384_vm1 = vcmask 740936  }
 0x13a   : > { %v326_v45 = vsel %vm267_vm2, %v325_v41, %v324_v44  ;;  %vm395_vm2 = vcmask 904936  }
 0x13b   : > { %v328_v46 = vsel %vm270_vm3, %v327_v43, %v326_v45  ;;  %vm406_vm3 = vcmask 1044360  }
 0x13c   : > { %v1334_v37 = vpop.permute.xlu1 %1333  ;;  %v1279_v39 = vpop.permute.xlu0 %1278  ;;  %329 = vrot.lane.b32.xlu1 %v328_v46, %s1678_s21 }
 0x13d   : > { %1582 = vmatmul.msk.f32.vlgmr.msrb.gmra.mxu0 %vm492_vm0, %v1255_v21  ;;  %1583 = vmatmul.msk.f32.vlgmr.msrb.gmra.mxu1 %vm492_vm0, %v1279_v39  ;;  %v1982_v40 = vpop.permute.xlu2 %305 }
 0x13e   : > { %1584 = vmatmul.msk.f32.vlgmr.msrb.gmra.mxu2 %vm492_vm0, %v1310_v27  ;;  %1585 = vmatmul.msk.f32.vlgmr.msrb.gmra.mxu3 %vm492_vm0, %v1334_v37 }
 0x144   : > { %v1420_v19 = vpop.permute.xlu1 %1419  ;;  %v1365_v47 = vpop.permute.xlu0 %1364  ;;  %370 = vrot.lane.b32.xlu1 %v369_v53, %s1679_s22 }
 0x145   : > { %1586 = vmatmul.msk.f32.vlgmr.msra.gmra.mxu0 %vm492_vm0, %v1365_v47  ;;  %v1996_v18 = vpop.permute.xlu2 %343 }
 0x146   : > { %1588 = vmatmul.msk.f32.vlgmr.msra.gmra.mxu2 %vm492_vm0, %v1420_v19  ;;  %1589 = vmatmul.msk.f32.vlgmr.msra.gmra.mxu3 %vm492_vm0, %v1444_v25 }
 0x14c   : > { %v1389_v23 = vpop.permute.xlu1 %1388  ;;  %v284_v48 = vpop.permute.xlu0 %283  ;;  %403 = vrot.lane.b32.xlu1 %v402_v1, %s1680_s23 }
 0x14d   : > { %1587 = vmatmul.msk.f32.vlgmr.msra.gmra.mxu1 %vm492_vm0, %v1389_v23  ;;  %287 = vst.msk [vmem:[%s1944_s17] sm:$0xf] %vm286_vm6, %v284_v48  ;;  %v2007_v54 = vpop.permute.xlu2 %381  ;;  %vm373_vm0 = vcmask 576936   ;;  %vm432_vm6 = vcmask 347336  }
 0x154   : > { %v2026_v10 = vpop.permute.xlu0 %317  ;;  %441 = vrot.lane.b32.xlu1 %v440_v59, %s1681_s24 }
 0x155   : > { %v2022_v55 = vpop.permute.xlu2 %417 }
 0x15c   : > { %479 = vrot.lane.b32.xlu1 %v478_v14, %s1682_s25  ;;  %v2036_v38 = vpop.permute.xlu0 %355 }
 0x15d   : > { %v2032_v12 = vpop.permute.xlu2 %453 }
 0x164   : > { %v2039_v16 = vpop.permute.xlu0 %392 }
 0x16a   : > { %v745_v36 = vpop.f32.mrf.mxu1 }
 0x16c   : > { %v2041_v30 = vpop.permute.xlu0 %429 }
 0x16d   : > { %v295_v49 = vpop.permute.xlu1 %294 }
 0x16e   : > { %298 = vst.msk [vmem:[%s1944_s17] sm:$0xf] %vm297_vm9, %v295_v49  ;;  %vm471_vm9 = vcmask 839336  }
 0x16f   : > { %v643_v15 = vpop.permute.xlu2 %642  ;;  %309 = vst.msk [vmem:[%s1944_s17] sm:$0xf] %vm308_vm10, %v1982_v40  ;;  %vm482_vm10 = vcmask 1003336  }
 0x170   : > { %646 = vst.msk [vmem:[%s1944_s17] sm:$0xf0] %vm645_vm7, %v643_v15  ;;  %vm444_vm7 = vcmask 511336  }
 0x171   : > { %321 = vst.msk [vmem:[%s1944_s17] sm:$0xf] %vm320_vm11, %v2026_v10  ;;  %vm753_vm11 = vcmask 802452  }
 0x172   : > { %v855_v24 = vpop.f32.mrf.mxu1 }
 0x174   : > { %v2043_v22 = vpop.permute.xlu0 %468 }
 0x181   : > { %v721_v17 = vpop.f32.mrf.mxu0 }
 0x182   : > { %v746_v42 = vadd.f32 %v745_v36, %v721_v17  ;;  %v967_v28 = vpop.f32.mrf.mxu1 }
 0x184   : > { %v749_v21 = vrot.slane %v746_v42, 4 }
 0x186   : > { %750 = vrot.lane.b32.xlu2 %v749_v21, %s1683_s26 }
 0x189   : > { %v831_v25 = vpop.f32.mrf.mxu0 }
 0x18a   : > { %v856_v26 = vadd.f32 %v855_v24, %v831_v25 }
 0x18c   : > { %v859_v27 = vrot.slane %v856_v26, 4 }
 0x18e   : > { %860 = vrot.lane.b32.xlu1 %v859_v27, %s1684_s27 }
 0x190   : > { %v776_v33 = vpop.f32.mrf.mxu2 }
 0x191   : > { %v943_v29 = vpop.f32.mrf.mxu0 }
 0x192   : > { %v696_v31 = vpop.permute.xlu0 %695  ;;  %v968_v32 = vadd.f32 %v967_v28, %v943_v29 }
 0x193   : > { %699 = vst.msk [vmem:[%s1944_s17] sm:$0xf0] %vm698_vm8, %v696_v31  ;;  %vm456_vm8 = vcmask 675336  }
 0x194   : > { %v971_v34 = vrot.slane %v968_v32, 4 }
 0x196   : > { %972 = vrot.lane.b32.xlu1 %v971_v34, %s1685_s28 }
 0x197   : > { %v800_v35 = vpop.f32.mrf.mxu3 }
 0x198   : > { %v801_v37 = vadd.f32 %v800_v35, %v776_v33  ;;  %v888_v7 = vpop.f32.mrf.mxu2 }
 0x19a   : > { %v804_v39 = vrot.slane %v801_v37, 4  ;;  %v1077_v43 = vpop.f32.mrf.mxu1 }
 0x19c   : > { %805 = vrot.lane.b32.xlu2 %v804_v39, %s1686_s29 }
 0x19f   : > { %v912_v8 = vpop.f32.mrf.mxu3 }
 0x1a0   : > { %v913_v41 = vadd.f32 %v912_v8, %v888_v7  ;;  %v998_v47 = vpop.f32.mrf.mxu2 }
 0x1a2   : > { %v916_v44 = vrot.slane %v913_v41, 4  ;;  %v1053_v45 = vpop.f32.mrf.mxu0 }
 0x1a3   : > { %v1078_v46 = vadd.f32 %v1077_v43, %v1053_v45  ;;  %v1187_v52 = vpop.f32.mrf.mxu1 }
 0x1a4   : > { %917 = vrot.lane.b32.xlu2 %v916_v44, %s1687_s30 }
 0x1a5   : > { %v1081_v19 = vrot.slane %v1078_v46, 4 }
 0x1a7   : > { %1082 = vrot.lane.b32.xlu0 %v1081_v19, %s1688_s6 }
 0x1a8   : > { %v1022_v20 = vpop.f32.mrf.mxu3 }
 0x1a9   : > { %v1023_v23 = vadd.f32 %v1022_v20, %v998_v47 }
 0x1ab   : > { %v1026_v48 = vrot.slane %v1023_v23, 4 }
 0x1ae   : > { %v330_v58 = vpop.permute.xlu1 %329 }
 0x1af   : > { %1027 = vrot.lane.b32.xlu0 %v1026_v48, %s1689_s7  ;;  %333 = vst.msk [vmem:[%s1944_s17] sm:$0xf] %vm332_vm12, %v330_v58  ;;  %vm808_vm12 = vcmask 966452  }
 0x1b0   : > { %v1108_v50 = vpop.f32.mrf.mxu2  ;;  %v1132_v51 = vpop.f32.mrf.mxu3  ;;  %335 = vst.msk [vmem:[%s1944_s17 + $0x8] sm:$0xf] %vm334_vm13, %v330_v58  ;;  %vm863_vm13 = vcmask 1048532  }
 0x1b1   : > { %v1133_v62 = vadd.f32 %v1132_v51, %v1108_v50  ;;  %347 = vst.msk [vmem:[%s1944_s17 + $0x8] sm:$0xf] %vm346_vm14, %v1996_v18  ;;  %vm865_vm14 = vcmask 80900  }
 0x1b2   : > { %v1163_v53 = vpop.f32.mrf.mxu0  ;;  %359 = vst.msk [vmem:[%s1944_s17 + $0x8] sm:$0xf] %vm358_vm15, %v2036_v38  ;;  %vm920_vm15 = vcmask 244852  }
 0x1b3   : > { %v1188_v56 = vadd.f32 %v1187_v52, %v1163_v53  ;;  %v1136_v5 = vrot.slane %v1133_v62, 4 }
 0x1b5   : > { %v1191_v57 = vrot.slane %v1188_v56, 4 }
 0x1b6   : > { %v371_v10 = vpop.permute.xlu1 %370 }
 0x1b7   : > { %1192 = vrot.lane.b32.xlu0 %v1191_v57, %s1690_s8  ;;  %374 = vst.msk [vmem:[%s1944_s17 + $0x8] sm:$0xf] %vm373_vm0, %v371_v10  ;;  %vm975_vm0 = vcmask 408852  }
 0x1b8   : > { %v1220_v60 = vpop.f32.mrf.mxu2  ;;  %385 = vst.msk [vmem:[%s1944_s17 + $0x8] sm:$0xf] %vm384_vm1, %v2007_v54  ;;  %vm1030_vm1 = vcmask 572852  }
 0x1b9   : > { %v1244_v40 = vpop.f32.mrf.mxu3  ;;  %396 = vst.msk [vmem:[%s1944_s17 + $0x8] sm:$0xf] %vm395_vm2, %v2039_v16  ;;  %vm1085_vm2 = vcmask 736852  }
 0x1ba   : > { %v1245_v63 = vadd.f32 %v1244_v40, %v1220_v60  ;;  %v1275_v0 = vpop.f32.mrf.mxu0  ;;  %v1299_v1 = vpop.f32.mrf.mxu1 }
 0x1bb   : > { %v1300_v2 = vadd.f32 %v1299_v1, %v1275_v0 }
 0x1bc   : > { %v1248_v4 = vrot.slane %v1245_v63, 4 }
 0x1bd   : > { %v1303_v6 = vrot.slane %v1300_v2, 4 }
 0x1be   : > { %1249 = vrot.lane.b32.xlu2 %v1248_v4, %s1691_s9  ;;  %v404_v15 = vpop.permute.xlu1 %403 }
 0x1bf   : > { %1137 = vrot.lane.b32.xlu0 %v1136_v5, %s1692_s10  ;;  %1304 = vrot.lane.b32.xlu1 %v1303_v6, %s1693_s11  ;;  %407 = vst.msk [vmem:[%s1944_s17 + $0x8] sm:$0xf] %vm406_vm3, %v404_v15  ;;  %vm1197_vm3 = vcmask 15364  }
 0x1c0   : > { %409 = vst.msk [vmem:[%s1944_s17 + $0x10] sm:$0xf] %vm408_vm4, %v404_v15  ;;  %vm1252_vm4 = vcmask 179252  }
 0x1c1   : > { %v1330_v59 = vpop.f32.mrf.mxu2  ;;  %v1354_v9 = vpop.f32.mrf.mxu3  ;;  %421 = vst.msk [vmem:[%s1944_s17 + $0x10] sm:$0xf] %vm420_vm5, %v2022_v55  ;;  %vm1140_vm5 = vcmask 900852  }
 0x1c2   : > { %v1355_v18 = vadd.f32 %v1354_v9, %v1330_v59  ;;  %v1385_v11 = vpop.f32.mrf.mxu0  ;;  %433 = vst.msk [vmem:[%s1944_s17 + $0x10] sm:$0xf] %vm432_vm6, %v2041_v30  ;;  %vm1195_vm6 = vcmask 1048468  }
 0x1c4   : > { %v1358_v61 = vrot.slane %v1355_v18, 4 }
 0x1c6   : > { %v442_v17 = vpop.permute.xlu1 %441 }
 0x1c7   : > { %1359 = vrot.lane.b32.xlu1 %v1358_v61, %s1694_s12  ;;  %445 = vst.msk [vmem:[%s1944_s17 + $0x10] sm:$0xf] %vm444_vm7, %v442_v17  ;;  %vm1307_vm7 = vcmask 343252  }
 0x1c8   : > { %457 = vst.msk [vmem:[%s1944_s17 + $0x10] sm:$0xf] %vm456_vm8, %v2032_v12  ;;  %vm1362_vm8 = vcmask 507252  }
 0x1c9   : > { %v1440_v3 = vpop.f32.mrf.mxu2  ;;  %v1464_v13 = vpop.f32.mrf.mxu3  ;;  %472 = vst.msk [vmem:[%s1944_s17 + $0x10] sm:$0xf] %vm471_vm9, %v2043_v22  ;;  %vm1417_vm9 = vcmask 671252  }
 0x1ca   : > { %v1465_v14 = vadd.f32 %v1464_v13, %v1440_v3  ;;  %v1409_v38 = vpop.f32.mrf.mxu1 }
 0x1cb   : > { %v1410_v36 = vadd.f32 %v1409_v38, %v1385_v11 }
 0x1cc   : > { %v1468_v54 = vrot.slane %v1465_v14, 4 }
 0x1cd   : > { %v1413_v16 = vrot.slane %v1410_v36, 4 }
 0x1ce   : > { %1469 = vrot.lane.b32.xlu2 %v1468_v54, %s1695_s13  ;;  %v480_v55 = vpop.permute.xlu1 %479 }
 0x1cf   : > { %1414 = vrot.lane.b32.xlu1 %v1413_v16, %s1696_s14  ;;  %483 = vst.msk [vmem:[%s1944_s17 + $0x10] sm:$0xf] %vm482_vm10, %v480_v55  ;;  %vm1472_vm10 = vcmask 835252  }
 0x1e0   : > { %v751_v30 = vpop.permute.xlu2 %750 }
 0x1e1   : > { %754 = vst.msk [vmem:[%s1944_s17] sm:$0xf0] %vm753_vm11, %v751_v30 }
 0x1f6   : > { %v806_v42 = vpop.permute.xlu2 %805 }
 0x1f7   : > { %809 = vst.msk [vmem:[%s1944_s17] sm:$0xf0] %vm808_vm12, %v806_v42 }
 0x1fe   : > { %v918_v21 = vpop.permute.xlu2 %917 }
 0x200   : > { %v861_v12 = vpop.permute.xlu1 %860 }
 0x201   : > { %864 = vst.msk [vmem:[%s1944_s17] sm:$0xf0] %vm863_vm13, %v861_v12 }
 0x202   : > { %866 = vst.msk [vmem:[%s1944_s17 + $0x8] sm:$0xf0] %vm865_vm14, %v861_v12 }
 0x203   : > { %921 = vst.msk [vmem:[%s1944_s17 + $0x8] sm:$0xf0] %vm920_vm15, %v918_v21 }
 0x208   : > { %v973_v22 = vpop.permute.xlu1 %972 }
 0x209   : > { %976 = vst.msk [vmem:[%s1944_s17 + $0x8] sm:$0xf0] %vm975_vm0, %v973_v22 }
 0x218   : > { %v1250_v27 = vpop.permute.xlu2 %1249 }
 0x219   : > { %v1083_v24 = vpop.permute.xlu0 %1082 }
 0x221   : > { %v1028_v25 = vpop.permute.xlu0 %1027 }
 0x222   : > { %1031 = vst.msk [vmem:[%s1944_s17 + $0x8] sm:$0xf0] %vm1030_vm1, %v1028_v25 }
 0x223   : > { %1086 = vst.msk [vmem:[%s1944_s17 + $0x8] sm:$0xf0] %vm1085_vm2, %v1083_v24 }
 0x228   : > { %v1470_v33 = vpop.permute.xlu2 %1469 }
 0x229   : > { %v1193_v26 = vpop.permute.xlu0 %1192 }
 0x22a   : > { %1198 = vst.msk [vmem:[%s1944_s17 + $0x10] sm:$0xf0] %vm1197_vm3, %v1193_v26 }
 0x22b   : > { %1253 = vst.msk [vmem:[%s1944_s17 + $0x10] sm:$0xf0] %vm1252_vm4, %v1250_v27 }
 0x231   : > { %v1138_v28 = vpop.permute.xlu0 %1137  ;;  %v1305_v29 = vpop.permute.xlu1 %1304 }
 0x232   : > { %1141 = vst.msk [vmem:[%s1944_s17 + $0x8] sm:$0xf0] %vm1140_vm5, %v1138_v28 }
 0x233   : > { %1196 = vst.msk [vmem:[%s1944_s17 + $0x8] sm:$0xf0] %vm1195_vm6, %v1193_v26 }
 0x234   : > { %1308 = vst.msk [vmem:[%s1944_s17 + $0x10] sm:$0xf0] %vm1307_vm7, %v1305_v29 }
 0x239   : > { %v1360_v31 = vpop.permute.xlu1 %1359 }
 0x23a   : > { %1363 = vst.msk [vmem:[%s1944_s17 + $0x10] sm:$0xf0] %vm1362_vm8, %v1360_v31 }
 0x241   : > { %v1415_v32 = vpop.permute.xlu1 %1414 }
 0x242   : > { %1418 = vst.msk [vmem:[%s1944_s17 + $0x10] sm:$0xf0] %vm1417_vm9, %v1415_v32 }
 0x243   : > { %1473 = vst.msk [vmem:[%s1944_s17 + $0x10] sm:$0xf0] %vm1472_vm10, %v1470_v33 }
 0x244 PF: > { %s15_s18 = sadd.s32 1, %s1652_s18  }
 0x245   : > { %p12_p4 = scmp.ge.s32.totalorder %s15_s18, 4  }
 0x247   :  { %14 = sbr.rel (!%p12_p4) target bundleno = 1 (0x1), region = 77 }

// kernel: up_forward.6
= control target key start
LH: loop header
LB: loop body
LE: loop exit
PB: predicated region body
PF: predicated region fallthrough
CT: control target
= control target key end

     0   :  { %s1520_s27 = smov 0   ;;  %s1722_s0 = inlined_call_operand.vmem [shape: f32[2,4,420], index: 0, kind: input, shape index: {}]   ;;  %s1723_s1 = inlined_call_operand.vmem [shape: f32[1,420], index: 1, kind: input, shape index: {}]   ;;  %s1724_s2 = inlined_call_operand.vmem [shape: f32[3,3,4,4], index: 2, kind: input, shape index: {}]   ;;  %s1725_s3 = inlined_call_operand.vmem [shape: f32[4,1], index: 3, kind: input, shape index: {}]   ;;  %s1726_s4 = inlined_call_operand.vmem [shape: f32[4,1], index: 4, kind: input, shape index: {}]   ;;  %s1727_s5 = inlined_call_operand.vmem [shape: f32[4,1], index: 5, kind: input, shape index: {}]   ;;  %s1728_s6 = inlined_call_operand.vmem [shape: f32[2,4,420], index: 6, kind: output, shape index: {0}]   ;;  %s1729_s7 = inlined_call_operand.vmem [shape: f32[2,4,1], index: 7, kind: output, shape index: {1}]   ;;  %s1730_s8 = inlined_call_operand.vmem [shape: f32[2,4,1], index: 8, kind: output, shape index: {2}]  }
   0x1 LB: > { %s1356_s28 = sadd.s32 4294967295, %s1461_s27   ;;  %p1360_p0 = scmp.ge.s32.totalorder %s1461_s27, 1  ;;  %s1461_s27 = sphi %s1520_s27, %s19_s27  }
   0x2   : > { %p267_p1 = scmp.lt.s32.totalorder %s1461_s27, 3 }
   0x4   : > { %p268_p2 = pnand %p1360_p0, %p267_p1 }
   0x5   : > { %p309_p3 = scmp.lt.s32.totalorder (!%p268_p2), %s1356_s28, 1  ;;  %s1465_s17 = smov (!%p268_p2), 127  }
   0x6   : > { %271 = sbr.rel (%p268_p2) target bundleno = 609 (0x261), region = 44  ;;  %s1466_s18 = smov (!%p268_p2), 126  }
   0x7   : > { %s1467_s19 = smov (!%p268_p2), 108   ;;  %s1468_s20 = smov (!%p268_p2), 107  }
   0x8   : > { %s1469_s21 = smov (!%p268_p2), 106   ;;  %s1470_s22 = smov (!%p268_p2), 88  }
   0x9   : > { %s1471_s23 = smov (!%p268_p2), 87   ;;  %s1472_s24 = smov (!%p268_p2), 86  }
   0xb   : > { %v330_v0 = vld [vmem:[%s1726_s4] sm:$0xf]  ;;  %v1463_v1 = vmov 0   ;;  %s1732_s28 = smov (!%p309_p3, %s1356_s28), 1  ;;  %v1464_v3 = vmov 839922192  }
   0xc   : > { %1453 = vset.pattern.permute.xlu0 %v1463_v1  ;;  %1454 = vset.pattern.permute.xlu2 %v1463_v1  ;;  %v342_v2 = vld [vmem:[%s1727_s5] sm:$0xf]  ;;  %v336_v4 = vunpack.c.l.s4 %v1464_v3  ;;  %s1431_s11 = sshll.u32 %s1732_s28, 4  ;;  %vm363_vm0 = vcmask 1043456   ;;  %vm390_vm1 = vcmask 31744   ;;  %vm387_vm2 = vcmask 1039360  }
   0xd   : > { %333 = vperm.xlu0 %1453, %v330_v0   ;;  %v1540_v7 = vld [vmem:[%s1723_s1] sm:$0xf]  ;;  %s313_s16 = scalar_lea.vmem %s1722_s0, %s1431_s11  ;;  %v1367_v63 = vld [vmem:[%s1724_s2 + $0x4] sm:$0xf]  ;;  %vm549_vm3 = vcmask 1031168   ;;  %vm638_vm4 = vcmask 883712   ;;  %s1696_s30 = scalar_lea.vmem %s1728_s6, %s1431_s11 }
   0xe   : > { %v337_v6 = vunpack.c.0.s8 %v336_v4  ;;  %v358_v8 = vperm.slane %v1540_v7, 1  ;;  %v360_v9 = vperm.slane %v1540_v7, 3  ;;  %v327_v11 = vld [vmem:[%s313_s16] sm:$0xff]  ;;  %v328_v12 = vld [vmem:[%s313_s16 + $0x8] sm:$0xff]  ;;  %v357_v14 = vperm.slane %v1540_v7, 0  ;;  %s1474_s11 = smov 21  }
   0xf   : > { %v359_v15 = vperm.slane %v1540_v7, 2  ;;  %v370_v60 = vld [vmem:[%s1724_s2] sm:$0xf]  ;;  %vm727_vm5 = vcmask 875520   ;;  %vm816_vm6 = vcmask 867328   ;;  %vm908_vm7 = vcmask 719872  }
  0x10   : > { %v361_v16 = vrot.slane %v358_v8, 4  ;;  %v362_v17 = vrot.slane %v360_v9, 4  ;;  %vm1001_vm8 = vcmask 711680   ;;  %vm1094_vm9 = vcmask 703488   ;;  %v1422_v7 = vld [vmem:[%s1724_s2 + $0x20] sm:$0xf] }
  0x11   : > { %vm1196_vm10 = vcmask 846848   ;;  %vm1215_vm11 = vcmask 293892   ;;  %vm1233_vm13 = vcmask 1043624   ;;  %vm1234_vm14 = vcmask 1047556   ;;  %s1365_s9 = sshll.u32 %s1732_s28, 2 }
  0x12   : > { %v364_v23 = vsel %vm363_vm0, %v357_v14, %v361_v16  ;;  %v365_v24 = vsel %vm363_vm0, %v359_v15, %v362_v17  ;;  %vm1216_vm12 = vmor %vm1215_vm11, %vm363_vm0  ;;  %vm1228_vm15 = vcmask 171008   ;;  %s322_s13 = scalar_lea.vmem %s1729_s7, %s1365_s9  ;;  %s326_s16 = scalar_lea.vmem %s1730_s8, %s1365_s9 }
  0x15   : > { %345 = vperm.xlu0 %1453, %v342_v2  }
  0x7f   : > { %v334_v5 = vpop.permute.xlu0 %333 }
  0x80   : > { %v338_v10 = vperm.slane %v334_v5, %v337_v6 }
  0x82   : > { %v340_v18 = vmul.f32 %v338_v10, %v327_v11  ;;  %v341_v19 = vmul.f32 %v338_v10, %v328_v12 }
  0x87   : > { %v346_v13 = vpop.permute.xlu0 %345 }
  0x88   : > { %v350_v20 = vperm.slane %v346_v13, %v337_v6  ;;  %v1380_v6 = vld [vmem:[%s1724_s2 + $0x8] sm:$0xf] }
  0x8a   : > { %v352_v21 = vadd.f32 %v350_v20, %v340_v18  ;;  %v353_v22 = vadd.f32 %v350_v20, %v341_v19  ;;  %v1394_v20 = vld [vmem:[%s1724_s2 + $0x10] sm:$0xf] }
  0x8c   : > { %v354_v25 = vmax.f32 %v352_v21, 0.0  ;;  %v355_v26 = vmax.f32 %v353_v22, 0.0 }
  0x8e   : > { %v1559_v27 = vmul.f32 %v364_v23, %v354_v25  ;;  %v1561_v28 = vmul.f32 %v365_v24, %v355_v26  ;;  %v1401_v26 = vld [vmem:[%s1724_s2 + $0x14] sm:$0xf] }
  0x90   : > { %375 = vst [vmem:[#allocation1] ss:$2 sm:$0xff] %v1559_v27 }
  0x91   : > { %377 = vst [vmem:[#allocation1 + $0x10] ss:$2 sm:$0xff] %v1561_v28 }
  0x97   : > { %v379_v29 = vld.sshfl [vmem:[#allocation1 + $0x8] sm:$0xff pattern:$0x75316420]  ;;  %v378_v30 = vld.sshfl [vmem:[#allocation1] sm:$0xff pattern:$0x75316420] }
  0x98   : > { %v380_v31 = vld.sshfl [vmem:[#allocation1 + $0x10] sm:$0xff pattern:$0x75316420]  ;;  %383 = vrot.lane.b32.xlu2 %v379_v29, %s1465_s17  ;;  %460 = vst [vmem:[#allocation1] ss:$2 sm:$0xff] %v1559_v27 }
  0x99   : > { %385 = vrot.lane.b32.xlu1 %v380_v31, %s1465_s17  ;;  %462 = vst [vmem:[#allocation1 + $0x10] ss:$2 sm:$0xff] %v1561_v28 }
  0x9f   : > { %v463_v32 = vld.sshfl [vmem:[#allocation1] sm:$0xff pattern:$0x75316420]  ;;  %v1567_v33 = vld.sshfl [vmem:[#allocation1 + $0x8] sm:$0xff pattern:$0x75316420] }
  0xa0   : > { %1374 = vmatpush.msk.msra.mxu3 %vm363_vm0, %v463_v32  ;;  %537 = vst [vmem:[#allocation1] ss:$2 sm:$0xff] %v1559_v27  ;;  %v1571_v34 = vld.sshfl [vmem:[#allocation1 + $0x10] sm:$0xff pattern:$0x75316420] }
  0xa1   : > { %381 = vrot.lane.b32.xlu1 %v378_v30, %s1465_s17  ;;  %539 = vst [vmem:[#allocation1 + $0x10] ss:$2 sm:$0xff] %v1561_v28  ;;  %1375 = vmatmul.msk.f32.vlgmr.msra.gmra.mxu3 %vm390_vm1, %v370_v60  ;;  %v1408_v30 = vld [vmem:[%s1724_s2 + $0x18] sm:$0xf] }
  0xa7   : > { %v541_v35 = vld.sshfl [vmem:[#allocation1 + $0x8] sm:$0xff pattern:$0x75316420]  ;;  %v540_v36 = vld.sshfl [vmem:[#allocation1] sm:$0xff pattern:$0x75316420] }
  0xa8   : > { %v542_v37 = vld.sshfl [vmem:[#allocation1 + $0x10] sm:$0xff pattern:$0x75316420]  ;;  %545 = vrot.lane.b32.xlu0 %v541_v35, %s1466_s18  ;;  %543 = vrot.lane.b32.xlu2 %v540_v36, %s1466_s18  ;;  %626 = vst [vmem:[#allocation1] ss:$2 sm:$0xff] %v1559_v27 }
  0xa9   : > { %628 = vst [vmem:[#allocation1 + $0x10] ss:$2 sm:$0xff] %v1561_v28  ;;  %547 = vrot.lane.b32.xlu1 %v542_v37, %s1466_s18  ;;  %v1170_v35 = vld [vmem:[%s1725_s3] sm:$0xf] }
  0xaf   : > { %v630_v38 = vld.sshfl [vmem:[#allocation1 + $0x8] sm:$0xff pattern:$0x75316420]  ;;  %v629_v39 = vld.sshfl [vmem:[#allocation1] sm:$0xff pattern:$0x75316420] }
  0xb0   : > { %v631_v40 = vld.sshfl [vmem:[#allocation1 + $0x10] sm:$0xff pattern:$0x75316420]  ;;  %634 = vrot.lane.b32.xlu2 %v630_v38, %s1467_s19  ;;  %715 = vst [vmem:[#allocation1] ss:$2 sm:$0xff] %v1559_v27 }
  0xb1   : > { %717 = vst [vmem:[#allocation1 + $0x10] ss:$2 sm:$0xff] %v1561_v28  ;;  %636 = vrot.lane.b32.xlu0 %v631_v40, %s1467_s19  ;;  %632 = vrot.lane.b32.xlu1 %v629_v39, %s1467_s19  ;;  %v1415_v39 = vld [vmem:[%s1724_s2 + $0x1c] sm:$0xf] }
  0xb7   : > { %v719_v41 = vld.sshfl [vmem:[#allocation1 + $0x8] sm:$0xff pattern:$0x75316420]  ;;  %v718_v42 = vld.sshfl [vmem:[#allocation1] sm:$0xff pattern:$0x75316420] }
  0xb8   : > { %v720_v43 = vld.sshfl [vmem:[#allocation1 + $0x10] sm:$0xff pattern:$0x75316420]  ;;  %804 = vst [vmem:[#allocation1] ss:$2 sm:$0xff] %v1559_v27 }
  0xb9   : > { %806 = vst [vmem:[#allocation1 + $0x10] ss:$2 sm:$0xff] %v1561_v28  ;;  %725 = vrot.lane.b32.xlu2 %v720_v43, %s1468_s20  ;;  %723 = vrot.lane.b32.xlu1 %v719_v41, %s1468_s20 }
  0xba   : > { %721 = vrot.lane.b32.xlu0 %v718_v42, %s1468_s20 }
  0xbf   : > { %v808_v44 = vld.sshfl [vmem:[#allocation1 + $0x8] sm:$0xff pattern:$0x75316420]  ;;  %v807_v45 = vld.sshfl [vmem:[#allocation1] sm:$0xff pattern:$0x75316420] }
  0xc0   : > { %893 = vst [vmem:[#allocation1] ss:$2 sm:$0xff] %v1559_v27  ;;  %v809_v46 = vld.sshfl [vmem:[#allocation1 + $0x10] sm:$0xff pattern:$0x75316420] }
  0xc1   : > { %810 = vrot.lane.b32.xlu2 %v807_v45, %s1469_s21  ;;  %895 = vst [vmem:[#allocation1 + $0x10] ss:$2 sm:$0xff] %v1561_v28 }
  0xc2   : > { %812 = vrot.lane.b32.xlu0 %v808_v44, %s1469_s21 }
  0xc7   : > { %v897_v47 = vld.sshfl [vmem:[#allocation1 + $0x8] sm:$0xff pattern:$0x75316420]  ;;  %v896_v48 = vld.sshfl [vmem:[#allocation1] sm:$0xff pattern:$0x75316420] }
  0xc8   : > { %v898_v49 = vld.sshfl [vmem:[#allocation1 + $0x10] sm:$0xff pattern:$0x75316420]  ;;  %v899_v50 = vld.sshfl [vmem:[#allocation1 + $0x18] sm:$0xff pattern:$0x75316420]  ;;  %900 = vrot.lane.b32.xlu1 %v896_v48, %s1470_s22 }
  0xc9   : > { %988 = vst [vmem:[#allocation1 + $0x10] ss:$2 sm:$0xff] %v1561_v28  ;;  %902 = vrot.lane.b32.xlu2 %v897_v47, %s1470_s22 }
  0xca   : > { %814 = vrot.lane.b32.xlu0 %v809_v46, %s1469_s21  ;;  %986 = vst [vmem:[#allocation1] ss:$2 sm:$0xff] %v1559_v27 }
  0xd0   : > { %v991_v51 = vld.sshfl [vmem:[#allocation1 + $0x10] sm:$0xff pattern:$0x75316420]  ;;  %904 = vrot.lane.b32.xlu1 %v898_v49, %s1470_s22  ;;  %v992_v52 = vld.sshfl [vmem:[#allocation1 + $0x18] sm:$0xff pattern:$0x75316420] }
  0xd1   : > { %v990_v53 = vld.sshfl [vmem:[#allocation1 + $0x8] sm:$0xff pattern:$0x75316420]  ;;  %1081 = vst [vmem:[#allocation1 + $0x10] ss:$2 sm:$0xff] %v1561_v28 }
  0xd2   : > { %997 = vrot.lane.b32.xlu0 %v991_v51, %s1471_s23  ;;  %995 = vrot.lane.b32.xlu2 %v990_v53, %s1471_s23  ;;  %v989_v54 = vld.sshfl [vmem:[#allocation1] sm:$0xff pattern:$0x75316420] }
  0xd3   : > { %1079 = vst [vmem:[#allocation1] ss:$2 sm:$0xff] %v1559_v27 }
  0xd8   : > { %906 = vrot.lane.b32.xlu1 %v899_v50, %s1470_s22  ;;  %v1084_v55 = vld.sshfl [vmem:[#allocation1 + $0x10] sm:$0xff pattern:$0x75316420]  ;;  %v1085_v56 = vld.sshfl [vmem:[#allocation1 + $0x18] sm:$0xff pattern:$0x75316420] }
  0xda   : > { %999 = vrot.lane.b32.xlu0 %v992_v52, %s1471_s23  ;;  %993 = vrot.lane.b32.xlu2 %v989_v54, %s1471_s23  ;;  %v1082_v57 = vld.sshfl [vmem:[#allocation1] sm:$0xff pattern:$0x75316420]  ;;  %v1083_v58 = vld.sshfl [vmem:[#allocation1 + $0x8] sm:$0xff pattern:$0x75316420] }
  0xe0   : > { %1090 = vrot.lane.b32.xlu1 %v1084_v55, %s1472_s24 }
  0xe2   : > { %1092 = vrot.lane.b32.xlu2 %v1085_v56, %s1472_s24  ;;  %1086 = vrot.lane.b32.xlu0 %v1082_v57, %s1472_s24 }
  0xe8   : > { %1088 = vrot.lane.b32.xlu1 %v1083_v58, %s1472_s24 }
  0xea   : > { %1179 = vrot.lane.b32.xlu0 %v357_v14, %s1468_s20  ;;  %v1387_v14 = vld [vmem:[%s1724_s2 + $0xc] sm:$0xf]  ;;  %1173 = vperm.xlu2 %1454, %v1170_v35  }
  0xf0   : > { %1181 = vrot.lane.b32.xlu1 %v358_v8, %s1468_s20 }
  0xf2   : > { %v384_v59 = vpop.permute.xlu2 %383  ;;  %1183 = vrot.lane.b32.xlu2 %v359_v15, %s1468_s20 }
 0x102   : > { %v544_v61 = vpop.permute.xlu2 %543 }
 0x10a   : > { %v635_v62 = vpop.permute.xlu2 %634 }
 0x10b   : > { %v386_v0 = vpop.permute.xlu1 %385 }
 0x10c   : > { %1372 = vmatpush.msk.msra.mxu2 %vm363_vm0, %v386_v0  ;;  %v389_v1 = vsel %vm387_vm2, %v384_v59, %v386_v0 }
 0x10d   : > { %1370 = vmatpush.msk.msra.mxu1 %vm363_vm0, %v389_v1  ;;  %1373 = vmatmul.msk.f32.vlgmr.msra.gmra.mxu2 %vm390_vm1, %v1367_v63 }
 0x10e   : > { %1371 = vmatmul.msk.f32.vlgmr.msra.gmra.mxu1 %vm390_vm1, %v1367_v63 }
 0x10f   : > { %1378 = vmatpush.msk.msrb.mxu1 %vm363_vm0, %v1571_v34 }
 0x113   : > { %v382_v2 = vpop.permute.xlu1 %381  ;;  %v726_v3 = vpop.permute.xlu2 %725 }
 0x114   : > { %v388_v4 = vsel %vm387_vm2, %v382_v2, %v384_v59  ;;  %vm1201_vm2 = vcmask 3072  }
 0x115   : > { %1368 = vmatpush.msk.msra.mxu0 %vm363_vm0, %v388_v4 }
 0x116   : > { %1369 = vmatmul.msk.f32.vlgmr.msra.gmra.mxu0 %vm390_vm1, %v1367_v63  ;;  %1379 = vmatmul.msk.f32.vlgmr.msrb.gmra.mxu1 %vm390_vm1, %v370_v60 }
 0x117   : > { %1376 = vmatpush.msk.msrb.mxu0 %vm363_vm0, %v1567_v33 }
 0x11a   : > { %v546_v5 = vpop.permute.xlu0 %545 }
 0x11b   : > { %v548_v8 = vpop.permute.xlu1 %547  ;;  %v550_v9 = vsel %vm549_vm3, %v544_v61, %v546_v5  ;;  %v811_v10 = vpop.permute.xlu2 %810 }
 0x11c   : > { %1385 = vmatpush.msk.msra.mxu0 %vm363_vm0, %v548_v8  ;;  %1381 = vmatpush.msk.msrb.mxu2 %vm363_vm0, %v550_v9  ;;  %v551_v11 = vsel %vm549_vm3, %v546_v5, %v548_v8 }
 0x11d   : > { %1383 = vmatpush.msk.msrb.mxu3 %vm363_vm0, %v551_v11  ;;  %1382 = vmatmul.msk.f32.vlgmr.msrb.gmra.mxu2 %vm390_vm1, %v1380_v6 }
 0x11e   : > { %1384 = vmatmul.msk.f32.vlgmr.msrb.gmra.mxu3 %vm390_vm1, %v1380_v6  ;;  %1377 = vmatmul.msk.f32.vlgmr.msrb.gmra.mxu0 %vm390_vm1, %v370_v60 }
 0x123   : > { %v637_v12 = vpop.permute.xlu0 %636  ;;  %v633_v13 = vpop.permute.xlu1 %632 }
 0x124   : > { %v640_v16 = vsel %vm638_vm4, %v635_v62, %v637_v12  ;;  %v639_v17 = vsel %vm638_vm4, %v633_v13, %v635_v62  ;;  %1392 = vmatpush.msk.msra.mxu3 %vm363_vm0, %v637_v12  ;;  %v903_v18 = vpop.permute.xlu2 %902  ;;  %v492_v54 = vpop.f32.mrf.mxu3 }
 0x125   : > { %1388 = vmatpush.msk.msra.mxu1 %vm363_vm0, %v639_v17  ;;  %1390 = vmatpush.msk.msra.mxu2 %vm363_vm0, %v640_v16 }
 0x126   : > { %1389 = vmatmul.msk.f32.vlgmr.msra.gmra.mxu1 %vm390_vm1, %v1387_v14  ;;  %1386 = vmatmul.msk.f32.vlgmr.msra.gmra.mxu0 %vm390_vm1, %v1380_v6 }
 0x127   : > { %1399 = vmatpush.msk.msrb.mxu2 %vm363_vm0, %v726_v3  ;;  %1393 = vmatmul.msk.f32.vlgmr.msra.gmra.mxu3 %vm390_vm1, %v1387_v14 }
 0x128   : > { %1391 = vmatmul.msk.f32.vlgmr.msra.gmra.mxu2 %vm390_vm1, %v1387_v14 }
 0x12b   : > { %v724_v19 = vpop.permute.xlu1 %723 }
 0x12c   : > { %v729_v21 = vsel %vm727_vm5, %v724_v19, %v726_v3  ;;  %v722_v22 = vpop.permute.xlu0 %721  ;;  %v996_v24 = vpop.permute.xlu2 %995 }
 0x12d   : > { %v728_v23 = vsel %vm727_vm5, %v722_v22, %v724_v19  ;;  %1397 = vmatpush.msk.msrb.mxu1 %vm363_vm0, %v729_v21 }
 0x12e   : > { %1395 = vmatpush.msk.msrb.mxu0 %vm363_vm0, %v728_v23  ;;  %1398 = vmatmul.msk.f32.vlgmr.msrb.gmra.mxu1 %vm390_vm1, %v1394_v20 }
 0x12f   : > { %1396 = vmatmul.msk.f32.vlgmr.msrb.gmra.mxu0 %vm390_vm1, %v1394_v20 }
 0x130   : > { %1400 = vmatmul.msk.f32.vlgmr.msrb.gmra.mxu2 %vm390_vm1, %v1394_v20 }
 0x134   : > { %v813_v25 = vpop.permute.xlu0 %812  ;;  %v994_v28 = vpop.permute.xlu2 %993 }
 0x135   : > { %v817_v27 = vsel %vm816_vm6, %v811_v10, %v813_v25  ;;  %v1002_v33 = vsel %vm1001_vm8, %v994_v28, %v996_v24 }
 0x136   : > { %1402 = vmatpush.msk.msrb.mxu3 %vm363_vm0, %v817_v27 }
 0x137   : > { %1403 = vmatmul.msk.f32.vlgmr.msrb.gmra.mxu3 %vm390_vm1, %v1401_v26 }
 0x13a   : > { %v901_v29 = vpop.permute.xlu1 %900 }
 0x13b   : > { %v909_v31 = vsel %vm908_vm7, %v901_v29, %v903_v18 }
 0x13c   : > { %v815_v32 = vpop.permute.xlu0 %814  ;;  %1409 = vmatpush.msk.msra.mxu2 %vm363_vm0, %v909_v31  ;;  %v1093_v45 = vpop.permute.xlu2 %1092 }
 0x13d   : > { %v818_v34 = vsel %vm816_vm6, %v813_v25, %v815_v32  ;;  %1406 = vmatpush.msk.msra.mxu1 %vm363_vm0, %v815_v32  ;;  %1410 = vmatmul.msk.f32.vlgmr.msra.gmra.mxu2 %vm390_vm1, %v1408_v30 }
 0x13e   : > { %1404 = vmatpush.msk.msra.mxu0 %vm363_vm0, %v818_v34  ;;  %1407 = vmatmul.msk.f32.vlgmr.msra.gmra.mxu1 %vm390_vm1, %v1401_v26 }
 0x13f   : > { %1416 = vmatpush.msk.msrb.mxu1 %vm363_vm0, %v1002_v33  ;;  %1405 = vmatmul.msk.f32.vlgmr.msra.gmra.mxu0 %vm390_vm1, %v1401_v26 }
 0x142   : > { %v905_v36 = vpop.permute.xlu1 %904 }
 0x143   : > { %v910_v37 = vsel %vm908_vm7, %v903_v18, %v905_v36  ;;  %v1473_v18 = vmov 0.0  }
 0x144   : > { %v998_v38 = vpop.permute.xlu0 %997  ;;  %1411 = vmatpush.msk.msra.mxu3 %vm363_vm0, %v910_v37  ;;  %1214 = vst [vmem:[%s1696_s30] sm:$0xff] %v1473_v18  ;;  %v1174_v19 = vpop.permute.xlu2 %1173 }
 0x145   : > { %v1003_v40 = vsel %vm1001_vm8, %v996_v24, %v998_v38  ;;  %1412 = vmatmul.msk.f32.vlgmr.msra.gmra.mxu3 %vm390_vm1, %v1408_v30  ;;  %1217 = vst.msk [vmem:[%s1696_s30 + $0x8] sm:$0xff] %vm1216_vm12, %v1473_v18 }
 0x146   : > { %1418 = vmatpush.msk.msrb.mxu2 %vm363_vm0, %v1003_v40  ;;  %1417 = vmatmul.msk.f32.vlgmr.msrb.gmra.mxu1 %vm390_vm1, %v1415_v39 }
 0x147   : > { %1419 = vmatmul.msk.f32.vlgmr.msrb.gmra.mxu2 %vm390_vm1, %v1415_v39 }
 0x14a   : > { %v907_v41 = vpop.permute.xlu1 %906 }
 0x14b   : > { %v911_v42 = vsel %vm908_vm7, %v905_v36, %v907_v41 }
 0x14c   : > { %v1000_v43 = vpop.permute.xlu0 %999  ;;  %1413 = vmatpush.msk.msrb.mxu0 %vm363_vm0, %v911_v42  ;;  %v1184_v35 = vpop.permute.xlu2 %1183 }
 0x14d   : > { %v1004_v44 = vsel %vm1001_vm8, %v998_v38, %v1000_v43  ;;  %1414 = vmatmul.msk.f32.vlgmr.msrb.gmra.mxu0 %vm390_vm1, %v1408_v30 }
 0x14e   : > { %1420 = vmatpush.msk.msrb.mxu3 %vm363_vm0, %v1004_v44 }
 0x14f   : > { %1421 = vmatmul.msk.f32.vlgmr.msrb.gmra.mxu3 %vm390_vm1, %v1415_v39 }
 0x152   : > { %v1091_v46 = vpop.permute.xlu1 %1090 }
 0x153   : > { %v1097_v15 = vsel %vm1094_vm9, %v1091_v46, %v1093_v45 }
 0x154   : > { %1427 = vmatpush.msk.msra.mxu2 %vm363_vm0, %v1097_v15  ;;  %v1087_v47 = vpop.permute.xlu0 %1086 }
 0x155   : > { %1428 = vmatmul.msk.f32.vlgmr.msra.gmra.mxu2 %vm390_vm1, %v1422_v7 }
 0x15a   : > { %v1089_v48 = vpop.permute.xlu1 %1088 }
 0x15b   : > { %v1095_v49 = vsel %vm1094_vm9, %v1087_v47, %v1089_v48  ;;  %v1096_v50 = vsel %vm1094_vm9, %v1089_v48, %v1091_v46 }
 0x15c   : > { %1423 = vmatpush.msk.msra.mxu0 %vm363_vm0, %v1095_v49  ;;  %1425 = vmatpush.msk.msra.mxu1 %vm363_vm0, %v1096_v50  ;;  %v1180_v40 = vpop.permute.xlu0 %1179 }
 0x15d   : > { %1424 = vmatmul.msk.f32.vlgmr.msra.gmra.mxu0 %vm390_vm1, %v1422_v7  ;;  %1426 = vmatmul.msk.f32.vlgmr.msra.gmra.mxu1 %vm390_vm1, %v1422_v7  ;;  %vm1235_vm1 = vmor %vm1234_vm14, %vm1233_vm13 }
 0x162   : > { %v1182_v39 = vpop.permute.xlu1 %1181 }
 0x163   : > { %v1186_v46 = vsel %vm727_vm5, %v1182_v39, %v1184_v35  ;;  %v1185_v7 = vsel %vm727_vm5, %v1180_v40, %v1182_v39 }
 0x18b   : > { %v437_v51 = vpop.f32.mrf.mxu1 }
 0x190   : > { %v457_v53 = vpop.f32.mrf.mxu2 }
 0x193   : > { %v417_v52 = vpop.f32.mrf.mxu0  ;;  %v532_v55 = vpop.f32.mrf.mxu1 }
 0x194   : > { %v533_v3 = vadd.f32 %v532_v55, %v457_v53  ;;  %v493_v5 = vadd.f32 %v492_v54, %v417_v52 }
 0x19b   : > { %v512_v56 = vpop.f32.mrf.mxu0 }
 0x19c   : > { %v513_v4 = vadd.f32 %v512_v56, %v437_v51 }
 0x1a0   : > { %v578_v57 = vpop.f32.mrf.mxu2 }
 0x1a1   : > { %v598_v58 = vpop.f32.mrf.mxu3  ;;  %v621_v10 = vadd.f32 %v578_v57, %v493_v5 }
 0x1a2   : > { %v622_v11 = vadd.f32 %v598_v58, %v513_v4 }
 0x1a3   : > { %v667_v59 = vpop.f32.mrf.mxu1  ;;  %v618_v60 = vpop.f32.mrf.mxu0 }
 0x1a4   : > { %v623_v6 = vadd.f32 %v618_v60, %v533_v3  ;;  %v710_v16 = vadd.f32 %v667_v59, %v621_v10 }
 0x1aa   : > { %v707_v62 = vpop.f32.mrf.mxu3 }
 0x1ab   : > { %v687_v61 = vpop.f32.mrf.mxu2  ;;  %v776_v63 = vpop.f32.mrf.mxu1  ;;  %v712_v14 = vadd.f32 %v707_v62, %v623_v6 }
 0x1ac   : > { %v756_v0 = vpop.f32.mrf.mxu0  ;;  %v711_v17 = vadd.f32 %v687_v61, %v622_v11 }
 0x1ad   : > { %v799_v22 = vadd.f32 %v756_v0, %v710_v16 }
 0x1ae   : > { %v800_v23 = vadd.f32 %v776_v63, %v711_v17 }
 0x1b3   : > { %v796_v1 = vpop.f32.mrf.mxu2 }
 0x1b4   : > { %v801_v20 = vadd.f32 %v796_v1, %v712_v14 }
 0x1ba   : > { %v845_v2 = vpop.f32.mrf.mxu3 }
 0x1bb   : > { %v885_v8 = vpop.f32.mrf.mxu1  ;;  %v888_v28 = vadd.f32 %v845_v2, %v799_v22 }
 0x1bc   : > { %v865_v12 = vpop.f32.mrf.mxu0  ;;  %v890_v27 = vadd.f32 %v885_v8, %v801_v20 }
 0x1bd   : > { %v889_v26 = vadd.f32 %v865_v12, %v800_v23 }
 0x1c0   : > { %v938_v9 = vpop.f32.mrf.mxu2 }
 0x1c1   : > { %v981_v30 = vadd.f32 %v938_v9, %v888_v28 }
 0x1c3   : > { %v1031_v24 = vpop.f32.mrf.mxu1 }
 0x1c4   : > { %v1074_v36 = vadd.f32 %v1031_v24, %v981_v30 }
 0x1c8   : > { %v958_v13 = vpop.f32.mrf.mxu3 }
 0x1c9   : > { %v982_v31 = vadd.f32 %v958_v13, %v889_v26 }
 0x1ca   : > { %v1051_v21 = vpop.f32.mrf.mxu2  ;;  %v978_v25 = vpop.f32.mrf.mxu0 }
 0x1cb   : > { %v983_v32 = vadd.f32 %v978_v25, %v890_v27  ;;  %v1075_v37 = vadd.f32 %v1051_v21, %v982_v31 }
 0x1d2   : > { %v1071_v29 = vpop.f32.mrf.mxu3 }
 0x1d3   : > { %v1076_v33 = vadd.f32 %v1071_v29, %v983_v32 }
 0x1d8   : > { %v1164_v34 = vpop.f32.mrf.mxu2 }
 0x1d9   : > { %v1169_v38 = vadd.f32 %v1164_v34, %v1076_v33 }
 0x1da   : > { %v1124_v41 = vpop.f32.mrf.mxu0  ;;  %v1144_v42 = vpop.f32.mrf.mxu1 }
 0x1db   : > { %v1178_v43 = vadd.f32 %v1174_v19, %v1169_v38  ;;  %v1167_v44 = vadd.f32 %v1124_v41, %v1074_v36  ;;  %v1168_v45 = vadd.f32 %v1144_v42, %v1075_v37 }
 0x1dd   : > { %v1176_v15 = vadd.f32 %v1174_v19, %v1167_v44  ;;  %v1177_v47 = vadd.f32 %v1174_v19, %v1168_v45  ;;  %v1192_v48 = vmul.f32 %v1184_v35, %v1178_v43 }
 0x1df   : > { %v1191_v49 = vmul.f32 %v1186_v46, %v1177_v47  ;;  %v1190_v50 = vmul.f32 %v1185_v7, %v1176_v15  ;;  %v1205_v57 = vmul.f32 %v1192_v48, %v1192_v48  ;;  %v1197_v59 = vsel %vm1196_vm10, %v1192_v48, 0.0 }
 0x1e1   : > { %v1221_v51 = vrot.slane %v1191_v49, 4  ;;  %v1193_v52 = vsel %vm363_vm0, %v1190_v50, 0.0  ;;  %v1194_v53 = vsel %vm363_vm0, %v1191_v49, 0.0  ;;  %v1203_v54 = vmul.f32 %v1190_v50, %v1190_v50 }
 0x1e2   : > { %v1195_v55 = vadd.f32 %v1194_v53, %v1193_v52  ;;  %v1204_v56 = vmul.f32 %v1191_v49, %v1191_v49  ;;  %v1209_v0 = vsel %vm1196_vm10, %v1205_v57, 0.0 }
 0x1e3   : > { %v1222_v58 = vsel %vm363_vm0, %v1190_v50, %v1221_v51  ;;  %v1206_v60 = vsel %vm363_vm0, %v1203_v54, 0.0 }
 0x1e4   : > { %1223 = vrot.lane.b32.xlu0 %v1222_v58, %s1474_s11  ;;  %v1198_v61 = vadd.f32 %v1197_v59, %v1195_v55  ;;  %v1207_v62 = vsel %vm363_vm0, %v1204_v56, 0.0  ;;  %vm1237_vm0 = vcmask 1018880  }
 0x1e5   : > { %v1208_v63 = vadd.f32 %v1207_v62, %v1206_v60 }
 0x1e6   : > { %1199 = vadd.xlane.f32.xlu1 %v1198_v61 }
 0x1e7   : > { %v1210_v1 = vadd.f32 %v1209_v0, %v1208_v63 }
 0x1e9   : > { %1211 = vadd.xlane.f32.xlu2 %v1210_v1 }
 0x1ec   : > { %1225 = vrot.lane.b32.xlu0 %v1192_v48, %s1474_s11 }
 0x256   : > { %v1224_v2 = vpop.permute.xlu0 %1223 }
 0x257   : > { %v1227_v3 = vrot.slane %v1224_v2, 4 }
 0x259   : > { %v1229_v4 = vsel %vm1228_vm15, %v1227_v3, %v1224_v2  ;;  %v1200_v5 = vpop.xlane.xlu1 %1199 }
 0x25a   : > { %1236 = vst.msk [vmem:[%s1696_s30] sm:$0xff] %vm1235_vm1, %v1229_v4 }
 0x25b   : > { %1202 = vst.msk [vmem:[%s322_s13] sm:$0xf] %vm1201_vm2, %v1200_v5 }
 0x25c   : > { %v1212_v6 = vpop.xlane.xlu2 %1211 }
 0x25d   : > { %1213 = vst.msk [vmem:[%s326_s16] sm:$0xf] %vm1201_vm2, %v1212_v6 }
 0x25e   : > { %v1226_v8 = vpop.permute.xlu0 %1225 }
 0x25f   : > { %v1230_v9 = vsel %vm1228_vm15, %v1227_v3, %v1226_v8 }
 0x260   : > { %1238 = vst.msk [vmem:[%s1696_s30 + $0x8] sm:$0xf] %vm1237_vm0, %v1230_v9 }
 0x261 PF: > { %s19_s27 = sadd.s32 1, %s1461_s27  }
 0x262   : > { %p16_p4 = scmp.ge.s32.totalorder %s19_s27, 4  }
 0x264   :  { %18 = sbr.rel (!%p16_p4) target bundleno = 1 (0x1), region = 115 }

</bundles_post_ra>
